<compile_context>
chip_gen: v7x
topology: tpu7x:2x2x1
jax: 0.10.0
libtpu: 0.0.40
codegen_flags: <defaults>
</compile_context>

<pallas_src>
import functools

import jax
import jax.numpy as jnp
from jax.experimental import pallas as pl
from jax.experimental.pallas import tpu as pltpu

EPS = 1e-5
LANE = 128


def _round_up(x, m):
    return (x + m - 1) // m * m


# ----------------------------- Pallas kernels ------------------------------ #

def _conv1_up_kernel(xslab_ref, wcat_ref, bup_ref,
                     y1_ref, res_ref, stats_ref, *, th, w, cout_p):
    """Fused conv1 + residual `up` conv on one haloed row slab.

    xslab_ref : (th+2, w+2, cin_p) bf16   haloed input rows (zero pad baked in)
    wcat_ref  : (9, cin_p, 2*cout_p) bf16 per-tap [w1 | w_up] weight matrices
    bup_ref   : (1, cout_p) f32           residual conv bias
    y1_ref    : (th*w, cout_p) bf16       conv1 output (pre-BN)
    res_ref   : (th*w, cout_p) bf16       residual branch
    stats_ref : (8, cout_p) f32           rows 0/1 = per-channel sum / sumsq of y1
    """
    tw = th * w
    # Widen once so the 9 shifted slices stay in a 32-bit (unpacked) layout;
    # each tap operand is narrowed back to bf16 right before the MXU op.
    x = xslab_ref[...].astype(jnp.float32)
    acc = jnp.zeros((tw, 2 * cout_p), jnp.float32)
    for kh in range(3):
        for kw in range(3):
            xi = x[kh:kh + th, kw:kw + w, :].reshape(tw, -1).astype(jnp.bfloat16)
            acc = acc + jnp.dot(xi, wcat_ref[kh * 3 + kw],
                                preferred_element_type=jnp.float32)
    y1 = acc[:, :cout_p]
    y1_ref[...] = y1.astype(y1_ref.dtype)
    res_ref[...] = (acc[:, cout_p:] + bup_ref[...]).astype(res_ref.dtype)
    stats_ref[...] = jnp.concatenate(
        [jnp.sum(y1, axis=0, keepdims=True),
         jnp.sum(y1 * y1, axis=0, keepdims=True),
         jnp.zeros((6, cout_p), jnp.float32)], axis=0)


def _bn1_conv2_kernel(yslab_ref, w2_ref, sc1_ref, sh1_ref,
                      y2_ref, stats_ref, *, th, w, cout_p, tiles_per_img):
    """BN1 + ReLU on a haloed slab of conv1 output, then conv2 (the transpose
    conv expressed as a flipped 3x3 conv), emitting BN2 partial statistics."""
    tw = th * w
    wp = w + 2
    t = pl.program_id(0) % tiles_per_img

    act = (yslab_ref[...].astype(jnp.float32) * sc1_ref[...].reshape(1, 1, cout_p)
           + sh1_ref[...].reshape(1, 1, cout_p))
    act = jnp.maximum(act, 0.0)
    # conv2's zero padding applies to its *input* (post BN/ReLU), so re-zero the
    # image-boundary halo rows / columns of this slab (interior halos stay).
    ri = jax.lax.broadcasted_iota(jnp.int32, (th + 2, wp, 1), 0)
    ci = jax.lax.broadcasted_iota(jnp.int32, (th + 2, wp, 1), 1)
    pad = jnp.logical_or(ci == 0, ci == wp - 1)
    pad = jnp.logical_or(pad, jnp.logical_and(ri == 0, t == 0))
    pad = jnp.logical_or(pad, jnp.logical_and(ri == th + 1, t == tiles_per_img - 1))
    act = jnp.where(pad, 0.0, act)

    acc = jnp.zeros((tw, cout_p), jnp.float32)
    for kh in range(3):
        for kw in range(3):
            xi = act[kh:kh + th, kw:kw + w, :].reshape(tw, cout_p).astype(jnp.bfloat16)
            acc = acc + jnp.dot(xi, w2_ref[kh * 3 + kw],
                                preferred_element_type=jnp.float32)
    y2_ref[...] = acc.astype(y2_ref.dtype)
    stats_ref[...] = jnp.concatenate(
        [jnp.sum(acc, axis=0, keepdims=True),
         jnp.sum(acc * acc, axis=0, keepdims=True),
         jnp.zeros((6, cout_p), jnp.float32)], axis=0)


def _bn2_add_relu_kernel(y2_ref, res_ref, sc2_ref, sh2_ref, out_ref):
    """BN2 + residual add + ReLU, lane-dense elementwise epilogue."""
    y2 = y2_ref[...].astype(jnp.float32) * sc2_ref[...] + sh2_ref[...]
    out_ref[...] = jnp.maximum(res_ref[...].astype(jnp.float32) + y2, 0.0)


# ------------------------------- JAX glue ----------------------------------- #

def _taps(w_oihw, cin_p, cout_p):
    """(Cout, Cin, 3, 3) OIHW -> (9, cin_p, cout_p), tap-major (kh, kw)."""
    cout, cin = w_oihw.shape[0], w_oihw.shape[1]
    w = jnp.transpose(w_oihw, (2, 3, 1, 0)).reshape(9, cin, cout)
    return jnp.pad(w, ((0, 0), (0, cin_p - cin), (0, cout_p - cout)))


def _convtranspose_as_conv(w_t):
    """ConvTranspose2d weight (Cin, Cout, kh, kw), stride=1, pad=1 equals a 3x3
    same-padding conv with the kernel spatially flipped and channel axes swapped."""
    return jnp.transpose(w_t[:, :, ::-1, ::-1], (1, 0, 2, 3))          # OIHW


def _halo_slabs(x_nhwc, th):
    """(N, H, W, C) -> (N*(H//th)*(th+2), W+2, C): per row-tile slabs with a one
    row halo on each side and zero image padding baked in.  Only ~(1 + 2/th)x
    duplication instead of the 9x of a full im2col materialization."""
    n, h, w, c = x_nhwc.shape
    t = h // th
    xp = jnp.pad(x_nhwc, ((0, 0), (1, 1), (1, 1), (0, 0)))
    sl = jnp.stack([xp[:, i * th:i * th + th + 2] for i in range(t)], axis=1)
    return sl.reshape(n * t * (th + 2), w + 2, c)


def _bn_scale_shift(stats, count, gamma, beta):
    """Reduce per-tile (sum, sumsq) partials to BN scale/shift rows."""
    s = stats.reshape(-1, 8, stats.shape[-1])
    mean = jnp.sum(s[:, 0, :], axis=0) / count
    var = jnp.maximum(jnp.sum(s[:, 1, :], axis=0) / count - mean * mean, 0.0)
    scale = gamma * jax.lax.rsqrt(var + EPS)
    shift = beta - mean * scale
    return scale.reshape(1, -1), shift.reshape(1, -1)


def resnet18_block(x_nchw, params, *, row_tile=8):
    n, cin, h, w = x_nchw.shape
    cout = params["w1"].shape[0]
    cin_p, cout_p = _round_up(cin, LANE), _round_up(cout, LANE)
    th = row_tile if h % row_tile == 0 else h       # rows of the image per tile
    tiles_per_img = h // th
    ntiles = n * tiles_per_img
    nhw = n * h * w
    tw = th * w

    cparams = pltpu.CompilerParams(
        dimension_semantics=("parallel",),           # shard row tiles across TCs
        vmem_limit_bytes=32 * 1024 * 1024)

    def pad_c(v):
        return jnp.pad(v.astype(jnp.float32), (0, cout_p - cout))

    # ---- weights / BN params (channel padded, bf16 MXU operands) ----
    w1 = _taps(params["w1"], cin_p, cout_p)
    wup = _taps(params["wup"], cin_p, cout_p)
    wcat = jnp.concatenate([w1, wup], axis=-1).astype(jnp.bfloat16)    # (9,Cin,2*Cout)
    w2 = _taps(_convtranspose_as_conv(params["w2t"]),
               cout_p, cout_p).astype(jnp.bfloat16)
    bup = pad_c(params["bup"]).reshape(1, cout_p)
    # NOTE: conv biases b1/b2 cancel under training-mode BatchNorm -> dropped.

    # ---- activations: NCHW -> NHWC, channel pad, haloed row slabs ----
    x = jnp.transpose(x_nchw, (0, 2, 3, 1)).astype(jnp.float32)
    x = jnp.pad(x, ((0, 0), (0, 0), (0, 0), (0, cin_p - cin)))
    x_slabs = _halo_slabs(x, th).astype(jnp.bfloat16)

    row_spec = pl.BlockSpec((tw, cout_p), lambda i: (i, 0))
    stat_spec = pl.BlockSpec((8, cout_p), lambda i: (i, 0))
    vec_spec = pl.BlockSpec((1, cout_p), lambda i: (0, 0))

    # ---- pass 1: fused conv1 + residual conv, BN1 partial stats ----
    y1_raw, res, stats1 = pl.pallas_call(
        functools.partial(_conv1_up_kernel, th=th, w=w, cout_p=cout_p),
        grid=(ntiles,),
        in_specs=[pl.BlockSpec((th + 2, w + 2, cin_p), lambda i: (i, 0, 0)),
                  pl.BlockSpec((9, cin_p, 2 * cout_p), lambda i: (0, 0, 0)),
                  vec_spec],
        out_specs=(row_spec, row_spec, stat_spec),
        out_shape=(jax.ShapeDtypeStruct((nhw, cout_p), jnp.bfloat16),
                   jax.ShapeDtypeStruct((nhw, cout_p), jnp.bfloat16),
                   jax.ShapeDtypeStruct((ntiles * 8, cout_p), jnp.float32)),
        compiler_params=cparams,
    )(x_slabs, wcat, bup)

    sc1, sh1 = _bn_scale_shift(stats1, float(nhw),
                               pad_c(params["g1"]), pad_c(params["bt1"]))

    # ---- pass 2: BN1 + ReLU + conv2 (transpose conv), BN2 partial stats ----
    y1_slabs = _halo_slabs(y1_raw.reshape(n, h, w, cout_p), th)
    y2_raw, stats2 = pl.pallas_call(
        functools.partial(_bn1_conv2_kernel, th=th, w=w, cout_p=cout_p,
                          tiles_per_img=tiles_per_img),
        grid=(ntiles,),
        in_specs=[pl.BlockSpec((th + 2, w + 2, cout_p), lambda i: (i, 0, 0)),
                  pl.BlockSpec((9, cout_p, cout_p), lambda i: (0, 0, 0)),
                  vec_spec, vec_spec],
        out_specs=(row_spec, stat_spec),
        out_shape=(jax.ShapeDtypeStruct((nhw, cout_p), jnp.bfloat16),
                   jax.ShapeDtypeStruct((ntiles * 8, cout_p), jnp.float32)),
        compiler_params=cparams,
    )(y1_slabs, w2, sc1, sh1)

    sc2, sh2 = _bn_scale_shift(stats2, float(nhw),
                               pad_c(params["g2"]), pad_c(params["bt2"]))

    # ---- pass 3: BN2 + residual add + ReLU ----
    out = pl.pallas_call(
        _bn2_add_relu_kernel,
        grid=(ntiles,),
        in_specs=[row_spec, row_spec, vec_spec, vec_spec],
        out_specs=row_spec,
        out_shape=jax.ShapeDtypeStruct((nhw, cout_p), jnp.float32),
        compiler_params=cparams,
    )(y2_raw, res, sc2, sh2)

    out = out[:, :cout].reshape(n, h, w, cout)
    return jnp.transpose(out, (0, 3, 1, 2))                           # NCHW


# ----------------------- plain-JAX reference (check) ----------------------- #

def _ref_forward(x_nchw, params):
    def conv3x3(x, w_oihw, b):
        y = jax.lax.conv_general_dilated(
            x, w_oihw, window_strides=(1, 1), padding=((1, 1), (1, 1)),
            dimension_numbers=("NCHW", "OIHW", "NCHW"),
            precision=jax.lax.Precision.HIGHEST)
        return y + b.reshape(1, -1, 1, 1)

    def bn(x, g, b):
        mean = jnp.mean(x, axis=(0, 2, 3), keepdims=True)
        var = jnp.mean((x - mean) ** 2, axis=(0, 2, 3), keepdims=True)
        return ((x - mean) * jax.lax.rsqrt(var + EPS)
                * g.reshape(1, -1, 1, 1) + b.reshape(1, -1, 1, 1))

    residual = conv3x3(x_nchw, params["wup"], params["bup"])
    h = jnp.maximum(bn(conv3x3(x_nchw, params["w1"], params["b1"]),
                       params["g1"], params["bt1"]), 0.0)
    h = bn(conv3x3(h, _convtranspose_as_conv(params["w2t"]), params["b2"]),
           params["g2"], params["bt2"])
    return jnp.maximum(residual + h, 0.0)


# ---------------------------------- main ----------------------------------- #

if __name__ == "__main__":
    N, Cin, Cout, H, W = 2, 4, 8, 16, 16
    key = jax.random.PRNGKey(0)
    ks = jax.random.split(key, 7)
    params = {
        # Conv2d(Cin, Cout, 3): OIHW weight, bias
        "w1":  jax.random.normal(ks[0], (Cout, Cin, 3, 3), jnp.float32) * 0.1,
        "b1":  jax.random.normal(ks[1], (Cout,), jnp.float32) * 0.1,   # cancels in BN1
        # self.up = Conv2d(Cin, Cout, 3)
        "wup": jax.random.normal(ks[2], (Cout, Cin, 3, 3), jnp.float32) * 0.1,
        "bup": jax.random.normal(ks[3], (Cout,), jnp.float32) * 0.1,
        # ConvTranspose2d(Cout, Cout, 3): weight is (in, out, kh, kw)
        "w2t": jax.random.normal(ks[4], (Cout, Cout, 3, 3), jnp.float32) * 0.1,
        "b2":  jax.random.normal(ks[5], (Cout,), jnp.float32) * 0.1,   # cancels in BN2
        # BatchNorm2d affine params (PyTorch init: weight=1, bias=0)
        "g1":  jnp.ones((Cout,), jnp.float32),
        "bt1": jnp.zeros((Cout,), jnp.float32),
        "g2":  jnp.ones((Cout,), jnp.float32),
        "bt2": jnp.zeros((Cout,), jnp.float32),
    }
    x = jax.random.normal(ks[6], (N, Cin, H, W), jnp.float32)          # NCHW

    fwd = jax.jit(resnet18_block)
    out = jax.block_until_ready(fwd(x, params))
    ref = jax.block_until_ready(_ref_forward(x, params))
    assert out.shape == (N, Cout, H, W), out.shape
    # bf16 MXU operands / bf16 intermediates give ~1e-2-scale deviations from the
    # f32 HIGHEST-precision reference.
    if not bool(jnp.allclose(out, ref, atol=1e-1, rtol=5e-2)):
        raise RuntimeError("mismatch vs reference, max abs err = %g"
                           % float(jnp.max(jnp.abs(out - ref))))
    print("KERNEL_OK")
</pallas_src>

<mosaic_0001>
module attributes {stable_mosaic.version = 11 : i64} {
  func.func @_conv1_up_kernel(%arg0: i32, %arg1: memref<10x18x128xbf16, #tpu.memory_space<vmem>>, %arg2: memref<9x128x256xbf16, #tpu.memory_space<vmem>>, %arg3: memref<1x128xf32, #tpu.memory_space<vmem>>, %arg4: memref<128x128xbf16, #tpu.memory_space<vmem>>, %arg5: memref<128x128xbf16, #tpu.memory_space<vmem>>, %arg6: memref<8x128xf32, #tpu.memory_space<vmem>>) attributes {dimension_semantics = [#tpu.dimension_semantics<parallel>], iteration_bounds = array<i64: 4>, scalar_prefetch = 0 : i64, scratch_operands = 0 : i64, tpu.core_type = #tpu.core_type<tc>, window_params = [{transform_indices = @transform_0, window_bounds = array<i64: 10, 18, 128>}, {pipeline_mode = #tpu.pipeline_mode<synchronous>, transform_indices = @transform_1, window_bounds = array<i64: 9, 128, 256>}, {pipeline_mode = #tpu.pipeline_mode<synchronous>, transform_indices = @transform_2, window_bounds = array<i64: 1, 128>}, {transform_indices = @transform_3, window_bounds = array<i64: 128, 128>}, {transform_indices = @transform_4, window_bounds = array<i64: 128, 128>}, {transform_indices = @transform_5, window_bounds = array<i64: 8, 128>}]} {
    %c0 = arith.constant 0 : index
    %c0_0 = arith.constant 0 : index
    %c0_1 = arith.constant 0 : index
    %0 = vector.load %arg1[%c0, %c0_0, %c0_1] : memref<10x18x128xbf16, #tpu.memory_space<vmem>>, vector<10x18x128xbf16>
    %1 = arith.extf %0 : vector<10x18x128xbf16> to vector<10x18x128xf32>
    %cst = arith.constant 0.000000e+00 : f32
    %2 = vector.broadcast %cst : f32 to vector<128x256xf32>
    %3 = vector.extract_strided_slice %1 {offsets = [0, 0, 0], sizes = [8, 16, 128], strides = [1, 1, 1]} : vector<10x18x128xf32> to vector<8x16x128xf32>
    %4 = vector.shape_cast %3 : vector<8x16x128xf32> to vector<128x128xf32>
    %5 = arith.truncf %4 : vector<128x128xf32> to vector<128x128xbf16>
    %c0_2 = arith.constant 0 : index
    %c0_3 = arith.constant 0 : index
    %c0_4 = arith.constant 0 : index
    %6 = vector.load %arg2[%c0_2, %c0_3, %c0_4] : memref<9x128x256xbf16, #tpu.memory_space<vmem>>, vector<1x128x256xbf16>
    %7 = vector.shape_cast %6 : vector<1x128x256xbf16> to vector<128x256xbf16>
    %cst_5 = arith.constant dense<0.000000e+00> : vector<128x256xf32>
    %8 = tpu.matmul %5, %7, %cst_5 {dimension_numbers = #tpu.dot_dimension_numbers<[1], [0], [0], [1], [0, 0, 1, 1], [], []>} : vector<128x128xbf16>, vector<128x256xbf16>, vector<128x256xf32> -> vector<128x256xf32>
    %9 = arith.addf %2, %8 : vector<128x256xf32>
    %10 = vector.extract_strided_slice %1 {offsets = [0, 1, 0], sizes = [8, 16, 128], strides = [1, 1, 1]} : vector<10x18x128xf32> to vector<8x16x128xf32>
    %11 = vector.shape_cast %10 : vector<8x16x128xf32> to vector<128x128xf32>
    %12 = arith.truncf %11 : vector<128x128xf32> to vector<128x128xbf16>
    %c1 = arith.constant 1 : index
    %c0_6 = arith.constant 0 : index
    %c0_7 = arith.constant 0 : index
    %13 = vector.load %arg2[%c1, %c0_6, %c0_7] : memref<9x128x256xbf16, #tpu.memory_space<vmem>>, vector<1x128x256xbf16>
    %14 = vector.shape_cast %13 : vector<1x128x256xbf16> to vector<128x256xbf16>
    %cst_8 = arith.constant dense<0.000000e+00> : vector<128x256xf32>
    %15 = tpu.matmul %12, %14, %cst_8 {dimension_numbers = #tpu.dot_dimension_numbers<[1], [0], [0], [1], [0, 0, 1, 1], [], []>} : vector<128x128xbf16>, vector<128x256xbf16>, vector<128x256xf32> -> vector<128x256xf32>
    %16 = arith.addf %9, %15 : vector<128x256xf32>
    %17 = vector.extract_strided_slice %1 {offsets = [0, 2, 0], sizes = [8, 16, 128], strides = [1, 1, 1]} : vector<10x18x128xf32> to vector<8x16x128xf32>
    %18 = vector.shape_cast %17 : vector<8x16x128xf32> to vector<128x128xf32>
    %19 = arith.truncf %18 : vector<128x128xf32> to vector<128x128xbf16>
    %c2 = arith.constant 2 : index
    %c0_9 = arith.constant 0 : index
    %c0_10 = arith.constant 0 : index
    %20 = vector.load %arg2[%c2, %c0_9, %c0_10] : memref<9x128x256xbf16, #tpu.memory_space<vmem>>, vector<1x128x256xbf16>
    %21 = vector.shape_cast %20 : vector<1x128x256xbf16> to vector<128x256xbf16>
    %cst_11 = arith.constant dense<0.000000e+00> : vector<128x256xf32>
    %22 = tpu.matmul %19, %21, %cst_11 {dimension_numbers = #tpu.dot_dimension_numbers<[1], [0], [0], [1], [0, 0, 1, 1], [], []>} : vector<128x128xbf16>, vector<128x256xbf16>, vector<128x256xf32> -> vector<128x256xf32>
    %23 = arith.addf %16, %22 : vector<128x256xf32>
    %24 = vector.extract_strided_slice %1 {offsets = [1, 0, 0], sizes = [8, 16, 128], strides = [1, 1, 1]} : vector<10x18x128xf32> to vector<8x16x128xf32>
    %25 = vector.shape_cast %24 : vector<8x16x128xf32> to vector<128x128xf32>
    %26 = arith.truncf %25 : vector<128x128xf32> to vector<128x128xbf16>
    %c3 = arith.constant 3 : index
    %c0_12 = arith.constant 0 : index
    %c0_13 = arith.constant 0 : index
    %27 = vector.load %arg2[%c3, %c0_12, %c0_13] : memref<9x128x256xbf16, #tpu.memory_space<vmem>>, vector<1x128x256xbf16>
    %28 = vector.shape_cast %27 : vector<1x128x256xbf16> to vector<128x256xbf16>
    %cst_14 = arith.constant dense<0.000000e+00> : vector<128x256xf32>
    %29 = tpu.matmul %26, %28, %cst_14 {dimension_numbers = #tpu.dot_dimension_numbers<[1], [0], [0], [1], [0, 0, 1, 1], [], []>} : vector<128x128xbf16>, vector<128x256xbf16>, vector<128x256xf32> -> vector<128x256xf32>
    %30 = arith.addf %23, %29 : vector<128x256xf32>
    %31 = vector.extract_strided_slice %1 {offsets = [1, 1, 0], sizes = [8, 16, 128], strides = [1, 1, 1]} : vector<10x18x128xf32> to vector<8x16x128xf32>
    %32 = vector.shape_cast %31 : vector<8x16x128xf32> to vector<128x128xf32>
    %33 = arith.truncf %32 : vector<128x128xf32> to vector<128x128xbf16>
    %c4 = arith.constant 4 : index
    %c0_15 = arith.constant 0 : index
    %c0_16 = arith.constant 0 : index
    %34 = vector.load %arg2[%c4, %c0_15, %c0_16] : memref<9x128x256xbf16, #tpu.memory_space<vmem>>, vector<1x128x256xbf16>
    %35 = vector.shape_cast %34 : vector<1x128x256xbf16> to vector<128x256xbf16>
    %cst_17 = arith.constant dense<0.000000e+00> : vector<128x256xf32>
    %36 = tpu.matmul %33, %35, %cst_17 {dimension_numbers = #tpu.dot_dimension_numbers<[1], [0], [0], [1], [0, 0, 1, 1], [], []>} : vector<128x128xbf16>, vector<128x256xbf16>, vector<128x256xf32> -> vector<128x256xf32>
    %37 = arith.addf %30, %36 : vector<128x256xf32>
    %38 = vector.extract_strided_slice %1 {offsets = [1, 2, 0], sizes = [8, 16, 128], strides = [1, 1, 1]} : vector<10x18x128xf32> to vector<8x16x128xf32>
    %39 = vector.shape_cast %38 : vector<8x16x128xf32> to vector<128x128xf32>
    %40 = arith.truncf %39 : vector<128x128xf32> to vector<128x128xbf16>
    %c5 = arith.constant 5 : index
    %c0_18 = arith.constant 0 : index
    %c0_19 = arith.constant 0 : index
    %41 = vector.load %arg2[%c5, %c0_18, %c0_19] : memref<9x128x256xbf16, #tpu.memory_space<vmem>>, vector<1x128x256xbf16>
    %42 = vector.shape_cast %41 : vector<1x128x256xbf16> to vector<128x256xbf16>
    %cst_20 = arith.constant dense<0.000000e+00> : vector<128x256xf32>
    %43 = tpu.matmul %40, %42, %cst_20 {dimension_numbers = #tpu.dot_dimension_numbers<[1], [0], [0], [1], [0, 0, 1, 1], [], []>} : vector<128x128xbf16>, vector<128x256xbf16>, vector<128x256xf32> -> vector<128x256xf32>
    %44 = arith.addf %37, %43 : vector<128x256xf32>
    %45 = vector.extract_strided_slice %1 {offsets = [2, 0, 0], sizes = [8, 16, 128], strides = [1, 1, 1]} : vector<10x18x128xf32> to vector<8x16x128xf32>
    %46 = vector.shape_cast %45 : vector<8x16x128xf32> to vector<128x128xf32>
    %47 = arith.truncf %46 : vector<128x128xf32> to vector<128x128xbf16>
    %c6 = arith.constant 6 : index
    %c0_21 = arith.constant 0 : index
    %c0_22 = arith.constant 0 : index
    %48 = vector.load %arg2[%c6, %c0_21, %c0_22] : memref<9x128x256xbf16, #tpu.memory_space<vmem>>, vector<1x128x256xbf16>
    %49 = vector.shape_cast %48 : vector<1x128x256xbf16> to vector<128x256xbf16>
    %cst_23 = arith.constant dense<0.000000e+00> : vector<128x256xf32>
    %50 = tpu.matmul %47, %49, %cst_23 {dimension_numbers = #tpu.dot_dimension_numbers<[1], [0], [0], [1], [0, 0, 1, 1], [], []>} : vector<128x128xbf16>, vector<128x256xbf16>, vector<128x256xf32> -> vector<128x256xf32>
    %51 = arith.addf %44, %50 : vector<128x256xf32>
    %52 = vector.extract_strided_slice %1 {offsets = [2, 1, 0], sizes = [8, 16, 128], strides = [1, 1, 1]} : vector<10x18x128xf32> to vector<8x16x128xf32>
    %53 = vector.shape_cast %52 : vector<8x16x128xf32> to vector<128x128xf32>
    %54 = arith.truncf %53 : vector<128x128xf32> to vector<128x128xbf16>
    %c7 = arith.constant 7 : index
    %c0_24 = arith.constant 0 : index
    %c0_25 = arith.constant 0 : index
    %55 = vector.load %arg2[%c7, %c0_24, %c0_25] : memref<9x128x256xbf16, #tpu.memory_space<vmem>>, vector<1x128x256xbf16>
    %56 = vector.shape_cast %55 : vector<1x128x256xbf16> to vector<128x256xbf16>
    %cst_26 = arith.constant dense<0.000000e+00> : vector<128x256xf32>
    %57 = tpu.matmul %54, %56, %cst_26 {dimension_numbers = #tpu.dot_dimension_numbers<[1], [0], [0], [1], [0, 0, 1, 1], [], []>} : vector<128x128xbf16>, vector<128x256xbf16>, vector<128x256xf32> -> vector<128x256xf32>
    %58 = arith.addf %51, %57 : vector<128x256xf32>
    %59 = vector.extract_strided_slice %1 {offsets = [2, 2, 0], sizes = [8, 16, 128], strides = [1, 1, 1]} : vector<10x18x128xf32> to vector<8x16x128xf32>
    %60 = vector.shape_cast %59 : vector<8x16x128xf32> to vector<128x128xf32>
    %61 = arith.truncf %60 : vector<128x128xf32> to vector<128x128xbf16>
    %c8 = arith.constant 8 : index
    %c0_27 = arith.constant 0 : index
    %c0_28 = arith.constant 0 : index
    %62 = vector.load %arg2[%c8, %c0_27, %c0_28] : memref<9x128x256xbf16, #tpu.memory_space<vmem>>, vector<1x128x256xbf16>
    %63 = vector.shape_cast %62 : vector<1x128x256xbf16> to vector<128x256xbf16>
    %cst_29 = arith.constant dense<0.000000e+00> : vector<128x256xf32>
    %64 = tpu.matmul %61, %63, %cst_29 {dimension_numbers = #tpu.dot_dimension_numbers<[1], [0], [0], [1], [0, 0, 1, 1], [], []>} : vector<128x128xbf16>, vector<128x256xbf16>, vector<128x256xf32> -> vector<128x256xf32>
    %65 = arith.addf %58, %64 : vector<128x256xf32>
    %66 = vector.extract_strided_slice %65 {offsets = [0, 0], sizes = [128, 128], strides = [1, 1]} : vector<128x256xf32> to vector<128x128xf32>
    %67 = arith.truncf %66 : vector<128x128xf32> to vector<128x128xbf16>
    %c0_30 = arith.constant 0 : index
    %c0_31 = arith.constant 0 : index
    %68 = vector.load %arg4[%c0_30, %c0_31] : memref<128x128xbf16, #tpu.memory_space<vmem>>, vector<128x128xbf16>
    tpu.vector_store %arg4[%c0_30, %c0_31], %67 {strides = array<i32>} : memref<128x128xbf16, #tpu.memory_space<vmem>>, vector<128x128xbf16>,
    %69 = vector.extract_strided_slice %65 {offsets = [0, 128], sizes = [128, 128], strides = [1, 1]} : vector<128x256xf32> to vector<128x128xf32>
    %c0_32 = arith.constant 0 : index
    %c0_33 = arith.constant 0 : index
    %70 = vector.load %arg3[%c0_32, %c0_33] : memref<1x128xf32, #tpu.memory_space<vmem>>, vector<1x128xf32>
    %71 = vector.broadcast %70 : vector<1x128xf32> to vector<128x128xf32>
    %72 = arith.addf %69, %71 : vector<128x128xf32>
    %73 = arith.truncf %72 : vector<128x128xf32> to vector<128x128xbf16>
    %c0_34 = arith.constant 0 : index
    %c0_35 = arith.constant 0 : index
    %74 = vector.load %arg5[%c0_34, %c0_35] : memref<128x128xbf16, #tpu.memory_space<vmem>>, vector<128x128xbf16>
    tpu.vector_store %arg5[%c0_34, %c0_35], %73 {strides = array<i32>} : memref<128x128xbf16, #tpu.memory_space<vmem>>, vector<128x128xbf16>,
    %cst_36 = arith.constant dense<0.000000e+00> : vector<128xf32>
    %75 = vector.multi_reduction <add>, %66, %cst_36 [0] : vector<128x128xf32> to vector<128xf32>
    %76 = vector.shape_cast %75 : vector<128xf32> to vector<1x128xf32>
    %77 = arith.mulf %66, %66 : vector<128x128xf32>
    %cst_37 = arith.constant dense<0.000000e+00> : vector<128xf32>
    %78 = vector.multi_reduction <add>, %77, %cst_37 [0] : vector<128x128xf32> to vector<128xf32>
    %79 = vector.shape_cast %78 : vector<128xf32> to vector<1x128xf32>
    %cst_38 = arith.constant 0.000000e+00 : f32
    %80 = vector.broadcast %cst_38 : f32 to vector<6x128xf32>
    %81 = tpu.concatenate %76, %79, %80 in 0 : vector<1x128xf32>, vector<1x128xf32>, vector<6x128xf32> -> vector<8x128xf32>
    %c0_39 = arith.constant 0 : index
    %c0_40 = arith.constant 0 : index
    %82 = vector.load %arg6[%c0_39, %c0_40] : memref<8x128xf32, #tpu.memory_space<vmem>>, vector<8x128xf32>
    tpu.vector_store %arg6[%c0_39, %c0_40], %81 {strides = array<i32>} : memref<8x128xf32, #tpu.memory_space<vmem>>, vector<8x128xf32>,
    return
  }
  func.func @transform_0(%arg0: i32) -> (i32, i32, i32) {
    %c0_i32 = arith.constant 0 : i32
    %c0_i32_0 = arith.constant 0 : i32
    %c0_i32_1 = arith.constant 0 : i32
    return %arg0, %c0_i32, %c0_i32_0 : i32, i32, i32
  }
  func.func @transform_1(%arg0: i32) -> (i32, i32, i32) {
    %c0_i32 = arith.constant 0 : i32
    %c0_i32_0 = arith.constant 0 : i32
    %c0_i32_1 = arith.constant 0 : i32
    %c0_i32_2 = arith.constant 0 : i32
    return %c0_i32, %c0_i32_0, %c0_i32_1 : i32, i32, i32
  }
  func.func @transform_2(%arg0: i32) -> (i32, i32) {
    %c0_i32 = arith.constant 0 : i32
    %c0_i32_0 = arith.constant 0 : i32
    %c0_i32_1 = arith.constant 0 : i32
    return %c0_i32, %c0_i32_0 : i32, i32
  }
  func.func @transform_3(%arg0: i32) -> (i32, i32) {
    %c0_i32 = arith.constant 0 : i32
    %c0_i32_0 = arith.constant 0 : i32
    return %arg0, %c0_i32 : i32, i32
  }
  func.func @transform_4(%arg0: i32) -> (i32, i32) {
    %c0_i32 = arith.constant 0 : i32
    %c0_i32_0 = arith.constant 0 : i32
    return %arg0, %c0_i32 : i32, i32
  }
  func.func @transform_5(%arg0: i32) -> (i32, i32) {
    %c0_i32 = arith.constant 0 : i32
    %c0_i32_0 = arith.constant 0 : i32
    return %arg0, %c0_i32 : i32, i32
  }
}

module attributes {stable_mosaic.version = 11 : i64} {
  func.func @_bn2_add_relu_kernel(%arg0: i32, %arg1: memref<128x128xbf16, #tpu.memory_space<vmem>>, %arg2: memref<128x128xbf16, #tpu.memory_space<vmem>>, %arg3: memref<1x128xf32, #tpu.memory_space<vmem>>, %arg4: memref<1x128xf32, #tpu.memory_space<vmem>>, %arg5: memref<128x128xf32, #tpu.memory_space<vmem>>) attributes {dimension_semantics = [#tpu.dimension_semantics<parallel>], iteration_bounds = array<i64: 4>, scalar_prefetch = 0 : i64, scratch_operands = 0 : i64, tpu.core_type = #tpu.core_type<tc>, window_params = [{transform_indices = @transform_0, window_bounds = array<i64: 128, 128>}, {transform_indices = @transform_1, window_bounds = array<i64: 128, 128>}, {pipeline_mode = #tpu.pipeline_mode<synchronous>, transform_indices = @transform_2, window_bounds = array<i64: 1, 128>}, {pipeline_mode = #tpu.pipeline_mode<synchronous>, transform_indices = @transform_3, window_bounds = array<i64: 1, 128>}, {transform_indices = @transform_4, window_bounds = array<i64: 128, 128>}]} {
    %c0 = arith.constant 0 : index
    %c0_0 = arith.constant 0 : index
    %0 = vector.load %arg1[%c0, %c0_0] : memref<128x128xbf16, #tpu.memory_space<vmem>>, vector<128x128xbf16>
    %1 = arith.extf %0 : vector<128x128xbf16> to vector<128x128xf32>
    %c0_1 = arith.constant 0 : index
    %c0_2 = arith.constant 0 : index
    %2 = vector.load %arg3[%c0_1, %c0_2] : memref<1x128xf32, #tpu.memory_space<vmem>>, vector<1x128xf32>
    %3 = vector.broadcast %2 : vector<1x128xf32> to vector<128x128xf32>
    %4 = arith.mulf %1, %3 : vector<128x128xf32>
    %c0_3 = arith.constant 0 : index
    %c0_4 = arith.constant 0 : index
    %5 = vector.load %arg4[%c0_3, %c0_4] : memref<1x128xf32, #tpu.memory_space<vmem>>, vector<1x128xf32>
    %6 = vector.broadcast %5 : vector<1x128xf32> to vector<128x128xf32>
    %7 = arith.addf %4, %6 : vector<128x128xf32>
    %c0_5 = arith.constant 0 : index
    %c0_6 = arith.constant 0 : index
    %8 = vector.load %arg2[%c0_5, %c0_6] : memref<128x128xbf16, #tpu.memory_space<vmem>>, vector<128x128xbf16>
    %9 = arith.extf %8 : vector<128x128xbf16> to vector<128x128xf32>
    %10 = arith.addf %9, %7 : vector<128x128xf32>
    %cst = arith.constant 0.000000e+00 : f32
    %11 = vector.broadcast %cst : f32 to vector<128x128xf32>
    %12 = arith.maximumf %10, %11 : vector<128x128xf32>
    %c0_7 = arith.constant 0 : index
    %c0_8 = arith.constant 0 : index
    %13 = vector.load %arg5[%c0_7, %c0_8] : memref<128x128xf32, #tpu.memory_space<vmem>>, vector<128x128xf32>
    tpu.vector_store %arg5[%c0_7, %c0_8], %12 {strides = array<i32>} : memref<128x128xf32, #tpu.memory_space<vmem>>, vector<128x128xf32>,
    return
  }
  func.func @transform_0(%arg0: i32) -> (i32, i32) {
    %c0_i32 = arith.constant 0 : i32
    %c0_i32_0 = arith.constant 0 : i32
    return %arg0, %c0_i32 : i32, i32
  }
  func.func @transform_1(%arg0: i32) -> (i32, i32) {
    %c0_i32 = arith.constant 0 : i32
    %c0_i32_0 = arith.constant 0 : i32
    return %arg0, %c0_i32 : i32, i32
  }
  func.func @transform_2(%arg0: i32) -> (i32, i32) {
    %c0_i32 = arith.constant 0 : i32
    %c0_i32_0 = arith.constant 0 : i32
    %c0_i32_1 = arith.constant 0 : i32
    return %c0_i32, %c0_i32_0 : i32, i32
  }
  func.func @transform_3(%arg0: i32) -> (i32, i32) {
    %c0_i32 = arith.constant 0 : i32
    %c0_i32_0 = arith.constant 0 : i32
    %c0_i32_1 = arith.constant 0 : i32
    return %c0_i32, %c0_i32_0 : i32, i32
  }
  func.func @transform_4(%arg0: i32) -> (i32, i32) {
    %c0_i32 = arith.constant 0 : i32
    %c0_i32_0 = arith.constant 0 : i32
    return %arg0, %c0_i32 : i32, i32
  }
}

module attributes {stable_mosaic.version = 11 : i64} {
  func.func @_bn1_conv2_kernel(%arg0: i32, %arg1: memref<10x18x128xbf16, #tpu.memory_space<vmem>>, %arg2: memref<9x128x128xbf16, #tpu.memory_space<vmem>>, %arg3: memref<1x128xf32, #tpu.memory_space<vmem>>, %arg4: memref<1x128xf32, #tpu.memory_space<vmem>>, %arg5: memref<128x128xbf16, #tpu.memory_space<vmem>>, %arg6: memref<8x128xf32, #tpu.memory_space<vmem>>) attributes {dimension_semantics = [#tpu.dimension_semantics<parallel>], iteration_bounds = array<i64: 4>, scalar_prefetch = 0 : i64, scratch_operands = 0 : i64, tpu.core_type = #tpu.core_type<tc>, window_params = [{transform_indices = @transform_0, window_bounds = array<i64: 10, 18, 128>}, {pipeline_mode = #tpu.pipeline_mode<synchronous>, transform_indices = @transform_1, window_bounds = array<i64: 9, 128, 128>}, {pipeline_mode = #tpu.pipeline_mode<synchronous>, transform_indices = @transform_2, window_bounds = array<i64: 1, 128>}, {pipeline_mode = #tpu.pipeline_mode<synchronous>, transform_indices = @transform_3, window_bounds = array<i64: 1, 128>}, {transform_indices = @transform_4, window_bounds = array<i64: 128, 128>}, {transform_indices = @transform_5, window_bounds = array<i64: 8, 128>}]} {
    %c2_i32 = arith.constant 2 : i32
    %c0_i32 = arith.constant 0 : i32
    %0 = arith.cmpi eq, %c2_i32, %c0_i32 : i32
    %c1_i32 = arith.constant 1 : i32
    %1 = arith.select %0, %c1_i32, %c2_i32 : i32
    %2 = arith.remsi %arg0, %1 : i32
    %c0_i32_0 = arith.constant 0 : i32
    %3 = arith.cmpi ne, %2, %c0_i32_0 : i32
    %c0_i32_1 = arith.constant 0 : i32
    %4 = arith.cmpi slt, %2, %c0_i32_1 : i32
    %c0_i32_2 = arith.constant 0 : i32
    %5 = arith.cmpi slt, %1, %c0_i32_2 : i32
    %6 = arith.xori %4, %5 : i1
    %7 = arith.andi %6, %3 : i1
    %8 = arith.addi %2, %1 : i32
    %9 = arith.select %7, %8, %2 : i32
    %c0 = arith.constant 0 : index
    %c0_3 = arith.constant 0 : index
    %c0_4 = arith.constant 0 : index
    %10 = vector.load %arg1[%c0, %c0_3, %c0_4] : memref<10x18x128xbf16, #tpu.memory_space<vmem>>, vector<10x18x128xbf16>
    %11 = arith.extf %10 : vector<10x18x128xbf16> to vector<10x18x128xf32>
    %c0_5 = arith.constant 0 : index
    %c0_6 = arith.constant 0 : index
    %12 = vector.load %arg3[%c0_5, %c0_6] : memref<1x128xf32, #tpu.memory_space<vmem>>, vector<1x128xf32>
    %13 = vector.shape_cast %12 : vector<1x128xf32> to vector<1x1x128xf32>
    %14 = vector.broadcast %13 : vector<1x1x128xf32> to vector<10x18x128xf32>
    %15 = arith.mulf %11, %14 : vector<10x18x128xf32>
    %c0_7 = arith.constant 0 : index
    %c0_8 = arith.constant 0 : index
    %16 = vector.load %arg4[%c0_7, %c0_8] : memref<1x128xf32, #tpu.memory_space<vmem>>, vector<1x128xf32>
    %17 = vector.shape_cast %16 : vector<1x128xf32> to vector<1x1x128xf32>
    %18 = vector.broadcast %17 : vector<1x1x128xf32> to vector<10x18x128xf32>
    %19 = arith.addf %15, %18 : vector<10x18x128xf32>
    %cst = arith.constant 0.000000e+00 : f32
    %20 = vector.broadcast %cst : f32 to vector<10x18x128xf32>
    %21 = arith.maximumf %19, %20 : vector<10x18x128xf32>
    %22 = tpu.iota {dimensions = array<i32: 0>} : vector<10x18x1xi32>
    %23 = tpu.iota {dimensions = array<i32: 1>} : vector<10x18x1xi32>
    %c0_i32_9 = arith.constant 0 : i32
    %24 = vector.broadcast %c0_i32_9 : i32 to vector<10x18x1xi32>
    %25 = arith.cmpi eq, %23, %24 : vector<10x18x1xi32>
    %c17_i32 = arith.constant 17 : i32
    %26 = vector.broadcast %c17_i32 : i32 to vector<10x18x1xi32>
    %27 = arith.cmpi eq, %23, %26 : vector<10x18x1xi32>
    %28 = arith.ori %25, %27 : vector<10x18x1xi1>
    %c0_i32_10 = arith.constant 0 : i32
    %29 = vector.broadcast %c0_i32_10 : i32 to vector<10x18x1xi32>
    %30 = arith.cmpi eq, %22, %29 : vector<10x18x1xi32>
    %c0_i32_11 = arith.constant 0 : i32
    %31 = arith.cmpi eq, %9, %c0_i32_11 : i32
    %32 = vector.broadcast %31 : i1 to vector<10x18x1xi1>
    %33 = arith.andi %30, %32 : vector<10x18x1xi1>
    %34 = arith.ori %28, %33 : vector<10x18x1xi1>
    %c9_i32 = arith.constant 9 : i32
    %35 = vector.broadcast %c9_i32 : i32 to vector<10x18x1xi32>
    %36 = arith.cmpi eq, %22, %35 : vector<10x18x1xi32>
    %c1_i32_12 = arith.constant 1 : i32
    %37 = arith.cmpi eq, %9, %c1_i32_12 : i32
    %38 = vector.broadcast %37 : i1 to vector<10x18x1xi1>
    %39 = arith.andi %36, %38 : vector<10x18x1xi1>
    %40 = arith.ori %34, %39 : vector<10x18x1xi1>
    %cst_13 = arith.constant 0.000000e+00 : f32
    %41 = vector.shape_cast %40 : vector<10x18x1xi1> to vector<10x18x1xi1>
    %42 = vector.broadcast %41 : vector<10x18x1xi1> to vector<10x18x128xi1>
    %43 = vector.broadcast %cst_13 : f32 to vector<10x18x128xf32>
    %44 = arith.select %42, %43, %21 : vector<10x18x128xi1>, vector<10x18x128xf32>
    %cst_14 = arith.constant 0.000000e+00 : f32
    %45 = vector.broadcast %cst_14 : f32 to vector<128x128xf32>
    %46 = vector.extract_strided_slice %44 {offsets = [0, 0, 0], sizes = [8, 16, 128], strides = [1, 1, 1]} : vector<10x18x128xf32> to vector<8x16x128xf32>
    %47 = vector.shape_cast %46 : vector<8x16x128xf32> to vector<128x128xf32>
    %48 = arith.truncf %47 : vector<128x128xf32> to vector<128x128xbf16>
    %c0_15 = arith.constant 0 : index
    %c0_16 = arith.constant 0 : index
    %c0_17 = arith.constant 0 : index
    %49 = vector.load %arg2[%c0_15, %c0_16, %c0_17] : memref<9x128x128xbf16, #tpu.memory_space<vmem>>, vector<1x128x128xbf16>
    %50 = vector.shape_cast %49 : vector<1x128x128xbf16> to vector<128x128xbf16>
    %cst_18 = arith.constant dense<0.000000e+00> : vector<128x128xf32>
    %51 = tpu.matmul %48, %50, %cst_18 {dimension_numbers = #tpu.dot_dimension_numbers<[1], [0], [0], [1], [0, 0, 1, 1], [], []>} : vector<128x128xbf16>, vector<128x128xbf16>, vector<128x128xf32> -> vector<128x128xf32>
    %52 = arith.addf %45, %51 : vector<128x128xf32>
    %53 = vector.extract_strided_slice %44 {offsets = [0, 1, 0], sizes = [8, 16, 128], strides = [1, 1, 1]} : vector<10x18x128xf32> to vector<8x16x128xf32>
    %54 = vector.shape_cast %53 : vector<8x16x128xf32> to vector<128x128xf32>
    %55 = arith.truncf %54 : vector<128x128xf32> to vector<128x128xbf16>
    %c1 = arith.constant 1 : index
    %c0_19 = arith.constant 0 : index
    %c0_20 = arith.constant 0 : index
    %56 = vector.load %arg2[%c1, %c0_19, %c0_20] : memref<9x128x128xbf16, #tpu.memory_space<vmem>>, vector<1x128x128xbf16>
    %57 = vector.shape_cast %56 : vector<1x128x128xbf16> to vector<128x128xbf16>
    %cst_21 = arith.constant dense<0.000000e+00> : vector<128x128xf32>
    %58 = tpu.matmul %55, %57, %cst_21 {dimension_numbers = #tpu.dot_dimension_numbers<[1], [0], [0], [1], [0, 0, 1, 1], [], []>} : vector<128x128xbf16>, vector<128x128xbf16>, vector<128x128xf32> -> vector<128x128xf32>
    %59 = arith.addf %52, %58 : vector<128x128xf32>
    %60 = vector.extract_strided_slice %44 {offsets = [0, 2, 0], sizes = [8, 16, 128], strides = [1, 1, 1]} : vector<10x18x128xf32> to vector<8x16x128xf32>
    %61 = vector.shape_cast %60 : vector<8x16x128xf32> to vector<128x128xf32>
    %62 = arith.truncf %61 : vector<128x128xf32> to vector<128x128xbf16>
    %c2 = arith.constant 2 : index
    %c0_22 = arith.constant 0 : index
    %c0_23 = arith.constant 0 : index
    %63 = vector.load %arg2[%c2, %c0_22, %c0_23] : memref<9x128x128xbf16, #tpu.memory_space<vmem>>, vector<1x128x128xbf16>
    %64 = vector.shape_cast %63 : vector<1x128x128xbf16> to vector<128x128xbf16>
    %cst_24 = arith.constant dense<0.000000e+00> : vector<128x128xf32>
    %65 = tpu.matmul %62, %64, %cst_24 {dimension_numbers = #tpu.dot_dimension_numbers<[1], [0], [0], [1], [0, 0, 1, 1], [], []>} : vector<128x128xbf16>, vector<128x128xbf16>, vector<128x128xf32> -> vector<128x128xf32>
    %66 = arith.addf %59, %65 : vector<128x128xf32>
    %67 = vector.extract_strided_slice %44 {offsets = [1, 0, 0], sizes = [8, 16, 128], strides = [1, 1, 1]} : vector<10x18x128xf32> to vector<8x16x128xf32>
    %68 = vector.shape_cast %67 : vector<8x16x128xf32> to vector<128x128xf32>
    %69 = arith.truncf %68 : vector<128x128xf32> to vector<128x128xbf16>
    %c3 = arith.constant 3 : index
    %c0_25 = arith.constant 0 : index
    %c0_26 = arith.constant 0 : index
    %70 = vector.load %arg2[%c3, %c0_25, %c0_26] : memref<9x128x128xbf16, #tpu.memory_space<vmem>>, vector<1x128x128xbf16>
    %71 = vector.shape_cast %70 : vector<1x128x128xbf16> to vector<128x128xbf16>
    %cst_27 = arith.constant dense<0.000000e+00> : vector<128x128xf32>
    %72 = tpu.matmul %69, %71, %cst_27 {dimension_numbers = #tpu.dot_dimension_numbers<[1], [0], [0], [1], [0, 0, 1, 1], [], []>} : vector<128x128xbf16>, vector<128x128xbf16>, vector<128x128xf32> -> vector<128x128xf32>
    %73 = arith.addf %66, %72 : vector<128x128xf32>
    %74 = vector.extract_strided_slice %44 {offsets = [1, 1, 0], sizes = [8, 16, 128], strides = [1, 1, 1]} : vector<10x18x128xf32> to vector<8x16x128xf32>
    %75 = vector.shape_cast %74 : vector<8x16x128xf32> to vector<128x128xf32>
    %76 = arith.truncf %75 : vector<128x128xf32> to vector<128x128xbf16>
    %c4 = arith.constant 4 : index
    %c0_28 = arith.constant 0 : index
    %c0_29 = arith.constant 0 : index
    %77 = vector.load %arg2[%c4, %c0_28, %c0_29] : memref<9x128x128xbf16, #tpu.memory_space<vmem>>, vector<1x128x128xbf16>
    %78 = vector.shape_cast %77 : vector<1x128x128xbf16> to vector<128x128xbf16>
    %cst_30 = arith.constant dense<0.000000e+00> : vector<128x128xf32>
    %79 = tpu.matmul %76, %78, %cst_30 {dimension_numbers = #tpu.dot_dimension_numbers<[1], [0], [0], [1], [0, 0, 1, 1], [], []>} : vector<128x128xbf16>, vector<128x128xbf16>, vector<128x128xf32> -> vector<128x128xf32>
    %80 = arith.addf %73, %79 : vector<128x128xf32>
    %81 = vector.extract_strided_slice %44 {offsets = [1, 2, 0], sizes = [8, 16, 128], strides = [1, 1, 1]} : vector<10x18x128xf32> to vector<8x16x128xf32>
    %82 = vector.shape_cast %81 : vector<8x16x128xf32> to vector<128x128xf32>
    %83 = arith.truncf %82 : vector<128x128xf32> to vector<128x128xbf16>
    %c5 = arith.constant 5 : index
    %c0_31 = arith.constant 0 : index
    %c0_32 = arith.constant 0 : index
    %84 = vector.load %arg2[%c5, %c0_31, %c0_32] : memref<9x128x128xbf16, #tpu.memory_space<vmem>>, vector<1x128x128xbf16>
    %85 = vector.shape_cast %84 : vector<1x128x128xbf16> to vector<128x128xbf16>
    %cst_33 = arith.constant dense<0.000000e+00> : vector<128x128xf32>
    %86 = tpu.matmul %83, %85, %cst_33 {dimension_numbers = #tpu.dot_dimension_numbers<[1], [0], [0], [1], [0, 0, 1, 1], [], []>} : vector<128x128xbf16>, vector<128x128xbf16>, vector<128x128xf32> -> vector<128x128xf32>
    %87 = arith.addf %80, %86 : vector<128x128xf32>
    %88 = vector.extract_strided_slice %44 {offsets = [2, 0, 0], sizes = [8, 16, 128], strides = [1, 1, 1]} : vector<10x18x128xf32> to vector<8x16x128xf32>
    %89 = vector.shape_cast %88 : vector<8x16x128xf32> to vector<128x128xf32>
    %90 = arith.truncf %89 : vector<128x128xf32> to vector<128x128xbf16>
    %c6 = arith.constant 6 : index
    %c0_34 = arith.constant 0 : index
    %c0_35 = arith.constant 0 : index
    %91 = vector.load %arg2[%c6, %c0_34, %c0_35] : memref<9x128x128xbf16, #tpu.memory_space<vmem>>, vector<1x128x128xbf16>
    %92 = vector.shape_cast %91 : vector<1x128x128xbf16> to vector<128x128xbf16>
    %cst_36 = arith.constant dense<0.000000e+00> : vector<128x128xf32>
    %93 = tpu.matmul %90, %92, %cst_36 {dimension_numbers = #tpu.dot_dimension_numbers<[1], [0], [0], [1], [0, 0, 1, 1], [], []>} : vector<128x128xbf16>, vector<128x128xbf16>, vector<128x128xf32> -> vector<128x128xf32>
    %94 = arith.addf %87, %93 : vector<128x128xf32>
    %95 = vector.extract_strided_slice %44 {offsets = [2, 1, 0], sizes = [8, 16, 128], strides = [1, 1, 1]} : vector<10x18x128xf32> to vector<8x16x128xf32>
    %96 = vector.shape_cast %95 : vector<8x16x128xf32> to vector<128x128xf32>
    %97 = arith.truncf %96 : vector<128x128xf32> to vector<128x128xbf16>
    %c7 = arith.constant 7 : index
    %c0_37 = arith.constant 0 : index
    %c0_38 = arith.constant 0 : index
    %98 = vector.load %arg2[%c7, %c0_37, %c0_38] : memref<9x128x128xbf16, #tpu.memory_space<vmem>>, vector<1x128x128xbf16>
    %99 = vector.shape_cast %98 : vector<1x128x128xbf16> to vector<128x128xbf16>
    %cst_39 = arith.constant dense<0.000000e+00> : vector<128x128xf32>
    %100 = tpu.matmul %97, %99, %cst_39 {dimension_numbers = #tpu.dot_dimension_numbers<[1], [0], [0], [1], [0, 0, 1, 1], [], []>} : vector<128x128xbf16>, vector<128x128xbf16>, vector<128x128xf32> -> vector<128x128xf32>
    %101 = arith.addf %94, %100 : vector<128x128xf32>
    %102 = vector.extract_strided_slice %44 {offsets = [2, 2, 0], sizes = [8, 16, 128], strides = [1, 1, 1]} : vector<10x18x128xf32> to vector<8x16x128xf32>
    %103 = vector.shape_cast %102 : vector<8x16x128xf32> to vector<128x128xf32>
    %104 = arith.truncf %103 : vector<128x128xf32> to vector<128x128xbf16>
    %c8 = arith.constant 8 : index
    %c0_40 = arith.constant 0 : index
    %c0_41 = arith.constant 0 : index
    %105 = vector.load %arg2[%c8, %c0_40, %c0_41] : memref<9x128x128xbf16, #tpu.memory_space<vmem>>, vector<1x128x128xbf16>
    %106 = vector.shape_cast %105 : vector<1x128x128xbf16> to vector<128x128xbf16>
    %cst_42 = arith.constant dense<0.000000e+00> : vector<128x128xf32>
    %107 = tpu.matmul %104, %106, %cst_42 {dimension_numbers = #tpu.dot_dimension_numbers<[1], [0], [0], [1], [0, 0, 1, 1], [], []>} : vector<128x128xbf16>, vector<128x128xbf16>, vector<128x128xf32> -> vector<128x128xf32>
    %108 = arith.addf %101, %107 : vector<128x128xf32>
    %109 = arith.truncf %108 : vector<128x128xf32> to vector<128x128xbf16>
    %c0_43 = arith.constant 0 : index
    %c0_44 = arith.constant 0 : index
    %110 = vector.load %arg5[%c0_43, %c0_44] : memref<128x128xbf16, #tpu.memory_space<vmem>>, vector<128x128xbf16>
    tpu.vector_store %arg5[%c0_43, %c0_44], %109 {strides = array<i32>} : memref<128x128xbf16, #tpu.memory_space<vmem>>, vector<128x128xbf16>,
    %cst_45 = arith.constant dense<0.000000e+00> : vector<128xf32>
    %111 = vector.multi_reduction <add>, %108, %cst_45 [0] : vector<128x128xf32> to vector<128xf32>
    %112 = vector.shape_cast %111 : vector<128xf32> to vector<1x128xf32>
    %113 = arith.mulf %108, %108 : vector<128x128xf32>
    %cst_46 = arith.constant dense<0.000000e+00> : vector<128xf32>
    %114 = vector.multi_reduction <add>, %113, %cst_46 [0] : vector<128x128xf32> to vector<128xf32>
    %115 = vector.shape_cast %114 : vector<128xf32> to vector<1x128xf32>
    %cst_47 = arith.constant 0.000000e+00 : f32
    %116 = vector.broadcast %cst_47 : f32 to vector<6x128xf32>
    %117 = tpu.concatenate %112, %115, %116 in 0 : vector<1x128xf32>, vector<1x128xf32>, vector<6x128xf32> -> vector<8x128xf32>
    %c0_48 = arith.constant 0 : index
    %c0_49 = arith.constant 0 : index
    %118 = vector.load %arg6[%c0_48, %c0_49] : memref<8x128xf32, #tpu.memory_space<vmem>>, vector<8x128xf32>
    tpu.vector_store %arg6[%c0_48, %c0_49], %117 {strides = array<i32>} : memref<8x128xf32, #tpu.memory_space<vmem>>, vector<8x128xf32>,
    return
  }
  func.func @transform_0(%arg0: i32) -> (i32, i32, i32) {
    %c0_i32 = arith.constant 0 : i32
    %c0_i32_0 = arith.constant 0 : i32
    %c0_i32_1 = arith.constant 0 : i32
    return %arg0, %c0_i32, %c0_i32_0 : i32, i32, i32
  }
  func.func @transform_1(%arg0: i32) -> (i32, i32, i32) {
    %c0_i32 = arith.constant 0 : i32
    %c0_i32_0 = arith.constant 0 : i32
    %c0_i32_1 = arith.constant 0 : i32
    %c0_i32_2 = arith.constant 0 : i32
    return %c0_i32, %c0_i32_0, %c0_i32_1 : i32, i32, i32
  }
  func.func @transform_2(%arg0: i32) -> (i32, i32) {
    %c0_i32 = arith.constant 0 : i32
    %c0_i32_0 = arith.constant 0 : i32
    %c0_i32_1 = arith.constant 0 : i32
    return %c0_i32, %c0_i32_0 : i32, i32
  }
  func.func @transform_3(%arg0: i32) -> (i32, i32) {
    %c0_i32 = arith.constant 0 : i32
    %c0_i32_0 = arith.constant 0 : i32
    %c0_i32_1 = arith.constant 0 : i32
    return %c0_i32, %c0_i32_0 : i32, i32
  }
  func.func @transform_4(%arg0: i32) -> (i32, i32) {
    %c0_i32 = arith.constant 0 : i32
    %c0_i32_0 = arith.constant 0 : i32
    return %arg0, %c0_i32 : i32, i32
  }
  func.func @transform_5(%arg0: i32) -> (i32, i32) {
    %c0_i32 = arith.constant 0 : i32
    %c0_i32_0 = arith.constant 0 : i32
    return %arg0, %c0_i32 : i32, i32
  }
}

</mosaic_0001>

<bundles_post_ra>
// kernel: resnet18_block.5
= control target key start
LH: loop header
LB: loop body
LE: loop exit
PB: predicated region body
PF: predicated region fallthrough
CT: control target
= control target key end

     0   :  { %s583_s15 = smov 0   ;;  %s687_s0 = inlined_call_operand.vmem [shape: bf16[512,128], index: 0, kind: input, shape index: {}]   ;;  %s688_s1 = inlined_call_operand.vmem [shape: bf16[512,128], index: 1, kind: input, shape index: {}]   ;;  %s689_s2 = inlined_call_operand.vmem [shape: f32[1,128], index: 2, kind: input, shape index: {}]   ;;  %s690_s3 = inlined_call_operand.vmem [shape: f32[1,128], index: 3, kind: input, shape index: {}]   ;;  %s691_s4 = inlined_call_operand.vmem [shape: f32[512,128], index: 4, kind: output, shape index: {}]  }
   0x1 LB: > { %s449_s16 = sadd.s32 4294967295, %s556_s15   ;;  %p453_p0 = scmp.ge.s32.totalorder %s556_s15, 1  ;;  %s556_s15 = sphi %s583_s15, %s14_s15  }
   0x2   : > { %p174_p1 = scmp.lt.s32.totalorder %s556_s15, 5 }
   0x4   : > { %p175_p2 = pnand %p453_p0, %p174_p1 }
   0x5   : > { %s454_s17 = sshll.u32 (!%p175_p2), %s449_s16, 4  ;;  %v607_v0 = vld [vmem:[%s689_s2] ss:$0 sm:$0xff] (!%p175_p2) }
   0x6   : > { %178 = sbr.rel (%p175_p2) target bundleno = 48 (0x30), region = 36  ;;  %p206_p3 = scmp.lt.s32.totalorder (!%p175_p2), %s454_s17, 63  ;;  %v618_v11 = vld [vmem:[%s690_s3] ss:$0 sm:$0xff] (!%p175_p2) }
   0xd   : > { %s693_s17 = smov (!%p206_p3, %s454_s17), 63 }
   0xe   : > { %s455_s18 = sshll.u32 %s693_s17, 2  ;;  %s459_s29 = sshll.u32 %s693_s17, 3 }
   0xf   : > { %s597_s21 = scalar_lea.vmem %s687_s0, %s455_s18  ;;  %s602_s24 = scalar_lea.vmem %s688_s1, %s455_s18 }
  0x10   : > { %v465_v1 = vld [vmem:[%s597_s21] sm:$0xff]   ;;  %v528_v3 = vld [vmem:[%s597_s21 + $0x8] sm:$0xff]   ;;  %v529_v9 = vld [vmem:[%s597_s21 + $0x10] sm:$0xff]   ;;  %s638_s6 = scalar_lea.vmem %s691_s4, %s459_s29 }
  0x11   : > { %v497_v2 = vld [vmem:[%s602_s24] sm:$0xff]   ;;  %v466_v4 = vunpack.c.l.bf16 %v465_v1  ;;  %v467_v6 = vunpack.c.h.bf16 %v465_v1  ;;  %v535_v8 = vld [vmem:[%s602_s24 + $0x8] sm:$0xff]   ;;  %v536_v10 = vld [vmem:[%s602_s24 + $0x10] sm:$0xff]   ;;  %v470_v12 = vunpack.c.l.bf16 %v528_v3  ;;  %v471_v14 = vunpack.c.h.bf16 %v528_v3 }
  0x12   : > { %v498_v5 = vunpack.c.l.bf16 %v497_v2  ;;  %v499_v7 = vunpack.c.h.bf16 %v497_v2  ;;  %v502_v13 = vunpack.c.l.bf16 %v535_v8  ;;  %v503_v15 = vunpack.c.h.bf16 %v535_v8  ;;  %v530_v16 = vld [vmem:[%s597_s21 + $0x18] sm:$0xff]   ;;  %v531_v42 = vld [vmem:[%s597_s21 + $0x20] sm:$0xff]   ;;  %v532_v52 = vld [vmem:[%s597_s21 + $0x28] sm:$0xff]  }
  0x13   : > { %v262_v17 = vmul.f32 %v466_v4, %v607_v0  ;;  %v263_v18 = vmul.f32 %v467_v6, %v607_v0  ;;  %v474_v19 = vunpack.c.l.bf16 %v529_v9  ;;  %v506_v20 = vunpack.c.l.bf16 %v536_v10  ;;  %v537_v21 = vld [vmem:[%s602_s24 + $0x18] sm:$0xff]   ;;  %v538_v47 = vld [vmem:[%s602_s24 + $0x20] sm:$0xff]   ;;  %v539_v57 = vld [vmem:[%s602_s24 + $0x28] sm:$0xff]  }
  0x14   : > { %v264_v22 = vmul.f32 %v470_v12, %v607_v0  ;;  %v265_v23 = vmul.f32 %v471_v14, %v607_v0  ;;  %v475_v24 = vunpack.c.h.bf16 %v529_v9  ;;  %v507_v25 = vunpack.c.h.bf16 %v536_v10  ;;  %v533_v62 = vld [vmem:[%s597_s21 + $0x30] sm:$0xff]   ;;  %v534_v14 = vld [vmem:[%s597_s21 + $0x38] sm:$0xff]  }
  0x15   : > { %v285_v26 = vadd.f32 %v618_v11, %v262_v17  ;;  %v286_v27 = vadd.f32 %v618_v11, %v263_v18  ;;  %v266_v28 = vmul.f32 %v474_v19, %v607_v0  ;;  %v478_v29 = vunpack.c.l.bf16 %v530_v16  ;;  %v540_v4 = vld [vmem:[%s602_s24 + $0x30] sm:$0xff]  }
  0x16   : > { %v287_v30 = vadd.f32 %v618_v11, %v264_v22  ;;  %v288_v31 = vadd.f32 %v618_v11, %v265_v23  ;;  %v267_v32 = vmul.f32 %v475_v24, %v607_v0  ;;  %v510_v33 = vunpack.c.l.bf16 %v537_v21  ;;  %v541_v23 = vld [vmem:[%s602_s24 + $0x38] sm:$0xff]  }
  0x17   : > { %v333_v34 = vadd.f32 %v498_v5, %v285_v26  ;;  %v334_v35 = vadd.f32 %v499_v7, %v286_v27  ;;  %v289_v36 = vadd.f32 %v618_v11, %v266_v28  ;;  %v268_v37 = vmul.f32 %v478_v29, %v607_v0 }
  0x18   : > { %v335_v38 = vadd.f32 %v502_v13, %v287_v30  ;;  %v336_v39 = vadd.f32 %v503_v15, %v288_v31  ;;  %v290_v40 = vadd.f32 %v618_v11, %v267_v32  ;;  %v479_v41 = vunpack.c.h.bf16 %v530_v16 }
  0x19   : > { %v349_v43 = vmax.f32 %v333_v34, 0.0  ;;  %v350_v44 = vmax.f32 %v334_v35, 0.0  ;;  %v337_v45 = vadd.f32 %v506_v20, %v289_v36  ;;  %v291_v46 = vadd.f32 %v618_v11, %v268_v37 }
  0x1a   : > { %v351_v48 = vmax.f32 %v335_v38, 0.0  ;;  %v352_v49 = vmax.f32 %v336_v39, 0.0  ;;  %v338_v50 = vadd.f32 %v507_v25, %v290_v40  ;;  %v269_v51 = vmul.f32 %v479_v41, %v607_v0 }
  0x1b   : > { %365 = vst [vmem:[%s638_s6] sm:$0xff] %v349_v43  ;;  %366 = vst [vmem:[%s638_s6 + $0x8] sm:$0xff] %v350_v44  ;;  %v353_v53 = vmax.f32 %v337_v45, 0.0  ;;  %v339_v54 = vadd.f32 %v510_v33, %v291_v46  ;;  %v511_v55 = vunpack.c.h.bf16 %v537_v21  ;;  %v482_v56 = vunpack.c.l.bf16 %v531_v42 }
  0x1c   : > { %367 = vst [vmem:[%s638_s6 + $0x10] sm:$0xff] %v351_v48  ;;  %368 = vst [vmem:[%s638_s6 + $0x18] sm:$0xff] %v352_v49  ;;  %v354_v58 = vmax.f32 %v338_v50, 0.0  ;;  %v292_v59 = vadd.f32 %v618_v11, %v269_v51  ;;  %v514_v60 = vunpack.c.l.bf16 %v538_v47  ;;  %v483_v61 = vunpack.c.h.bf16 %v531_v42 }
  0x1d   : > { %369 = vst [vmem:[%s638_s6 + $0x20] sm:$0xff] %v353_v53  ;;  %v355_v63 = vmax.f32 %v339_v54, 0.0  ;;  %v270_v1 = vmul.f32 %v482_v56, %v607_v0  ;;  %v515_v2 = vunpack.c.h.bf16 %v538_v47  ;;  %v486_v3 = vunpack.c.l.bf16 %v532_v52 }
  0x1e   : > { %370 = vst [vmem:[%s638_s6 + $0x28] sm:$0xff] %v354_v58  ;;  %v340_v5 = vadd.f32 %v511_v55, %v292_v59  ;;  %v271_v6 = vmul.f32 %v483_v61, %v607_v0  ;;  %v518_v7 = vunpack.c.l.bf16 %v539_v57  ;;  %v487_v8 = vunpack.c.h.bf16 %v532_v52 }
  0x1f   : > { %371 = vst [vmem:[%s638_s6 + $0x30] sm:$0xff] %v355_v63  ;;  %v293_v9 = vadd.f32 %v618_v11, %v270_v1  ;;  %v272_v10 = vmul.f32 %v486_v3, %v607_v0  ;;  %v519_v12 = vunpack.c.h.bf16 %v539_v57  ;;  %v490_v13 = vunpack.c.l.bf16 %v533_v62 }
  0x20   : > { %v356_v15 = vmax.f32 %v340_v5, 0.0  ;;  %v294_v16 = vadd.f32 %v618_v11, %v271_v6  ;;  %v273_v17 = vmul.f32 %v487_v8, %v607_v0  ;;  %v522_v18 = vunpack.c.l.bf16 %v540_v4 }
  0x21   : > { %v341_v19 = vadd.f32 %v514_v60, %v293_v9  ;;  %v295_v20 = vadd.f32 %v618_v11, %v272_v10  ;;  %v274_v21 = vmul.f32 %v490_v13, %v607_v0  ;;  %v491_v22 = vunpack.c.h.bf16 %v533_v62 }
  0x22   : > { %372 = vst [vmem:[%s638_s6 + $0x38] sm:$0xff] %v356_v15  ;;  %v342_v24 = vadd.f32 %v515_v2, %v294_v16  ;;  %v296_v25 = vadd.f32 %v618_v11, %v273_v17  ;;  %v523_v26 = vunpack.c.h.bf16 %v540_v4  ;;  %v494_v27 = vunpack.c.l.bf16 %v534_v14 }
  0x23   : > { %v357_v28 = vmax.f32 %v341_v19, 0.0  ;;  %v343_v29 = vadd.f32 %v518_v7, %v295_v20  ;;  %v297_v30 = vadd.f32 %v618_v11, %v274_v21  ;;  %v275_v31 = vmul.f32 %v491_v22, %v607_v0 }
  0x24   : > { %v358_v32 = vmax.f32 %v342_v24, 0.0  ;;  %v344_v33 = vadd.f32 %v519_v12, %v296_v25  ;;  %v276_v34 = vmul.f32 %v494_v27, %v607_v0  ;;  %v526_v35 = vunpack.c.l.bf16 %v541_v23 }
  0x25   : > { %373 = vst [vmem:[%s638_s6 + $0x40] sm:$0xff] %v357_v28  ;;  %v359_v36 = vmax.f32 %v343_v29, 0.0  ;;  %v345_v37 = vadd.f32 %v522_v18, %v297_v30  ;;  %v298_v38 = vadd.f32 %v618_v11, %v275_v31  ;;  %v495_v39 = vunpack.c.h.bf16 %v534_v14 }
  0x26   : > { %374 = vst [vmem:[%s638_s6 + $0x48] sm:$0xff] %v358_v32  ;;  %v360_v40 = vmax.f32 %v344_v33, 0.0  ;;  %v299_v41 = vadd.f32 %v618_v11, %v276_v34  ;;  %v527_v45 = vunpack.c.h.bf16 %v541_v23 }
  0x27   : > { %375 = vst [vmem:[%s638_s6 + $0x50] sm:$0xff] %v359_v36  ;;  %v361_v42 = vmax.f32 %v345_v37, 0.0  ;;  %v346_v43 = vadd.f32 %v523_v26, %v298_v38  ;;  %v277_v44 = vmul.f32 %v495_v39, %v607_v0 }
  0x28   : > { %376 = vst [vmem:[%s638_s6 + $0x58] sm:$0xff] %v360_v40  ;;  %v347_v46 = vadd.f32 %v526_v35, %v299_v41 }
  0x29   : > { %377 = vst [vmem:[%s638_s6 + $0x60] sm:$0xff] %v361_v42  ;;  %v362_v47 = vmax.f32 %v346_v43, 0.0  ;;  %v300_v48 = vadd.f32 %v618_v11, %v277_v44 }
  0x2a   : > { %v363_v49 = vmax.f32 %v347_v46, 0.0 }
  0x2b   : > { %378 = vst [vmem:[%s638_s6 + $0x68] sm:$0xff] %v362_v47  ;;  %v348_v50 = vadd.f32 %v527_v45, %v300_v48 }
  0x2c   : > { %379 = vst [vmem:[%s638_s6 + $0x70] sm:$0xff] %v363_v49 }
  0x2d   : > { %v364_v51 = vmax.f32 %v348_v50, 0.0 }
  0x2f   : > { %380 = vst [vmem:[%s638_s6 + $0x78] sm:$0xff] %v364_v51 }
  0x30 PF: > { %s14_s15 = sadd.s32 1, %s556_s15  }
  0x31   : > { %p11_p4 = scmp.ge.s32.totalorder %s14_s15, 6  }
  0x33   :  { %13 = sbr.rel (!%p11_p4) target bundleno = 1 (0x1), region = 69 }

// kernel: resnet18_block.3
= control target key start
LH: loop header
LB: loop body
LE: loop exit
PB: predicated region body
PF: predicated region fallthrough
CT: control target
= control target key end

     0   :  { %s4025_s18 = smov 0   ;;  %s4995_s0 = inlined_call_operand.vmem [shape: bf16[40,18,128], index: 0, kind: input, shape index: {}]   ;;  %s4996_s1 = inlined_call_operand.vmem [shape: bf16[9,128,256], index: 1, kind: input, shape index: {}]   ;;  %s4997_s2 = inlined_call_operand.vmem [shape: f32[1,128], index: 2, kind: input, shape index: {}]   ;;  %s4998_s3 = inlined_call_operand.vmem [shape: bf16[512,128], index: 3, kind: output, shape index: {0}]   ;;  %s4999_s4 = inlined_call_operand.vmem [shape: bf16[512,128], index: 4, kind: output, shape index: {1}]   ;;  %s5000_s5 = inlined_call_operand.vmem [shape: f32[32,128], index: 5, kind: output, shape index: {2}]  }
   0x1 LB: > { %s4031_s19 = sadd.s32 4294967295, %s3992_s18   ;;  %p3002_p0 = scmp.ge.s32.totalorder %s3992_s18, 1  ;;  %s3992_s18 = sphi %s4025_s18, %s16_s18  }
   0x2   : > { %p194_p1 = scmp.lt.s32.totalorder %s3992_s18, 5 }
   0x4   : > { %p195_p2 = pnand %p3002_p0, %p194_p1 }
   0x5   : > { %v3734_v0 = vld [vmem:[%s4996_s1 + $0x84] ss:$8 sps:$4 sm:$0xff] (!%p195_p2)   ;;  %v3994_v2 = vmov (!%p195_p2), 0   ;;  %v3738_v3 = vld [vmem:[%s4996_s1 + $0x80] ss:$8 sps:$4 sm:$0xff] (!%p195_p2)   ;;  %s232_s28 = smul.u32 (!%p195_p2), 10, %s4031_s19 }
   0x6   : > { %198 = sbr.rel (%p195_p2) target bundleno = 554 (0x22a), region = 32  ;;  %v3736_v1 = vld [vmem:[%s4996_s1 + $0x204] ss:$8 sps:$4 sm:$0xff] (!%p195_p2)   ;;  %558 = vmatprep.mubr.bf16.mxu1 (!%p195_p2), %v3994_v2  ;;  %1522 = vmatprep.mubr.bf16.mxu0 (!%p195_p2), %v3994_v2  ;;  %v3739_v4 = vld [vmem:[%s4996_s1 + $0x200] ss:$8 sps:$4 sm:$0xff] (!%p195_p2)   ;;  %vm364_vm0 = vcmask (!%p195_p2), 1046528  }
   0x7   : > { %526 = vmatprep.subr.bf16.mxu1 (!%p195_p2), %v3734_v0  ;;  %1490 = vmatprep.subr.bf16.mxu0 (!%p195_p2), %v3736_v1  ;;  %v3740_v5 = vld [vmem:[%s4996_s1 + $0x94] ss:$8 sps:$4 sm:$0xff] (!%p195_p2)   ;;  %v3744_v7 = vld [vmem:[%s4996_s1 + $0x90] ss:$8 sps:$4 sm:$0xff] (!%p195_p2)   ;;  %v3746_v9 = vld [vmem:[%s4996_s1 + $0xa4] ss:$8 sps:$4 sm:$0xff] (!%p195_p2)  }
   0x8   : > { %527 = vmatpush1.bf16.msra.mxu1 (!%p195_p2), %v3738_v3  ;;  %1491 = vmatpush1.bf16.msra.mxu0 (!%p195_p2), %v3739_v4  ;;  %v3742_v6 = vld [vmem:[%s4996_s1 + $0x214] ss:$8 sps:$4 sm:$0xff] (!%p195_p2)   ;;  %v3745_v8 = vld [vmem:[%s4996_s1 + $0x210] ss:$8 sps:$4 sm:$0xff] (!%p195_p2)   ;;  %p233_p3 = scmp.lt.s32.totalorder (!%p195_p2), %s232_s28, 39  ;;  %vm832_vm1 = vcmask (!%p195_p2), 1045504  }
   0x9   : > { %528 = vmatprep.subr.bf16.mxu1 (!%p195_p2), %v3740_v5  ;;  %1492 = vmatprep.subr.bf16.mxu0 (!%p195_p2), %v3742_v6  ;;  %v3748_v10 = vld [vmem:[%s4996_s1 + $0x224] ss:$8 sps:$4 sm:$0xff] (!%p195_p2)   ;;  %v3750_v11 = vld [vmem:[%s4996_s1 + $0xa0] ss:$8 sps:$4 sm:$0xff] (!%p195_p2)   ;;  %v3752_v13 = vld [vmem:[%s4996_s1 + $0xb4] ss:$8 sps:$4 sm:$0xff] (!%p195_p2)  }
   0xa   : > { %v3751_v12 = vld [vmem:[%s4996_s1 + $0x220] ss:$8 sps:$4 sm:$0xff] (!%p195_p2)   ;;  %v3754_v14 = vld [vmem:[%s4996_s1 + $0x234] ss:$8 sps:$4 sm:$0xff] (!%p195_p2)   ;;  %v3756_v15 = vld [vmem:[%s4996_s1 + $0xb0] ss:$8 sps:$4 sm:$0xff] (!%p195_p2)  }
   0xb   : > { %v3757_v16 = vld [vmem:[%s4996_s1 + $0x230] ss:$8 sps:$4 sm:$0xff] (!%p195_p2)   ;;  %v3758_v17 = vld [vmem:[%s4996_s1 + $0xc4] ss:$8 sps:$4 sm:$0xff] (!%p195_p2)   ;;  %v3762_v19 = vld [vmem:[%s4996_s1 + $0xc0] ss:$8 sps:$4 sm:$0xff] (!%p195_p2)  }
   0xc   : > { %529 = vmatpush1.bf16.msra.mxu1 (!%p195_p2), %v3744_v7  ;;  %1493 = vmatpush1.bf16.msra.mxu0 (!%p195_p2), %v3745_v8  ;;  %v3760_v18 = vld [vmem:[%s4996_s1 + $0x244] ss:$8 sps:$4 sm:$0xff] (!%p195_p2)   ;;  %v3763_v20 = vld [vmem:[%s4996_s1 + $0x240] ss:$8 sps:$4 sm:$0xff] (!%p195_p2)   ;;  %v3764_v21 = vld [vmem:[%s4996_s1 + $0xd4] ss:$8 sps:$4 sm:$0xff] (!%p195_p2)  }
   0xd   : > { %530 = vmatprep.subr.bf16.mxu1 %v3746_v9  ;;  %1494 = vmatprep.subr.bf16.mxu0 %v3748_v10  ;;  %s5002_s28 = smov (!%p233_p3, %s232_s28), 39  ;;  %v3766_v22 = vld [vmem:[%s4996_s1 + $0x254] ss:$8 sps:$4 sm:$0xff]   ;;  %v3768_v23 = vld [vmem:[%s4996_s1 + $0xd0] ss:$8 sps:$4 sm:$0xff]   ;;  %s3004_s7 = sshll.u32 %s4031_s19, 4 }
   0xe   : > { %s3724_s10 = smul.u32 12, %s5002_s28  ;;  %v3769_v24 = vld [vmem:[%s4996_s1 + $0x250] ss:$8 sps:$4 sm:$0xff]   ;;  %v3770_v25 = vld [vmem:[%s4996_s1 + $0xe4] ss:$8 sps:$4 sm:$0xff]   ;;  %p240_p4 = scmp.lt.s32.totalorder %s3004_s7, 63 }
   0xf   : > { %v3772_v26 = vld [vmem:[%s4996_s1 + $0x264] ss:$8 sps:$4 sm:$0xff]   ;;  %v3774_v29 = vld [vmem:[%s4996_s1 + $0xe0] ss:$8 sps:$4 sm:$0xff]   ;;  %v3776_v40 = vld [vmem:[%s4996_s1 + $0xf4] ss:$8 sps:$4 sm:$0xff]  }
  0x10   : > { %531 = vmatpush1.bf16.msra.mxu1 %v3750_v11  ;;  %1495 = vmatpush1.bf16.msra.mxu0 %v3751_v12  ;;  %s4107_s22 = scalar_lea.vmem %s4995_s0, %s3724_s10  ;;  %v3775_v33 = vld [vmem:[%s4996_s1 + $0x260] ss:$8 sps:$4 sm:$0xff]   ;;  %v3778_v41 = vld [vmem:[%s4996_s1 + $0x274] ss:$8 sps:$4 sm:$0xff]   ;;  %v3780_v47 = vld [vmem:[%s4996_s1 + $0xf0] ss:$8 sps:$4 sm:$0xff]  }
  0x11   : > { %532 = vmatprep.subr.bf16.mxu1 %v3752_v13  ;;  %1496 = vmatprep.subr.bf16.mxu0 %v3754_v14  ;;  %v4122_v27 = vld [vmem:[%s4107_s22] sm:$0xff]   ;;  %v258_v28 = vld [vmem:[%s4107_s22 + $0x8] sm:$0x1]  ;;  %v4134_v34 = vld [vmem:[%s4107_s22 + $0xc] sm:$0xff]   ;;  %s5004_s7 = smov (!%p240_p4, %s3004_s7), 63  ;;  %p251_p5 = scmp.lt.s32.totalorder %s4031_s19, 3 }
  0x12   : > { %v286_v30 = vunpack.c.l.bf16 %v4122_v27  ;;  %v287_v31 = vunpack.c.h.bf16 %v4122_v27  ;;  %v288_v32 = vunpack.c.l.bf16 %v258_v28  ;;  %v4137_v35 = vld [vmem:[%s4107_s22 + $0x14] sm:$0x1]  ;;  %v289_v44 = vunpack.c.l.bf16 %v4134_v34  ;;  %v3781_v50 = vld [vmem:[%s4996_s1 + $0x270] ss:$8 sps:$4 sm:$0xff]   ;;  %v3784_v53 = vld [vmem:[%s4996_s1 + $0x4] ss:$8 sps:$4 sm:$0xff]  }
  0x13   : > { %v290_v45 = vunpack.c.h.bf16 %v4134_v34  ;;  %v291_v46 = vunpack.c.l.bf16 %v4137_v35  ;;  %v3787_v57 = vld [vmem:[%s4996_s1 + $0x284] ss:$8 sps:$4 sm:$0xff]   ;;  %v4173_v58 = vld [vmem:[%s4107_s22 + $0x18] sm:$0xff]   ;;  %v4176_v59 = vld [vmem:[%s4107_s22 + $0x20] sm:$0x1]  ;;  %s3005_s8 = sshll.u32 %s5004_s7, 2 }
  0x14   : > { %533 = vmatpush1.bf16.msra.mxu1 %v3756_v15  ;;  %1497 = vmatpush1.bf16.msra.mxu0 %v3757_v16  ;;  %v365_v36 = vrot.slane %v286_v30, 1  ;;  %v366_v37 = vrot.slane %v287_v31, 1  ;;  %v368_v38 = vrot.slane %v288_v32, 1  ;;  %v833_v39 = vrot.slane %v286_v30, 2  ;;  %v3782_v3 = vld [vmem:[%s4996_s1] ss:$8 sps:$4 sm:$0xff]   ;;  %s4944_s13 = scalar_lea.vmem %s4998_s3, %s3005_s8  ;;  %s4952_s16 = scalar_lea.vmem %s4999_s4, %s3005_s8 }
  0x15   : > { %534 = vmatprep.subr.bf16.mxu1 %v3758_v17  ;;  %1498 = vmatprep.subr.bf16.mxu0 %v3760_v18  ;;  %v834_v42 = vrot.slane %v287_v31, 2  ;;  %v836_v43 = vrot.slane %v288_v32, 2  ;;  %v370_v48 = vrot.slane %v289_v44, 1  ;;  %v371_v49 = vrot.slane %v290_v45, 1  ;;  %v3785_v5 = vld [vmem:[%s4996_s1 + $0x280] ss:$8 sps:$4 sm:$0xff]  }
  0x16   : > { %v367_v51 = vsel %vm364_vm0, %v365_v36, %v366_v37  ;;  %v369_v52 = vsel %vm364_vm0, %v366_v37, %v368_v38  ;;  %v373_v54 = vrot.slane %v291_v46, 1  ;;  %v292_v62 = vunpack.c.l.bf16 %v4173_v58  ;;  %v3790_v9 = vld [vmem:[%s4996_s1 + $0x294] ss:$8 sps:$4 sm:$0xff]   ;;  %v4206_v12 = vld [vmem:[%s4107_s22 + $0x24] sm:$0xff]   ;;  %v4209_v13 = vld [vmem:[%s4107_s22 + $0x2c] sm:$0x1] }
  0x17   : > { %v4166_v55 = vsel %vm832_vm1, %v833_v39, %v834_v42  ;;  %v372_v56 = vsel %vm364_vm0, %v370_v48, %v371_v49  ;;  %v4179_v60 = vsel %vm832_vm1, %v834_v42, %v836_v43  ;;  %v293_v63 = vunpack.c.h.bf16 %v4173_v58  ;;  %v3793_v11 = vld [vmem:[%s4996_s1 + $0x14] ss:$8 sps:$4 sm:$0xff]   ;;  %v3788_v14 = vld [vmem:[%s4996_s1 + $0x290] ss:$8 sps:$4 sm:$0xff]   ;;  %v3800_v32 = vld [vmem:[%s4996_s1 + $0x20] ss:$8 sps:$4 sm:$0xff]  }
  0x18   : > { %535 = vmatpush1.bf16.msra.mxu1 %v3762_v19  ;;  %1499 = vmatpush1.bf16.msra.mxu0 %v3763_v20  ;;  %v374_v61 = vsel %vm364_vm0, %v371_v49, %v373_v54  ;;  %v294_v0 = vunpack.c.l.bf16 %v4176_v59  ;;  %v421_v1 = vpack.c.bf16 %v369_v52, %v367_v51  ;;  %v375_v6 = vrot.slane %v292_v62, 1  ;;  %v3791_v17 = vld [vmem:[%s4996_s1 + $0x10] ss:$8 sps:$4 sm:$0xff]   ;;  %v3811_v36 = vld [vmem:[%s4996_s1 + $0x34] ss:$8 sps:$4 sm:$0xff]   ;;  %s5006_s19 = smov (!%p251_p5, %s4031_s19), 3 }
  0x19   : > { %536 = vmatprep.subr.bf16.mxu1 %v3764_v21  ;;  %1500 = vmatprep.subr.bf16.mxu0 %v3766_v22  ;;  %v422_v4 = vpack.c.bf16 %v374_v61, %v372_v56  ;;  %v376_v7 = vrot.slane %v293_v63, 1  ;;  %v889_v10 = vpack.c.bf16 %v4179_v60, %v4166_v55  ;;  %v295_v15 = vunpack.c.l.bf16 %v4206_v12  ;;  %v3796_v21 = vld [vmem:[%s4996_s1 + $0x2a4] ss:$8 sps:$4 sm:$0xff]   ;;  %v4245_v30 = vld [vmem:[%s4107_s22 + $0x30] sm:$0xff]   ;;  %v4248_v31 = vld [vmem:[%s4107_s22 + $0x38] sm:$0x1] }
  0x1a   : > { %v378_v8 = vrot.slane %v294_v0, 1  ;;  %v296_v16 = vunpack.c.h.bf16 %v4206_v12  ;;  %v297_v20 = vunpack.c.l.bf16 %v4209_v13  ;;  %v3802_v22 = vld [vmem:[%s4996_s1 + $0x24] ss:$8 sps:$4 sm:$0xff]   ;;  %v3797_v37 = vld [vmem:[%s4996_s1 + $0x2b0] ss:$8 sps:$4 sm:$0xff]   ;;  %v298_v39 = vunpack.c.l.bf16 %v4245_v30  ;;  %s3008_s17 = sshll.u32 %s5006_s19, 3 }
  0x1b   : > { %v377_v18 = vsel %vm364_vm0, %v375_v6, %v376_v7  ;;  %v3805_v42 = vld [vmem:[%s4996_s1 + $0x2c4] ss:$8 sps:$4 sm:$0xff]   ;;  %v3809_v43 = vld [vmem:[%s4996_s1 + $0x30] ss:$8 sps:$4 sm:$0xff]   ;;  %v3803_v48 = vld [vmem:[%s4996_s1 + $0x2c0] ss:$8 sps:$4 sm:$0xff]   ;;  %s254_s21 = scalar_lea.vmem %s5000_s5, %s3008_s17 }
  0x1c   : > { %537 = vmatpush1.bf16.msra.mxu1 %v3768_v23  ;;  %1501 = vmatpush1.bf16.msra.mxu0 %v3769_v24  ;;  %v379_v19 = vsel %vm364_vm0, %v376_v7, %v378_v8  ;;  %v3794_v24 = vld [vmem:[%s4996_s1 + $0x2a0] ss:$8 sps:$4 sm:$0xff]   ;;  %v381_v28 = vrot.slane %v296_v16, 1  ;;  %v385_v49 = vrot.slane %v298_v39, 1  ;;  %v3808_v52 = vld [vmem:[%s4996_s1 + $0x2d4] ss:$8 sps:$4 sm:$0xff]  }
  0x1d   : > { %538 = vmatprep.subr.bf16.mxu1 %v3770_v25  ;;  %1502 = vmatprep.subr.bf16.mxu0 %v3772_v26  ;;  %v4230_v23 = vpack.c.bf16 %v379_v19, %v377_v18  ;;  %v3799_v25 = vld [vmem:[%s4996_s1 + $0x2b4] ss:$8 sps:$4 sm:$0xff]   ;;  %v380_v26 = vrot.slane %v295_v15, 1  ;;  %v3818_v54 = vld [vmem:[%s4996_s1 + $0x40] ss:$8 sps:$4 sm:$0xff]   ;;  %v841_v8 = vrot.slane %v291_v46, 2 }
  0x1e   : > { %v3806_v56 = vld [vmem:[%s4996_s1 + $0x2d0] ss:$8 sps:$4 sm:$0xff]   ;;  %v3812_v7 = vld [vmem:[%s4996_s1 + $0x2e0] ss:$8 sps:$4 sm:$0xff]   ;;  %v3832_v46 = vld [vmem:[%s4996_s1 + $0x64] ss:$8 sps:$4 sm:$0xff]  }
  0x1f   : > { %v4376_v59 = vld [vmem:[%s4107_s22 + $0x50] sm:$0x1]  ;;  %v3841_v13 = vld [vmem:[%s4996_s1 + $0x334] ss:$8 sps:$4 sm:$0xff]   ;;  %v3910_v55 = vld [vmem:[%s4996_s1 + $0x1a0] ss:$8 sps:$4 sm:$0xff]  }
  0x20   : > { %539 = vmatpush1.bf16.msra.mxu1 %v3774_v29  ;;  %1503 = vmatpush1.bf16.msra.mxu0 %v3775_v33  ;;  %v383_v29 = vrot.slane %v297_v20, 1  ;;  %v382_v33 = vsel %vm364_vm0, %v380_v26, %v381_v28  ;;  %v3821_v26 = vld [vmem:[%s4996_s1 + $0x300] ss:$8 sps:$4 sm:$0xff]   ;;  %v3919_v60 = vld [vmem:[%s4996_s1 + $0x1b4] ss:$8 sps:$4 sm:$0xff]   ;;  %vm2872_vm2 = vcmask 1040384  }
  0x21   : > { %540 = vmatprep.subr.bf16.mxu1 %v3776_v40  ;;  %1504 = vmatprep.subr.bf16.mxu0 %v3778_v41  ;;  %v299_v40 = vunpack.c.h.bf16 %v4245_v30  ;;  %v300_v41 = vunpack.c.l.bf16 %v4248_v31  ;;  %vm2874_vm3 = vcmask 1041408  }
  0x22   : > { %v384_v38 = vsel %vm364_vm0, %v381_v28, %v383_v29  ;;  %v843_v28 = vrot.slane %v292_v62, 2  ;;  %v844_v29 = vrot.slane %v293_v63, 2  ;;  %v3829_v62 = vld [vmem:[%s4996_s1 + $0x314] ss:$8 sps:$4 sm:$0xff]  }
  0x23   : > { %v388_v51 = vrot.slane %v300_v41, 1  ;;  %v3838_v63 = vld [vmem:[%s4996_s1 + $0x74] ss:$8 sps:$4 sm:$0xff]  }
  0x24   : > { %541 = vmatpush1.bf16.msra.mxu1 %v3780_v47  ;;  %1505 = vmatpush1.bf16.msra.mxu0 %v3781_v50  ;;  %v4273_v47 = vpack.c.bf16 %v384_v38, %v382_v33  ;;  %v386_v50 = vrot.slane %v299_v40, 1  ;;  %v4370_v38 = vld [vmem:[%s4107_s22 + $0x48] sm:$0xff]  }
  0x25   : > { %719 = vmatprep.subr.bf16.mxu1 %v3784_v53  ;;  %1740 = vmatprep.subr.bf16.mxu0 %v3787_v57  ;;  %v3820_v53 = vld [vmem:[%s4996_s1 + $0x44] ss:$8 sps:$4 sm:$0xff]  }
  0x26   : > { %v387_v57 = vsel %vm364_vm0, %v385_v49, %v386_v50  ;;  %v389_v61 = vsel %vm364_vm0, %v386_v50, %v388_v51  ;;  %v3836_v49 = vld [vmem:[%s4996_s1 + $0x70] ss:$8 sps:$4 sm:$0xff]  }
  0x27   : > { %559 = vmatmul.mubr.bf16.vlgmr.msra.gmra.mrb[0].mxu1 %v421_v1  ;;  %1523 = vmatmul.mubr.bf16.vlgmr.msra.gmra.mrb[0].mxu0 %v422_v4  ;;  %v3826_v1 = vld [vmem:[%s4996_s1 + $0x54] ss:$8 sps:$4 sm:$0xff]   ;;  %v4312_v6 = vpack.c.bf16 %v389_v61, %v387_v57  ;;  %v848_v61 = vrot.slane %v295_v15, 2 }
  0x28   : > { %720 = vmatpush1.bf16.msra.mxu1 %v3782_v3  ;;  %1741 = vmatpush1.bf16.msra.mxu0 %v3785_v5  ;;  %v3814_v3 = vld [vmem:[%s4996_s1 + $0x2e4] ss:$8 sps:$4 sm:$0xff]   ;;  %v839_v5 = vrot.slane %v290_v45, 2  ;;  %v3824_v45 = vld [vmem:[%s4996_s1 + $0x50] ss:$8 sps:$4 sm:$0xff]  }
  0x29   : > { %1742 = vmatprep.subr.bf16.mxu0 %v3790_v9  ;;  %568 = vmatprep.mubr.bf16.mxu1 %v3994_v2  ;;  %v3817_v9 = vld [vmem:[%s4996_s1 + $0x2f4] ss:$8 sps:$4 sm:$0xff]  }
  0x2a   : > { %1532 = vmatprep.mubr.bf16.mxu0 %v3994_v2  ;;  %721 = vmatprep.subr.bf16.mxu1 %v3793_v11  ;;  %v4323_v11 = vld [vmem:[%s4107_s22 + $0x3c] sm:$0xff]  }
  0x2b   : > { %v301_v18 = vunpack.c.l.bf16 %v4323_v11  ;;  %v302_v19 = vunpack.c.h.bf16 %v4323_v11 }
  0x2c   : > { %1743 = vmatpush1.bf16.msra.mxu0 %v3788_v14  ;;  %722 = vmatpush1.bf16.msra.mxu1 %v3791_v17  ;;  %v3815_v14 = vld [vmem:[%s4996_s1 + $0x2f0] ss:$8 sps:$4 sm:$0xff]   ;;  %v842_v17 = vsel %vm832_vm1, %v839_v5, %v841_v8 }
  0x2d   : > { %1744 = vmatprep.subr.bf16.mxu0 %v3796_v21  ;;  %723 = vmatprep.subr.bf16.mxu1 %v3802_v22  ;;  %v3823_v22 = vld [vmem:[%s4996_s1 + $0x304] ss:$8 sps:$4 sm:$0xff]   ;;  %v390_v33 = vrot.slane %v301_v18, 1  ;;  %v4424_v8 = vld [vmem:[%s4107_s22 + $0x54] sm:$0xff]  }
  0x2f   : > { %569 = vmatmul.mubr.bf16.gmra.mrb[4].mxu1 %v422_v4  ;;  %1533 = vmatmul.mubr.bf16.gmra.mrb[4].mxu0 %v4230_v23  ;;  %v838_v4 = vrot.slane %v289_v44, 2  ;;  %v4326_v44 = vld [vmem:[%s4107_s22 + $0x44] sm:$0x1] }
  0x30   : > { %1745 = vmatpush1.bf16.msra.mxu0 %v3794_v24  ;;  %578 = vmatprep.mubr.bf16.mxu1 %v3994_v2  ;;  %v303_v21 = vunpack.c.l.bf16 %v4326_v44  ;;  %v3830_v24 = vld [vmem:[%s4996_s1 + $0x60] ss:$8 sps:$4 sm:$0xff]  }
  0x31   : > { %1746 = vmatprep.subr.bf16.mxu0 %v3799_v25  ;;  %1542 = vmatprep.mubr.bf16.mxu0 %v3994_v2  ;;  %v840_v35 = vsel %vm832_vm1, %v838_v4, %v839_v5 }
  0x32   : > { %724 = vmatpush1.bf16.msra.mxu1 %v3800_v32  ;;  %v4352_v25 = vpack.c.bf16 %v842_v17, %v840_v35  ;;  %v846_v32 = vrot.slane %v294_v0, 2  ;;  %v845_v0 = vsel %vm832_vm1, %v843_v28, %v844_v29  ;;  %v308_v17 = vunpack.c.h.bf16 %v4424_v8 }
  0x33   : > { %725 = vmatprep.subr.bf16.mxu1 %v3811_v36  ;;  %v391_v36 = vrot.slane %v302_v19, 1 }
  0x34   : > { %1747 = vmatpush1.bf16.msra.mxu0 %v3797_v37  ;;  %v393_v37 = vrot.slane %v303_v21, 1 }
  0x35   : > { %1748 = vmatprep.subr.bf16.mxu0 %v3805_v42  ;;  %v847_v42 = vsel %vm832_vm1, %v844_v29, %v846_v32  ;;  %v392_v50 = vsel %vm364_vm0, %v390_v33, %v391_v36  ;;  %v853_v32 = vrot.slane %v298_v39, 2  ;;  %v854_v33 = vrot.slane %v299_v40, 2  ;;  %v3846_v39 = vld [vmem:[%s4996_s1 + $0x340] ss:$8 sps:$4 sm:$0xff]   ;;  %v3855_v40 = vld [vmem:[%s4996_s1 + $0x354] ss:$8 sps:$4 sm:$0xff]  }
  0x36   : > { %726 = vmatpush1.bf16.msra.mxu1 %v3809_v43  ;;  %v304_v43 = vunpack.c.l.bf16 %v4370_v38  ;;  %v394_v51 = vsel %vm364_vm0, %v391_v36, %v393_v37  ;;  %v4404_v57 = vpack.c.bf16 %v847_v42, %v845_v0  ;;  %v401_v37 = vrot.slane %v308_v17, 1 }
  0x37   : > { %579 = vmatmul.mubr.bf16.gmra.mrb[8].mxu1 %v4230_v23  ;;  %1543 = vmatmul.mubr.bf16.gmra.mrb[8].mxu0 %v4273_v47  ;;  %v855_v0 = vsel %vm832_vm1, %v853_v32, %v854_v33  ;;  %v282_v32 = vld [vmem:[%s4107_s22 + $0x68] sm:$0x1] }
  0x38   : > { %1749 = vmatpush1.bf16.msra.mxu0 %v3803_v48  ;;  %588 = vmatprep.mubr.bf16.mxu1 %v3994_v2  ;;  %v305_v48 = vunpack.c.h.bf16 %v4370_v38  ;;  %v395_v4 = vrot.slane %v304_v43, 1 }
  0x39   : > { %1750 = vmatprep.subr.bf16.mxu0 %v3808_v52  ;;  %1552 = vmatprep.mubr.bf16.mxu0 %v3994_v2  ;;  %v3827_v52 = vld [vmem:[%s4996_s1 + $0x310] ss:$8 sps:$4 sm:$0xff]  }
  0x3a   : > { %727 = vmatprep.subr.bf16.mxu1 %v3820_v53  ;;  %v306_v53 = vunpack.c.l.bf16 %v4376_v59  ;;  %v396_v5 = vrot.slane %v305_v48, 1  ;;  %v3850_v59 = vld [vmem:[%s4996_s1 + $0x110] ss:$8 sps:$4 sm:$0xff]  }
  0x3b   : > { %728 = vmatpush1.bf16.msra.mxu1 %v3818_v54  ;;  %v3845_v54 = vld [vmem:[%s4996_s1 + $0x104] ss:$8 sps:$4 sm:$0xff]  }
  0x3c   : > { %1751 = vmatpush1.bf16.msra.mxu0 %v3806_v56  ;;  %729 = vmatprep.subr.bf16.mxu1 %v3826_v1  ;;  %v3835_v56 = vld [vmem:[%s4996_s1 + $0x324] ss:$8 sps:$4 sm:$0xff]   ;;  %v849_v1 = vrot.slane %v296_v16, 2  ;;  %v398_v15 = vrot.slane %v306_v53, 1  ;;  %v3833_v16 = vld [vmem:[%s4996_s1 + $0x320] ss:$8 sps:$4 sm:$0xff]  }
  0x3d   : > { %1752 = vmatprep.subr.bf16.mxu0 %v3814_v3  ;;  %v4410_v3 = vpack.c.bf16 %v394_v51, %v392_v50  ;;  %v3862_v50 = vld [vmem:[%s4996_s1 + $0x364] ss:$8 sps:$4 sm:$0xff]  }
  0x3f   : > { %589 = vmatmul.mubr.bf16.gmra.mrb[12].mxu1 %v4273_v47  ;;  %1553 = vmatmul.mubr.bf16.gmra.mrb[12].mxu0 %v4312_v6 }
  0x40   : > { %1753 = vmatpush1.bf16.msra.mxu0 %v3812_v7  ;;  %598 = vmatprep.mubr.bf16.mxu1 %v3994_v2  ;;  %v851_v7 = vrot.slane %v297_v20, 2  ;;  %v397_v20 = vsel %vm364_vm0, %v395_v4, %v396_v5  ;;  %v3869_v4 = vld [vmem:[%s4996_s1 + $0x374] ss:$8 sps:$4 sm:$0xff]  }
  0x41   : > { %1754 = vmatprep.subr.bf16.mxu0 %v3817_v9  ;;  %1772 = vmatprep.mubr.bf16.mxu0 %v3994_v2  ;;  %v4427_v9 = vld [vmem:[%s4107_s22 + $0x5c] sm:$0x1] }
  0x42   : > { %730 = vmatpush1.bf16.msra.mxu1 %v3824_v45  ;;  %v850_v45 = vsel %vm832_vm1, %v848_v61, %v849_v1  ;;  %v852_v35 = vsel %vm832_vm1, %v849_v1, %v851_v7  ;;  %v861_v61 = vrot.slane %v303_v21, 2  ;;  %v3860_v1 = vld [vmem:[%s4996_s1 + $0x360] ss:$8 sps:$4 sm:$0xff]   ;;  %v3876_v21 = vld [vmem:[%s4996_s1 + $0x384] ss:$8 sps:$4 sm:$0xff]  }
  0x43   : > { %731 = vmatprep.subr.bf16.mxu1 %v3832_v46  ;;  %v399_v46 = vsel %vm364_vm0, %v396_v5, %v398_v15  ;;  %v4451_v29 = vpack.c.bf16 %v852_v35, %v850_v45  ;;  %v3843_v7 = vld [vmem:[%s4996_s1 + $0x100] ss:$8 sps:$4 sm:$0xff]   ;;  %v863_v15 = vrot.slane %v304_v43, 2  ;;  %v869_v35 = vrot.slane %v308_v17, 2 }
  0x44   : > { %1755 = vmatpush1.bf16.msra.mxu0 %v3815_v14  ;;  %v307_v14 = vunpack.c.l.bf16 %v4424_v8  ;;  %v4449_v28 = vpack.c.bf16 %v399_v46, %v397_v20  ;;  %v3852_v20 = vld [vmem:[%s4996_s1 + $0x114] ss:$8 sps:$4 sm:$0xff]  }
  0x45   : > { %1983 = vmatprep.subr.bf16.mxu0 %v3823_v22  ;;  %v309_v22 = vunpack.c.l.bf16 %v4427_v9 }
  0x46   : > { %732 = vmatpush1.bf16.msra.mxu1 %v3830_v24  ;;  %v3839_v24 = vld [vmem:[%s4996_s1 + $0x330] ss:$8 sps:$4 sm:$0xff]   ;;  %v400_v36 = vrot.slane %v307_v14, 1  ;;  %v868_v45 = vrot.slane %v307_v14, 2 }
  0x47   : > { %599 = vmatmul.mubr.bf16.gmra.mrb[16].mxu1 %v4312_v6  ;;  %1773 = vmatmul.mubr.bf16.vlgmr.msra.gmra.mrb[0].mxu0 %v4352_v25  ;;  %v871_v46 = vrot.slane %v309_v22, 2 }
  0x48   : > { %1984 = vmatpush1.bf16.msra.mxu0 %v3821_v26  ;;  %608 = vmatprep.mubr.bf16.mxu1 %v3994_v2  ;;  %v3848_v26 = vld [vmem:[%s4996_s1 + $0x344] ss:$8 sps:$4 sm:$0xff]   ;;  %v402_v31 = vsel %vm364_vm0, %v400_v36, %v401_v37  ;;  %v870_v9 = vsel %vm832_vm1, %v868_v45, %v869_v35  ;;  %v312_v36 = vunpack.c.l.bf16 %v282_v32  ;;  %v3895_v45 = vld [vmem:[%s4996_s1 + $0x3b0] ss:$8 sps:$4 sm:$0xff]  }
  0x49   : > { %1782 = vmatprep.mubr.bf16.mxu0 %v3994_v2  ;;  %1985 = vmatprep.subr.bf16.mxu0 %v3829_v62  ;;  %v403_v62 = vrot.slane %v309_v22, 1  ;;  %v872_v17 = vsel %vm832_vm1, %v869_v35, %v871_v46  ;;  %v3903_v35 = vld [vmem:[%s4996_s1 + $0x3c4] ss:$8 sps:$4 sm:$0xff]   ;;  %v3901_v46 = vld [vmem:[%s4996_s1 + $0x3c0] ss:$8 sps:$4 sm:$0xff]  }
  0x4a   : > { %733 = vmatprep.subr.bf16.mxu1 %v3838_v63  ;;  %v856_v63 = vrot.slane %v300_v41, 2  ;;  %v3907_v32 = vld [vmem:[%s4996_s1 + $0x3d0] ss:$8 sps:$4 sm:$0xff]  }
  0x4b   : > { %734 = vmatpush1.bf16.msra.mxu1 %v3836_v49  ;;  %v404_v41 = vsel %vm364_vm0, %v401_v37, %v403_v62  ;;  %v3853_v49 = vld [vmem:[%s4996_s1 + $0x350] ss:$8 sps:$4 sm:$0xff]   ;;  %v3873_v62 = vld [vmem:[%s4996_s1 + $0x144] ss:$8 sps:$4 sm:$0xff]  }
  0x4c   : > { %1986 = vmatpush1.bf16.msra.mxu0 %v3827_v52  ;;  %994 = vmatprep.subr.bf16.mxu1 %v3845_v54  ;;  %v857_v42 = vsel %vm832_vm1, %v854_v33, %v856_v63  ;;  %v4485_v51 = vpack.c.bf16 %v404_v41, %v402_v31  ;;  %v858_v54 = vrot.slane %v301_v18, 2  ;;  %v3866_v33 = vld [vmem:[%s4996_s1 + $0x134] ss:$8 sps:$4 sm:$0xff]   ;;  %v3864_v37 = vld [vmem:[%s4996_s1 + $0x130] ss:$8 sps:$4 sm:$0xff]  }
  0x4d   : > { %1987 = vmatprep.subr.bf16.mxu0 %v3835_v56  ;;  %v4487_v52 = vpack.c.bf16 %v857_v42, %v855_v0  ;;  %v859_v56 = vrot.slane %v302_v19, 2  ;;  %v3867_v19 = vld [vmem:[%s4996_s1 + $0x370] ss:$8 sps:$4 sm:$0xff]   ;;  %v4571_v0 = vpack.c.bf16 %v872_v17, %v870_v9  ;;  %v1638_v42 = vrot.slane %v312_v36, 2  ;;  %v3923_v9 = vld [vmem:[%s4996_s1 + $0x3f4] ss:$8 sps:$4 sm:$0xff]  }
  0x4e   : > { %v3921_v17 = vld [vmem:[%s4996_s1 + $0x3f0] ss:$8 sps:$4 sm:$0xff]  }
  0x4f   : > { %609 = vmatmul.mubr.bf16.gmra.mrb[20].mxu1 %v4410_v3  ;;  %1783 = vmatmul.mubr.bf16.gmra.mrb[4].mxu0 %v4404_v57  ;;  %v860_v44 = vsel %vm832_vm1, %v858_v54, %v859_v56  ;;  %v862_v18 = vsel %vm832_vm1, %v859_v56, %v861_v61  ;;  %v3871_v54 = vld [vmem:[%s4996_s1 + $0x140] ss:$8 sps:$4 sm:$0xff]   ;;  %v3880_v61 = vld [vmem:[%s4996_s1 + $0x154] ss:$8 sps:$4 sm:$0xff]  }
  0x50   : > { %618 = vmatprep.mubr.bf16.mxu1 %v3994_v2  ;;  %1792 = vmatprep.mubr.bf16.mxu0 %v3994_v2  ;;  %v4513_v5 = vpack.c.bf16 %v862_v18, %v860_v44  ;;  %v3878_v44 = vld [vmem:[%s4996_s1 + $0x150] ss:$8 sps:$4 sm:$0xff]   ;;  %v3887_v18 = vld [vmem:[%s4996_s1 + $0x164] ss:$8 sps:$4 sm:$0xff]  }
  0x51   : > { %1988 = vmatpush1.bf16.msra.mxu0 %v3833_v16  ;;  %v864_v16 = vrot.slane %v305_v48, 2 }
  0x52   : > { %1989 = vmatprep.subr.bf16.mxu0 %v3841_v13  ;;  %v866_v13 = vrot.slane %v306_v53, 2 }
  0x53   : > { %v865_v43 = vsel %vm832_vm1, %v863_v15, %v864_v16  ;;  %v3892_v15 = vld [vmem:[%s4996_s1 + $0x170] ss:$8 sps:$4 sm:$0xff]  }
  0x54   : > { %v867_v48 = vsel %vm832_vm1, %v864_v16, %v866_v13  ;;  %v3900_v16 = vld [vmem:[%s4996_s1 + $0x184] ss:$8 sps:$4 sm:$0xff]   ;;  %v3874_v13 = vld [vmem:[%s4996_s1 + $0x380] ss:$8 sps:$4 sm:$0xff]  }
  0x55   : > { %1990 = vmatpush1.bf16.msra.mxu0 %v3839_v24  ;;  %v4539_v53 = vpack.c.bf16 %v867_v48, %v865_v43  ;;  %v4548_v24 = vld [vmem:[%s4107_s22 + $0x60] sm:$0xff]  }
  0x56   : > { %1991 = vmatprep.subr.bf16.mxu0 %v3848_v26  ;;  %v3857_v26 = vld [vmem:[%s4996_s1 + $0x120] ss:$8 sps:$4 sm:$0xff]   ;;  %v310_v14 = vunpack.c.l.bf16 %v4548_v24  ;;  %v311_v22 = vunpack.c.h.bf16 %v4548_v24  ;;  %v3890_v43 = vld [vmem:[%s4996_s1 + $0x3a4] ss:$8 sps:$4 sm:$0xff]  }
  0x57   : > { %619 = vmatmul.mubr.bf16.gmra.mrb[24].mxu1 %v4449_v28  ;;  %1793 = vmatmul.mubr.bf16.gmra.mrb[8].mxu0 %v4451_v29  ;;  %v3888_v48 = vld [vmem:[%s4996_s1 + $0x3a0] ss:$8 sps:$4 sm:$0xff]  }
  0x58   : > { %628 = vmatprep.mubr.bf16.mxu1 %v3994_v2  ;;  %1802 = vmatprep.mubr.bf16.mxu0 %v3994_v2  ;;  %v1385_v63 = vrot.slane %v310_v14, 1  ;;  %v1635_v31 = vrot.slane %v310_v14, 2  ;;  %v1636_v41 = vrot.slane %v311_v22, 2  ;;  %v3914_v14 = vld [vmem:[%s4996_s1 + $0x3e0] ss:$8 sps:$4 sm:$0xff]  }
  0x59   : > { %1992 = vmatpush1.bf16.msra.mxu0 %v3846_v39  ;;  %v1386_v39 = vrot.slane %v311_v22, 1  ;;  %v3929_v22 = vld [vmem:[%s4996_s1 + $0x404] ss:$8 sps:$4 sm:$0xff]  }
  0x5a   : > { %1993 = vmatprep.subr.bf16.mxu0 %v3855_v40  ;;  %v1388_v40 = vrot.slane %v312_v36, 1  ;;  %v3898_v36 = vld [vmem:[%s4996_s1 + $0x180] ss:$8 sps:$4 sm:$0xff]  }
  0x5d   : > { %1994 = vmatpush1.bf16.msra.mxu0 %v3853_v49  ;;  %v1387_v49 = vsel %vm364_vm0, %v1385_v63, %v1386_v39  ;;  %v3912_v63 = vld [vmem:[%s4996_s1 + $0x1a4] ss:$8 sps:$4 sm:$0xff]  }
  0x5e   : > { %1995 = vmatprep.subr.bf16.mxu0 %v3862_v50  ;;  %v1389_v50 = vsel %vm364_vm0, %v1386_v39, %v1388_v40  ;;  %v3926_v39 = vld [vmem:[%s4996_s1 + $0x1c4] ss:$8 sps:$4 sm:$0xff]  }
  0x5f   : > { %629 = vmatmul.mubr.bf16.gmra.mrb[28].mxu1 %v4485_v51  ;;  %1803 = vmatmul.mubr.bf16.gmra.mrb[12].mxu0 %v4487_v52  ;;  %v4578_v56 = vpack.c.bf16 %v1389_v50, %v1387_v49  ;;  %v4712_v40 = vld [vmem:[%s4107_s22 + $0x6c] sm:$0xff]   ;;  %v3932_v49 = vld [vmem:[%s4996_s1 + $0x1d4] ss:$8 sps:$4 sm:$0xff]  }
  0x60   : > { %751 = vmatprep.mubr.bf16.mxu1 %v3994_v2  ;;  %1812 = vmatprep.mubr.bf16.mxu0 %v3994_v2 }
  0x61   : > { %1996 = vmatpush1.bf16.msra.mxu0 %v3860_v1  ;;  %v1637_v1 = vsel %vm832_vm1, %v1635_v31, %v1636_v41  ;;  %v4718_v31 = vld [vmem:[%s4107_s22 + $0x74] sm:$0x1] }
  0x62   : > { %1997 = vmatprep.subr.bf16.mxu0 %v3869_v4  ;;  %v1639_v4 = vsel %vm832_vm1, %v1636_v41, %v1638_v42  ;;  %v313_v41 = vunpack.c.l.bf16 %v4712_v40  ;;  %v314_v42 = vunpack.c.h.bf16 %v4712_v40 }
  0x64   : > { %v2381_v50 = vrot.slane %v313_v41, 2 }
  0x65   : > { %1998 = vmatpush1.bf16.msra.mxu0 %v3867_v19  ;;  %v4595_v19 = vpack.c.bf16 %v1639_v4, %v1637_v1  ;;  %v3930_v1 = vld [vmem:[%s4996_s1 + $0x1d0] ss:$8 sps:$4 sm:$0xff]   ;;  %v3938_v4 = vld [vmem:[%s4996_s1 + $0x1e4] ss:$8 sps:$4 sm:$0xff]  }
  0x66   : > { %2236 = vmatprep.subr.bf16.mxu0 %v3876_v21  ;;  %v3885_v21 = vld [vmem:[%s4996_s1 + $0x160] ss:$8 sps:$4 sm:$0xff]  }
  0x67   : > { %752 = vmatmul.mubr.bf16.vlgmr.msra.gmra.mrb[0].mxu1 %v4122_v27  ;;  %1813 = vmatmul.mubr.bf16.gmra.mrb[16].mxu0 %v4513_v5  ;;  %v3859_v27 = vld [vmem:[%s4996_s1 + $0x124] ss:$8 sps:$4 sm:$0xff]  }
  0x68   : > { %995 = vmatpush1.bf16.msra.mxu1 %v3843_v7  ;;  %761 = vmatprep.mubr.bf16.mxu1 %v3994_v2  ;;  %v3894_v7 = vld [vmem:[%s4996_s1 + $0x174] ss:$8 sps:$4 sm:$0xff]  }
  0x69   : > { %1822 = vmatprep.mubr.bf16.mxu0 %v3994_v2  ;;  %996 = vmatprep.subr.bf16.mxu1 %v3852_v20  ;;  %v3883_v20 = vld [vmem:[%s4996_s1 + $0x394] ss:$8 sps:$4 sm:$0xff]  }
  0x6c   : > { %997 = vmatpush1.bf16.msra.mxu1 %v3850_v59  ;;  %v3881_v59 = vld [vmem:[%s4996_s1 + $0x390] ss:$8 sps:$4 sm:$0xff]  }
  0x6d   : > { %998 = vmatprep.subr.bf16.mxu1 %v3859_v27  ;;  %v3897_v27 = vld [vmem:[%s4996_s1 + $0x3b4] ss:$8 sps:$4 sm:$0xff]  }
  0x6f   : > { %762 = vmatmul.mubr.bf16.gmra.mrb[4].mxu1 %v4134_v34  ;;  %1823 = vmatmul.mubr.bf16.gmra.mrb[20].mxu0 %v4539_v53 }
  0x70   : > { %771 = vmatprep.mubr.bf16.mxu1 %v3994_v2  ;;  %1832 = vmatprep.mubr.bf16.mxu0 %v3994_v2 }
  0x71   : > { %999 = vmatpush1.bf16.msra.mxu1 %v3857_v26  ;;  %v3909_v26 = vld [vmem:[%s4996_s1 + $0x3d4] ss:$8 sps:$4 sm:$0xff]  }
  0x72   : > { %1000 = vmatprep.subr.bf16.mxu1 %v3866_v33  ;;  %v3916_v33 = vld [vmem:[%s4996_s1 + $0x3e4] ss:$8 sps:$4 sm:$0xff]  }
  0x75   : > { %1001 = vmatpush1.bf16.msra.mxu1 %v3864_v37  ;;  %v3906_v37 = vld [vmem:[%s4996_s1 + $0x194] ss:$8 sps:$4 sm:$0xff]  }
  0x76   : > { %1002 = vmatprep.subr.bf16.mxu1 %v3873_v62  ;;  %v3904_v62 = vld [vmem:[%s4996_s1 + $0x190] ss:$8 sps:$4 sm:$0xff]  }
  0x77   : > { %772 = vmatmul.mubr.bf16.gmra.mrb[8].mxu1 %v4173_v58  ;;  %1833 = vmatmul.mubr.bf16.gmra.mrb[24].mxu0 %v4571_v0 }
  0x78   : > { %781 = vmatprep.mubr.bf16.mxu1 %v3994_v2  ;;  %1842 = vmatprep.mubr.bf16.mxu0 %v3994_v2 }
  0x79   : > { %1003 = vmatpush1.bf16.msra.mxu1 %v3871_v54  ;;  %v2382_v54 = vrot.slane %v314_v42, 2 }
  0x7a   : > { %1004 = vmatprep.subr.bf16.mxu1 %v3880_v61  ;;  %v315_v61 = vunpack.c.l.bf16 %v4718_v31  ;;  %v3980_v31 = vld [vmem:[%s4996_s1 + $0x254] ss:$8 sps:$4 sm:$0xff]  }
  0x7d   : > { %1005 = vmatpush1.bf16.msra.mxu1 %v3878_v44  ;;  %v2384_v44 = vrot.slane %v315_v61, 2 }
  0x7e   : > { %1006 = vmatprep.subr.bf16.mxu1 %v3887_v18  ;;  %v4743_v18 = vsel %vm832_vm1, %v2381_v50, %v2382_v54  ;;  %v3984_v50 = vld [vmem:[%s4996_s1 + $0x274] ss:$8 sps:$4 sm:$0xff]  }
  0x7f   : > { %782 = vmatmul.mubr.bf16.gmra.mrb[12].mxu1 %v4206_v12  ;;  %1843 = vmatmul.mubr.bf16.gmra.mrb[28].mxu0 %v4595_v19 }
  0x80   : > { %791 = vmatprep.mubr.bf16.mxu1 %v3994_v2  ;;  %2015 = vmatprep.mubr.bf16.mxu0 %v3994_v2 }
  0x81   : > { %1007 = vmatpush1.bf16.msra.mxu1 %v3885_v21  ;;  %v4746_v21 = vsel %vm832_vm1, %v2382_v54, %v2384_v44  ;;  %v3985_v54 = vld [vmem:[%s4996_s1 + $0x270] ss:$8 sps:$4 sm:$0xff]  }
  0x82   : > { %1008 = vmatprep.subr.bf16.mxu1 %v3894_v7  ;;  %v3936_v7 = vld [vmem:[%s4996_s1 + $0x1e0] ss:$8 sps:$4 sm:$0xff]  }
  0x85   : > { %1009 = vmatpush1.bf16.msra.mxu1 %v3892_v15  ;;  %v2388_v15 = vpack.c.bf16 %v4746_v21, %v4743_v18  ;;  %v4939_v18 = vld [vmem:[%s4997_s2] ss:$0 sm:$0xff] }
  0x86   : > { %1237 = vmatprep.subr.bf16.mxu1 %v3900_v16  ;;  %v3944_v16 = vld [vmem:[%s4996_s1 + $0x1f4] ss:$8 sps:$4 sm:$0xff]  }
  0x87   : > { %792 = vmatmul.mubr.bf16.gmra.mrb[16].mxu1 %v4245_v30  ;;  %2016 = vmatmul.mubr.bf16.vlgmr.msra.gmra.mrb[0].mxu0 %v4173_v58 }
  0x88   : > { %2237 = vmatpush1.bf16.msra.mxu0 %v3874_v13  ;;  %801 = vmatprep.mubr.bf16.mxu1 %v3994_v2  ;;  %v3942_v13 = vld [vmem:[%s4996_s1 + $0x1f0] ss:$8 sps:$4 sm:$0xff]  }
  0x89   : > { %2025 = vmatprep.mubr.bf16.mxu0 %v3994_v2  ;;  %2238 = vmatprep.subr.bf16.mxu0 %v3883_v20  ;;  %v3927_v20 = vld [vmem:[%s4996_s1 + $0x400] ss:$8 sps:$4 sm:$0xff]  }
  0x8c   : > { %2239 = vmatpush1.bf16.msra.mxu0 %v3881_v59  ;;  %v3935_v59 = vld [vmem:[%s4996_s1 + $0x414] ss:$8 sps:$4 sm:$0xff]  }
  0x8d   : > { %2240 = vmatprep.subr.bf16.mxu0 %v3890_v43  ;;  %v3970_v43 = vld [vmem:[%s4996_s1 + $0x204] ss:$8 sps:$4 sm:$0xff]  }
  0x8f   : > { %802 = vmatmul.mubr.bf16.gmra.mrb[20].mxu1 %v4323_v11  ;;  %2026 = vmatmul.mubr.bf16.gmra.mrb[4].mxu0 %v4206_v12 }
  0x90   : > { %811 = vmatprep.mubr.bf16.mxu1 %v3994_v2  ;;  %2035 = vmatprep.mubr.bf16.mxu0 %v3994_v2 }
  0x91   : > { %2241 = vmatpush1.bf16.msra.mxu0 %v3888_v48  ;;  %v3933_v48 = vld [vmem:[%s4996_s1 + $0x410] ss:$8 sps:$4 sm:$0xff]  }
  0x92   : > { %2242 = vmatprep.subr.bf16.mxu0 %v3897_v27  ;;  %v3941_v27 = vld [vmem:[%s4996_s1 + $0x424] ss:$8 sps:$4 sm:$0xff]  }
  0x95   : > { %2243 = vmatpush1.bf16.msra.mxu0 %v3895_v45  ;;  %v3939_v45 = vld [vmem:[%s4996_s1 + $0x420] ss:$8 sps:$4 sm:$0xff]  }
  0x96   : > { %2244 = vmatprep.subr.bf16.mxu0 %v3903_v35  ;;  %v3945_v35 = vld [vmem:[%s4996_s1 + $0x430] ss:$8 sps:$4 sm:$0xff]  }
  0x97   : > { %812 = vmatmul.mubr.bf16.gmra.mrb[24].mxu1 %v4370_v38  ;;  %2036 = vmatmul.mubr.bf16.gmra.mrb[8].mxu0 %v4245_v30 }
  0x98   : > { %821 = vmatprep.mubr.bf16.mxu1 %v3994_v2  ;;  %2045 = vmatprep.mubr.bf16.mxu0 %v3994_v2 }
  0x99   : > { %2245 = vmatpush1.bf16.msra.mxu0 %v3901_v46  ;;  %v3950_v46 = vld [vmem:[%s4996_s1 + $0x444] ss:$8 sps:$4 sm:$0xff]  }
  0x9a   : > { %2246 = vmatprep.subr.bf16.mxu0 %v3909_v26  ;;  %v3948_v26 = vld [vmem:[%s4996_s1 + $0x440] ss:$8 sps:$4 sm:$0xff]  }
  0x9d   : > { %2247 = vmatpush1.bf16.msra.mxu0 %v3907_v32  ;;  %v3951_v32 = vld [vmem:[%s4996_s1 + $0x450] ss:$8 sps:$4 sm:$0xff]  }
  0x9e   : > { %2248 = vmatprep.subr.bf16.mxu0 %v3916_v33  ;;  %v3956_v33 = vld [vmem:[%s4996_s1 + $0x464] ss:$8 sps:$4 sm:$0xff]  }
  0x9f   : > { %822 = vmatmul.mubr.bf16.gmra.mrb[28].mxu1 %v4424_v8  ;;  %2046 = vmatmul.mubr.bf16.gmra.mrb[12].mxu0 %v4323_v11 }
  0xa0   : > { %1026 = vmatprep.mubr.bf16.mxu1 %v3994_v2  ;;  %2055 = vmatprep.mubr.bf16.mxu0 %v3994_v2 }
  0xa1   : > { %2249 = vmatpush1.bf16.msra.mxu0 %v3914_v14  ;;  %v3954_v14 = vld [vmem:[%s4996_s1 + $0x460] ss:$8 sps:$4 sm:$0xff]  }
  0xa2   : > { %2250 = vmatprep.subr.bf16.mxu0 %v3923_v9  ;;  %v3957_v9 = vld [vmem:[%s4996_s1 + $0x470] ss:$8 sps:$4 sm:$0xff]  }
  0xa5   : > { %2251 = vmatpush1.bf16.msra.mxu0 %v3921_v17  ;;  %v3971_v17 = vld [vmem:[%s4996_s1 + $0x200] ss:$8 sps:$4 sm:$0xff]  }
  0xa6   : > { %2486 = vmatprep.subr.bf16.mxu0 %v3929_v22  ;;  %v3972_v22 = vld [vmem:[%s4996_s1 + $0x214] ss:$8 sps:$4 sm:$0xff]  }
  0xa7   : > { %1027 = vmatmul.mubr.bf16.vlgmr.msra.gmra.mrb[0].mxu1 %v889_v10  ;;  %2056 = vmatmul.mubr.bf16.gmra.mrb[16].mxu0 %v4370_v38  ;;  %v3917_v10 = vld [vmem:[%s4996_s1 + $0x1b0] ss:$8 sps:$4 sm:$0xff]  }
  0xa8   : > { %1238 = vmatpush1.bf16.msra.mxu1 %v3898_v36  ;;  %1036 = vmatprep.mubr.bf16.mxu1 %v3994_v2  ;;  %v3974_v36 = vld [vmem:[%s4996_s1 + $0x224] ss:$8 sps:$4 sm:$0xff]  }
  0xa9   : > { %2065 = vmatprep.mubr.bf16.mxu0 %v3994_v2  ;;  %1239 = vmatprep.subr.bf16.mxu1 %v3906_v37  ;;  %v3975_v37 = vld [vmem:[%s4996_s1 + $0x220] ss:$8 sps:$4 sm:$0xff]  }
  0xac   : > { %1240 = vmatpush1.bf16.msra.mxu1 %v3904_v62  ;;  %v3976_v62 = vld [vmem:[%s4996_s1 + $0x234] ss:$8 sps:$4 sm:$0xff]  }
  0xad   : > { %1241 = vmatprep.subr.bf16.mxu1 %v3912_v63  ;;  %v2131_v63 = vrot.slane %v313_v41, 1  ;;  %v3981_v41 = vld [vmem:[%s4996_s1 + $0x250] ss:$8 sps:$4 sm:$0xff]  }
  0xaf   : > { %1037 = vmatmul.mubr.bf16.gmra.mrb[4].mxu1 %v4352_v25  ;;  %2066 = vmatmul.mubr.bf16.gmra.mrb[20].mxu0 %v4424_v8  ;;  %v3924_v25 = vld [vmem:[%s4996_s1 + $0x1c0] ss:$8 sps:$4 sm:$0xff]  }
  0xb0   : > { %1046 = vmatprep.mubr.bf16.mxu1 %v3994_v2  ;;  %2075 = vmatprep.mubr.bf16.mxu0 %v3994_v2 }
  0xb1   : > { %1242 = vmatpush1.bf16.msra.mxu1 %v3910_v55  ;;  %v2134_v55 = vrot.slane %v315_v61, 1 }
  0xb2   : > { %1243 = vmatprep.subr.bf16.mxu1 %v3919_v60  ;;  %v3977_v60 = vld [vmem:[%s4996_s1 + $0x230] ss:$8 sps:$4 sm:$0xff]  }
  0xb5   : > { %1244 = vmatpush1.bf16.msra.mxu1 %v3917_v10  ;;  %v3978_v10 = vld [vmem:[%s4996_s1 + $0x244] ss:$8 sps:$4 sm:$0xff]  }
  0xb6   : > { %1245 = vmatprep.subr.bf16.mxu1 %v3926_v39 }
  0xb7   : > { %1047 = vmatmul.mubr.bf16.gmra.mrb[8].mxu1 %v4404_v57  ;;  %2076 = vmatmul.mubr.bf16.gmra.mrb[24].mxu0 %v4548_v24 }
  0xb8   : > { %1056 = vmatprep.mubr.bf16.mxu1 %v3994_v2  ;;  %2085 = vmatprep.mubr.bf16.mxu0 %v3994_v2 }
  0xb9   : > { %1246 = vmatpush1.bf16.msra.mxu1 %v3924_v25  ;;  %v3979_v25 = vld [vmem:[%s4996_s1 + $0x240] ss:$8 sps:$4 sm:$0xff]  }
  0xba   : > { %1247 = vmatprep.subr.bf16.mxu1 %v3932_v49  ;;  %v3983_v49 = vld [vmem:[%s4996_s1 + $0x260] ss:$8 sps:$4 sm:$0xff]  }
  0xbd   : > { %1248 = vmatpush1.bf16.msra.mxu1 %v3930_v1 }
  0xbe   : > { %1249 = vmatprep.subr.bf16.mxu1 %v3938_v4 }
  0xbf   : > { %1057 = vmatmul.mubr.bf16.gmra.mrb[12].mxu1 %v4451_v29  ;;  %2086 = vmatmul.mubr.bf16.gmra.mrb[28].mxu0 %v4712_v40 }
  0xc0   : > { %1066 = vmatprep.mubr.bf16.mxu1 %v3994_v2  ;;  %2268 = vmatprep.mubr.bf16.mxu0 %v3994_v2 }
  0xc1   : > { %1250 = vmatpush1.bf16.msra.mxu1 %v3936_v7 }
  0xc2   : > { %1251 = vmatprep.subr.bf16.mxu1 %v3944_v16 }
  0xc5   : > { %1252 = vmatpush1.bf16.msra.mxu1 %v3942_v13 }
  0xc6   : > { %3452 = vmatprep.subr.bf16.mxu1 %v3970_v43 }
  0xc7   : > { %1067 = vmatmul.mubr.bf16.gmra.mrb[16].mxu1 %v4487_v52  ;;  %2269 = vmatmul.mubr.bf16.vlgmr.msra.gmra.mrb[0].mxu0 %v4230_v23  ;;  %v3947_v23 = vld [vmem:[%s4996_s1 + $0x434] ss:$8 sps:$4 sm:$0xff]  }
  0xc8   : > { %2487 = vmatpush1.bf16.msra.mxu0 %v3927_v20  ;;  %1076 = vmatprep.mubr.bf16.mxu1 %v3994_v2 }
  0xc9   : > { %2278 = vmatprep.mubr.bf16.mxu0 %v3994_v2  ;;  %2488 = vmatprep.subr.bf16.mxu0 %v3935_v59 }
  0xcc   : > { %2489 = vmatpush1.bf16.msra.mxu0 %v3933_v48 }
  0xcd   : > { %2490 = vmatprep.subr.bf16.mxu0 %v3941_v27 }
  0xcf   : > { %1077 = vmatmul.mubr.bf16.gmra.mrb[20].mxu1 %v4513_v5  ;;  %2279 = vmatmul.mubr.bf16.gmra.mrb[4].mxu0 %v4273_v47  ;;  %v3953_v47 = vld [vmem:[%s4996_s1 + $0x454] ss:$8 sps:$4 sm:$0xff]  }
  0xd0   : > { %1086 = vmatprep.mubr.bf16.mxu1 %v3994_v2  ;;  %2288 = vmatprep.mubr.bf16.mxu0 %v3994_v2 }
  0xd1   : > { %2491 = vmatpush1.bf16.msra.mxu0 %v3939_v45 }
  0xd2   : > { %2492 = vmatprep.subr.bf16.mxu0 %v3947_v23 }
  0xd5   : > { %2493 = vmatpush1.bf16.msra.mxu0 %v3945_v35 }
  0xd6   : > { %2494 = vmatprep.subr.bf16.mxu0 %v3950_v46 }
  0xd7   : > { %1087 = vmatmul.mubr.bf16.gmra.mrb[24].mxu1 %v4539_v53  ;;  %2289 = vmatmul.mubr.bf16.gmra.mrb[8].mxu0 %v4312_v6  ;;  %v3959_v6 = vld [vmem:[%s4996_s1 + $0x474] ss:$8 sps:$4 sm:$0xff]  }
  0xd8   : > { %1096 = vmatprep.mubr.bf16.mxu1 %v3994_v2  ;;  %2298 = vmatprep.mubr.bf16.mxu0 %v3994_v2 }
  0xd9   : > { %2495 = vmatpush1.bf16.msra.mxu0 %v3948_v26 }
  0xda   : > { %2496 = vmatprep.subr.bf16.mxu0 %v3953_v47 }
  0xdd   : > { %2497 = vmatpush1.bf16.msra.mxu0 %v3951_v32 }
  0xde   : > { %2498 = vmatprep.subr.bf16.mxu0 %v3956_v33 }
  0xdf   : > { %1097 = vmatmul.mubr.bf16.gmra.mrb[28].mxu1 %v4571_v0  ;;  %2299 = vmatmul.mubr.bf16.gmra.mrb[12].mxu0 %v4410_v3 }
  0xe0   : > { %1269 = vmatprep.mubr.bf16.mxu1 %v3994_v2  ;;  %2308 = vmatprep.mubr.bf16.mxu0 %v3994_v2 }
  0xe1   : > { %2499 = vmatpush1.bf16.msra.mxu0 %v3954_v14 }
  0xe2   : > { %2500 = vmatprep.subr.bf16.mxu0 %v3959_v6 }
  0xe5   : > { %2501 = vmatpush1.bf16.msra.mxu0 %v3957_v9 }
  0xe7   : > { %1270 = vmatmul.mubr.bf16.vlgmr.msra.gmra.mrb[0].mxu1 %v4134_v34  ;;  %2309 = vmatmul.mubr.bf16.gmra.mrb[16].mxu0 %v4449_v28  ;;  %v3973_v34 = vld [vmem:[%s4996_s1 + $0x210] ss:$8 sps:$4 sm:$0xff]  }
  0xe8   : > { %3460 = vmatpush1.bf16.msra.mxu1 %v3971_v17  ;;  %1279 = vmatprep.mubr.bf16.mxu1 %v3994_v2 }
  0xe9   : > { %2318 = vmatprep.mubr.bf16.mxu0 %v3994_v2  ;;  %3453 = vmatprep.subr.bf16.mxu1 %v3972_v22 }
  0xec   : > { %3461 = vmatpush1.bf16.msra.mxu1 %v3973_v34 }
  0xed   : > { %3454 = vmatprep.subr.bf16.mxu1 %v3974_v36 }
  0xef   : > { %1280 = vmatmul.mubr.bf16.gmra.mrb[4].mxu1 %v4173_v58  ;;  %2319 = vmatmul.mubr.bf16.gmra.mrb[20].mxu0 %v4485_v51  ;;  %v2132_v58 = vrot.slane %v314_v42, 1  ;;  %v3982_v42 = vld [vmem:[%s4996_s1 + $0x264] ss:$8 sps:$4 sm:$0xff]  }
  0xf0   : > { %1289 = vmatprep.mubr.bf16.mxu1 %v3994_v2  ;;  %2328 = vmatprep.mubr.bf16.mxu0 %v3994_v2 }
  0xf1   : > { %3462 = vmatpush1.bf16.msra.mxu1 %v3975_v37  ;;  %v2133_v39 = vsel %vm364_vm0, %v2131_v63, %v2132_v58  ;;  %v2135_v40 = vsel %vm364_vm0, %v2132_v58, %v2134_v55 }
  0xf2   : > { %3455 = vmatprep.subr.bf16.mxu1 %v3976_v62 }
  0xf5   : > { %3463 = vmatpush1.bf16.msra.mxu1 %v3977_v60 }
  0xf6   : > { %3456 = vmatprep.subr.bf16.mxu1 %v3978_v10 }
  0xf7   : > { %1290 = vmatmul.mubr.bf16.gmra.mrb[8].mxu1 %v4206_v12  ;;  %2329 = vmatmul.mubr.bf16.gmra.mrb[24].mxu0 %v4578_v56  ;;  %v2138_v12 = vpack.c.bf16 %v2135_v40, %v2133_v39 }
  0xf8   : > { %1299 = vmatprep.mubr.bf16.mxu1 %v3994_v2  ;;  %2338 = vmatprep.mubr.bf16.mxu0 %v3994_v2 }
  0xf9   : > { %3464 = vmatpush1.bf16.msra.mxu1 %v3979_v25 }
  0xfa   : > { %3457 = vmatprep.subr.bf16.mxu1 %v3980_v31 }
  0xfd   : > { %3465 = vmatpush1.bf16.msra.mxu1 %v3981_v41 }
  0xfe   : > { %3458 = vmatprep.subr.bf16.mxu1 %v3982_v42 }
  0xff   : > { %1300 = vmatmul.mubr.bf16.gmra.mrb[12].mxu1 %v4245_v30  ;;  %2339 = vmatmul.mubr.bf16.gmra.mrb[28].mxu0 %v2138_v12 }
 0x100   : > { %1309 = vmatprep.mubr.bf16.mxu1 %v3994_v2  ;;  %2518 = vmatprep.mubr.bf16.mxu0 %v3994_v2 }
 0x101   : > { %3466 = vmatpush1.bf16.msra.mxu1 %v3983_v49 }
 0x102   : > { %3459 = vmatprep.subr.bf16.mxu1 %v3984_v50 }
 0x105   : > { %3467 = vmatpush1.bf16.msra.mxu1 %v3985_v54 }
 0x107   : > { %1310 = vmatmul.mubr.bf16.gmra.mrb[16].mxu1 %v4323_v11  ;;  %2519 = vmatmul.mubr.bf16.vlgmr.msra.gmra.mrb[0].mxu0 %v4404_v57 }
 0x108   : > { %1319 = vmatprep.mubr.bf16.mxu1 %v3994_v2  ;;  %2528 = vmatprep.mubr.bf16.mxu0 %v3994_v2 }
 0x10f   : > { %1320 = vmatmul.mubr.bf16.gmra.mrb[20].mxu1 %v4370_v38  ;;  %2529 = vmatmul.mubr.bf16.gmra.mrb[4].mxu0 %v4451_v29 }
 0x110   : > { %1329 = vmatprep.mubr.bf16.mxu1 %v3994_v2  ;;  %2538 = vmatprep.mubr.bf16.mxu0 %v3994_v2 }
 0x117   : > { %1330 = vmatmul.mubr.bf16.gmra.mrb[24].mxu1 %v4424_v8  ;;  %2539 = vmatmul.mubr.bf16.gmra.mrb[8].mxu0 %v4487_v52 }
 0x118   : > { %1339 = vmatprep.mubr.bf16.mxu1 %v3994_v2  ;;  %2548 = vmatprep.mubr.bf16.mxu0 %v3994_v2 }
 0x11f   : > { %1340 = vmatmul.mubr.bf16.gmra.mrb[28].mxu1 %v4548_v24  ;;  %2549 = vmatmul.mubr.bf16.gmra.mrb[12].mxu0 %v4513_v5 }
 0x120   : > { %1562 = vmatprep.mubr.bf16.mxu1 %v3994_v2  ;;  %2558 = vmatprep.mubr.bf16.mxu0 %v3994_v2 }
 0x127   : > { %1563 = vmatmul.mubr.bf16.vlgmr.msra.gmra.mrb[16].mxu1 %v4410_v3  ;;  %2559 = vmatmul.mubr.bf16.gmra.mrb[16].mxu0 %v4539_v53 }
 0x128   : > { %1572 = vmatprep.mubr.bf16.mxu1 %v3994_v2  ;;  %2568 = vmatprep.mubr.bf16.mxu0 %v3994_v2 }
 0x12f   : > { %1573 = vmatmul.mubr.bf16.gmra.mrb[20].mxu1 %v4449_v28  ;;  %2569 = vmatmul.mubr.bf16.gmra.mrb[20].mxu0 %v4571_v0 }
 0x130   : > { %1582 = vmatprep.mubr.bf16.mxu1 %v3994_v2  ;;  %2578 = vmatprep.mubr.bf16.mxu0 %v3994_v2 }
 0x137   : > { %1583 = vmatmul.mubr.bf16.gmra.mrb[24].mxu1 %v4485_v51  ;;  %2579 = vmatmul.mubr.bf16.gmra.mrb[24].mxu0 %v4595_v19 }
 0x138   : > { %1592 = vmatprep.mubr.bf16.mxu1 %v3994_v2  ;;  %2588 = vmatprep.mubr.bf16.mxu0 %v3994_v2 }
 0x13f   : > { %1593 = vmatmul.mubr.bf16.gmra.mrb[28].mxu1 %v4578_v56  ;;  %2589 = vmatmul.mubr.bf16.gmra.mrb[28].mxu0 %v2388_v15 }
 0x1ba   : > { %v1271_v30 = vpop.f32.mrb[0].mxu1 }
 0x1bb   : > { %v1273_v11 = vpop.f32.mrb[1].mxu1 }
 0x1bc   : > { %v1275_v38 = vpop.f32.mrb[2].mxu1 }
 0x1bd   : > { %v1277_v57 = vpop.f32.mrb[3].mxu1 }
 0x1c2   : > { %v1281_v3 = vpop.f32.mrb[4].mxu1 }
 0x1c3   : > { %v1283_v8 = vpop.f32.mrb[5].mxu1 }
 0x1c4   : > { %v1285_v28 = vpop.f32.mrb[6].mxu1 }
 0x1c5   : > { %v1287_v29 = vpop.f32.mrb[7].mxu1 }
 0x1ca   : > { %v1291_v51 = vpop.f32.mrb[8].mxu1 }
 0x1cb   : > { %v1293_v52 = vpop.f32.mrb[9].mxu1 }
 0x1cc   : > { %v1295_v5 = vpop.f32.mrb[10].mxu1 }
 0x1cd   : > { %v1297_v53 = vpop.f32.mrb[11].mxu1 }
 0x1d2   : > { %v4928_v2 = vpop.f32.mrb[12].mxu1 }
 0x1d3   : > { %v4930_v24 = vpop.f32.mrb[13].mxu1 }
 0x1d4   : > { %v4932_v0 = vpop.f32.mrb[14].mxu1 }
 0x1d5   : > { %v4934_v56 = vpop.f32.mrb[15].mxu1 }
 0x1da   : > { %v2520_v19 = vpop.f32.mrb[0].mxu0 }
 0x1db   : > { %v3468_v61 = vadd.f32 %v2520_v19, %v1271_v30  ;;  %v2522_v1 = vpop.f32.mrb[1].mxu0 }
 0x1dc   : > { %v3469_v4 = vadd.f32 %v2522_v1, %v1273_v11  ;;  %v2524_v44 = vpop.f32.mrb[2].mxu0 }
 0x1dd   : > { %v3470_v21 = vadd.f32 %v2524_v44, %v1275_v38  ;;  %v2526_v7 = vpop.f32.mrb[3].mxu0  ;;  %v2835_v16 = vmul.f32 %v3468_v61, %v3468_v61 }
 0x1de   : > { %v3471_v15 = vadd.f32 %v2526_v7, %v1277_v57  ;;  %v2718_v43 = vadd.f32 %v3469_v4, %v4939_v18 }
 0x1df   : > { %v3361_v13 = vpack.c.bf16 %v3470_v21, %v3468_v61  ;;  %v2814_v20 = vadd.f32 %v3470_v21, %v3468_v61  ;;  %v2836_v59 = vmul.f32 %v3470_v21, %v3470_v21 }
 0x1e0   : > { %v2719_v48 = vadd.f32 %v3471_v15, %v4939_v18 }
 0x1e1   : > { %3362 = vst [vmem:[%s4944_s13] sm:$0xff] %v3361_v13   ;;  %v2851_v27 = vadd.f32 %v2836_v59, %v2835_v16 }
 0x1e2   : > { %v3401_v45 = vpack.c.bf16 %v2719_v48, %v2718_v43  ;;  %v2530_v23 = vpop.f32.mrb[4].mxu0 }
 0x1e3   : > { %v3472_v35 = vadd.f32 %v2530_v23, %v1281_v3  ;;  %v2532_v46 = vpop.f32.mrb[5].mxu0 }
 0x1e4   : > { %3402 = vst [vmem:[%s4952_s16] sm:$0xff] %v3401_v45   ;;  %v3473_v26 = vadd.f32 %v2532_v46, %v1283_v8  ;;  %v2534_v47 = vpop.f32.mrb[6].mxu0 }
 0x1e5   : > { %v2815_v32 = vadd.f32 %v3472_v35, %v2814_v20  ;;  %v2837_v33 = vmul.f32 %v3472_v35, %v3472_v35  ;;  %v3474_v14 = vadd.f32 %v2534_v47, %v1285_v28  ;;  %v2536_v6 = vpop.f32.mrb[7].mxu0 }
 0x1e6   : > { %v3475_v9 = vadd.f32 %v2536_v6, %v1287_v29  ;;  %v2720_v37 = vadd.f32 %v3473_v26, %v4939_v18 }
 0x1e7   : > { %v2852_v17 = vadd.f32 %v2851_v27, %v2837_v33  ;;  %v3366_v22 = vpack.c.bf16 %v3474_v14, %v3472_v35  ;;  %v2816_v34 = vadd.f32 %v3474_v14, %v2815_v32  ;;  %v2838_v36 = vmul.f32 %v3474_v14, %v3474_v14 }
 0x1e8   : > { %v2721_v62 = vadd.f32 %v3475_v9, %v4939_v18 }
 0x1e9   : > { %3438 = vst [vmem:[%s4944_s13 + $0x8] sm:$0xff] %v3366_v22   ;;  %v2853_v63 = vadd.f32 %v2852_v17, %v2838_v36 }
 0x1ea   : > { %v3406_v58 = vpack.c.bf16 %v2721_v62, %v2720_v37  ;;  %v2540_v55 = vpop.f32.mrb[8].mxu0 }
 0x1eb   : > { %v3476_v60 = vadd.f32 %v2540_v55, %v1291_v51  ;;  %v2542_v10 = vpop.f32.mrb[9].mxu0 }
 0x1ec   : > { %3445 = vst [vmem:[%s4952_s16 + $0x8] sm:$0xff] %v3406_v58   ;;  %v3477_v39 = vadd.f32 %v2542_v10, %v1293_v52  ;;  %v2544_v40 = vpop.f32.mrb[10].mxu0 }
 0x1ed   : > { %v2817_v25 = vadd.f32 %v3476_v60, %v2816_v34  ;;  %v2839_v31 = vmul.f32 %v3476_v60, %v3476_v60  ;;  %v3478_v12 = vadd.f32 %v2544_v40, %v1295_v5  ;;  %v2546_v41 = vpop.f32.mrb[11].mxu0 }
 0x1ee   : > { %v3479_v42 = vadd.f32 %v2546_v41, %v1297_v53  ;;  %v2722_v11 = vadd.f32 %v3477_v39, %v4939_v18 }
 0x1ef   : > { %v2854_v49 = vadd.f32 %v2853_v63, %v2839_v31  ;;  %v3371_v50 = vpack.c.bf16 %v3478_v12, %v3476_v60  ;;  %v2818_v54 = vadd.f32 %v3478_v12, %v2817_v25  ;;  %v2840_v30 = vmul.f32 %v3478_v12, %v3478_v12 }
 0x1f0   : > { %v2723_v38 = vadd.f32 %v3479_v42, %v4939_v18 }
 0x1f1   : > { %3439 = vst [vmem:[%s4944_s13 + $0x10] sm:$0xff] %v3371_v50   ;;  %v2855_v57 = vadd.f32 %v2854_v49, %v2840_v30 }
 0x1f2   : > { %v3411_v3 = vpack.c.bf16 %v2723_v38, %v2722_v11  ;;  %v2550_v8 = vpop.f32.mrb[12].mxu0 }
 0x1f3   : > { %v3480_v28 = vadd.f32 %v2550_v8, %v4928_v2  ;;  %v2552_v29 = vpop.f32.mrb[13].mxu0 }
 0x1f4   : > { %3446 = vst [vmem:[%s4952_s16 + $0x10] sm:$0xff] %v3411_v3   ;;  %v3481_v51 = vadd.f32 %v2552_v29, %v4930_v24  ;;  %v2554_v52 = vpop.f32.mrb[14].mxu0 }
 0x1f5   : > { %v2819_v5 = vadd.f32 %v3480_v28, %v2818_v54  ;;  %v2841_v53 = vmul.f32 %v3480_v28, %v3480_v28  ;;  %v3482_v19 = vadd.f32 %v2554_v52, %v4932_v0  ;;  %v2556_v61 = vpop.f32.mrb[15].mxu0 }
 0x1f6   : > { %v3483_v1 = vadd.f32 %v2556_v61, %v4934_v56  ;;  %v2724_v2 = vadd.f32 %v3481_v51, %v4939_v18 }
 0x1f7   : > { %v2856_v4 = vadd.f32 %v2855_v57, %v2841_v53  ;;  %v3376_v44 = vpack.c.bf16 %v3482_v19, %v3480_v28  ;;  %v2820_v21 = vadd.f32 %v3482_v19, %v2819_v5  ;;  %v2842_v7 = vmul.f32 %v3482_v19, %v3482_v19 }
 0x1f8   : > { %v2725_v15 = vadd.f32 %v3483_v1, %v4939_v18 }
 0x1f9   : > { %3440 = vst [vmem:[%s4944_s13 + $0x18] sm:$0xff] %v3376_v44   ;;  %v2857_v16 = vadd.f32 %v2856_v4, %v2842_v7 }
 0x1fa   : > { %v3416_v24 = vpack.c.bf16 %v2725_v15, %v2724_v2  ;;  %v1564_v13 = vpop.f32.mrb[16].mxu1  ;;  %v2560_v20 = vpop.f32.mrb[16].mxu0 }
 0x1fb   : > { %v3484_v59 = vadd.f32 %v2560_v20, %v1564_v13  ;;  %v1566_v43 = vpop.f32.mrb[17].mxu1  ;;  %v2562_v0 = vpop.f32.mrb[17].mxu0 }
 0x1fc   : > { %3447 = vst [vmem:[%s4952_s16 + $0x18] sm:$0xff] %v3416_v24   ;;  %v3485_v48 = vadd.f32 %v2562_v0, %v1566_v43  ;;  %v1568_v56 = vpop.f32.mrb[18].mxu1  ;;  %v2564_v27 = vpop.f32.mrb[18].mxu0 }
 0x1fd   : > { %v2821_v45 = vadd.f32 %v3484_v59, %v2820_v21  ;;  %v2843_v23 = vmul.f32 %v3484_v59, %v3484_v59  ;;  %v3486_v35 = vadd.f32 %v2564_v27, %v1568_v56  ;;  %v1570_v46 = vpop.f32.mrb[19].mxu1  ;;  %v2566_v26 = vpop.f32.mrb[19].mxu0 }
 0x1fe   : > { %v3487_v47 = vadd.f32 %v2566_v26, %v1570_v46  ;;  %v2726_v9 = vadd.f32 %v3485_v48, %v4939_v18 }
 0x1ff   : > { %v2858_v32 = vadd.f32 %v2857_v16, %v2843_v23  ;;  %v3381_v33 = vpack.c.bf16 %v3486_v35, %v3484_v59  ;;  %v2822_v14 = vadd.f32 %v3486_v35, %v2821_v45  ;;  %v2844_v6 = vmul.f32 %v3486_v35, %v3486_v35 }
 0x200   : > { %v2727_v17 = vadd.f32 %v3487_v47, %v4939_v18 }
 0x201   : > { %3441 = vst [vmem:[%s4944_s13 + $0x20] sm:$0xff] %v3381_v33   ;;  %v2859_v22 = vadd.f32 %v2858_v32, %v2844_v6 }
 0x202   : > { %v3421_v34 = vpack.c.bf16 %v2727_v17, %v2726_v9  ;;  %v1574_v36 = vpop.f32.mrb[20].mxu1  ;;  %v2570_v37 = vpop.f32.mrb[20].mxu0 }
 0x203   : > { %v3488_v62 = vadd.f32 %v2570_v37, %v1574_v36  ;;  %v1576_v63 = vpop.f32.mrb[21].mxu1  ;;  %v2572_v58 = vpop.f32.mrb[21].mxu0 }
 0x204   : > { %3448 = vst [vmem:[%s4952_s16 + $0x20] sm:$0xff] %v3421_v34   ;;  %v3489_v55 = vadd.f32 %v2572_v58, %v1576_v63  ;;  %v1578_v60 = vpop.f32.mrb[22].mxu1  ;;  %v2574_v10 = vpop.f32.mrb[22].mxu0 }
 0x205   : > { %v2823_v39 = vadd.f32 %v3488_v62, %v2822_v14  ;;  %v2845_v40 = vmul.f32 %v3488_v62, %v3488_v62  ;;  %v3490_v25 = vadd.f32 %v2574_v10, %v1578_v60  ;;  %v1580_v31 = vpop.f32.mrb[23].mxu1  ;;  %v2576_v12 = vpop.f32.mrb[23].mxu0 }
 0x206   : > { %v3491_v41 = vadd.f32 %v2576_v12, %v1580_v31  ;;  %v2728_v30 = vadd.f32 %v3489_v55, %v4939_v18 }
 0x207   : > { %v2860_v42 = vadd.f32 %v2859_v22, %v2845_v40  ;;  %v3386_v49 = vpack.c.bf16 %v3490_v25, %v3488_v62  ;;  %v2824_v50 = vadd.f32 %v3490_v25, %v2823_v39  ;;  %v2846_v54 = vmul.f32 %v3490_v25, %v3490_v25 }
 0x208   : > { %v2729_v11 = vadd.f32 %v3491_v41, %v4939_v18 }
 0x209   : > { %3442 = vst [vmem:[%s4944_s13 + $0x28] sm:$0xff] %v3386_v49   ;;  %v2861_v38 = vadd.f32 %v2860_v42, %v2846_v54 }
 0x20a   : > { %v3426_v57 = vpack.c.bf16 %v2729_v11, %v2728_v30  ;;  %v1584_v3 = vpop.f32.mrb[24].mxu1  ;;  %v2580_v8 = vpop.f32.mrb[24].mxu0 }
 0x20b   : > { %v3492_v28 = vadd.f32 %v2580_v8, %v1584_v3  ;;  %v1586_v29 = vpop.f32.mrb[25].mxu1  ;;  %v2582_v51 = vpop.f32.mrb[25].mxu0 }
 0x20c   : > { %3449 = vst [vmem:[%s4952_s16 + $0x28] sm:$0xff] %v3426_v57   ;;  %v3493_v52 = vadd.f32 %v2582_v51, %v1586_v29  ;;  %v1588_v5 = vpop.f32.mrb[26].mxu1  ;;  %v2584_v53 = vpop.f32.mrb[26].mxu0 }
 0x20d   : > { %v2825_v19 = vadd.f32 %v3492_v28, %v2824_v50  ;;  %v2847_v61 = vmul.f32 %v3492_v28, %v3492_v28  ;;  %v3494_v1 = vadd.f32 %v2584_v53, %v1588_v5  ;;  %v1590_v4 = vpop.f32.mrb[27].mxu1  ;;  %v2586_v44 = vpop.f32.mrb[27].mxu0 }
 0x20e   : > { %v3495_v21 = vadd.f32 %v2586_v44, %v1590_v4  ;;  %v2730_v24 = vadd.f32 %v3493_v52, %v4939_v18 }
 0x20f   : > { %v2862_v7 = vadd.f32 %v2861_v38, %v2847_v61  ;;  %v3391_v2 = vpack.c.bf16 %v3494_v1, %v3492_v28  ;;  %v2826_v15 = vadd.f32 %v3494_v1, %v2825_v19  ;;  %v2848_v16 = vmul.f32 %v3494_v1, %v3494_v1 }
 0x210   : > { %v2731_v13 = vadd.f32 %v3495_v21, %v4939_v18 }
 0x211   : > { %3443 = vst [vmem:[%s4944_s13 + $0x30] sm:$0xff] %v3391_v2   ;;  %v2863_v20 = vadd.f32 %v2862_v7, %v2848_v16 }
 0x212   : > { %v3431_v59 = vpack.c.bf16 %v2731_v13, %v2730_v24  ;;  %v1594_v43 = vpop.f32.mrb[28].mxu1  ;;  %v2590_v0 = vpop.f32.mrb[28].mxu0 }
 0x213   : > { %v3496_v48 = vadd.f32 %v2590_v0, %v1594_v43  ;;  %v1596_v56 = vpop.f32.mrb[29].mxu1  ;;  %v2592_v27 = vpop.f32.mrb[29].mxu0 }
 0x214   : > { %3450 = vst [vmem:[%s4952_s16 + $0x30] sm:$0xff] %v3431_v59   ;;  %v3497_v45 = vadd.f32 %v2592_v27, %v1596_v56  ;;  %v1598_v23 = vpop.f32.mrb[30].mxu1  ;;  %v2594_v35 = vpop.f32.mrb[30].mxu0 }
 0x215   : > { %v2827_v46 = vadd.f32 %v3496_v48, %v2826_v15  ;;  %v2849_v26 = vmul.f32 %v3496_v48, %v3496_v48  ;;  %v3498_v47 = vadd.f32 %v2594_v35, %v1598_v23  ;;  %v1600_v32 = vpop.f32.mrb[31].mxu1  ;;  %v2596_v33 = vpop.f32.mrb[31].mxu0 }
 0x216   : > { %v3499_v14 = vadd.f32 %v2596_v33, %v1600_v32  ;;  %v2732_v34 = vadd.f32 %v3497_v45, %v4939_v18 }
 0x217   : > { %v2864_v6 = vadd.f32 %v2863_v20, %v2849_v26  ;;  %v3396_v9 = vpack.c.bf16 %v3498_v47, %v3496_v48  ;;  %v2828_v17 = vadd.f32 %v3498_v47, %v2827_v46  ;;  %v2850_v22 = vmul.f32 %v3498_v47, %v3498_v47 }
 0x218   : > { %v2733_v36 = vadd.f32 %v3499_v14, %v4939_v18 }
 0x219   : > { %3444 = vst [vmem:[%s4944_s13 + $0x38] sm:$0xff] %v3396_v9   ;;  %v2829_v37 = vrot.slane %v2828_v17, 4  ;;  %v2865_v62 = vadd.f32 %v2864_v6, %v2850_v22 }
 0x21a   : > { %v3436_v63 = vpack.c.bf16 %v2733_v36, %v2732_v34 }
 0x21b   : > { %v2830_v58 = vadd.f32 %v2829_v37, %v2828_v17  ;;  %v2866_v55 = vrot.slane %v2865_v62, 4 }
 0x21c   : > { %3451 = vst [vmem:[%s4952_s16 + $0x38] sm:$0xff] %v3436_v63  }
 0x21d   : > { %v2831_v60 = vrot.slane %v2830_v58, 2  ;;  %v2867_v10 = vadd.f32 %v2866_v55, %v2865_v62 }
 0x21f   : > { %v2832_v39 = vadd.f32 %v2831_v60, %v2830_v58  ;;  %v2868_v40 = vrot.slane %v2867_v10, 2 }
 0x221   : > { %v2833_v25 = vrot.slane %v2832_v39, 1  ;;  %v2869_v31 = vadd.f32 %v2868_v40, %v2867_v10 }
 0x223   : > { %v2870_v12 = vrot.slane %v2869_v31, 1  ;;  %v2834_v41 = vadd.f32 %v2833_v25, %v2832_v39 }
 0x225   : > { %v2871_v18 = vadd.f32 %v2870_v12, %v2869_v31 }
 0x227   : > { %v2873_v42 = vsel %vm2872_vm2, %v2834_v41, %v2871_v18 }
 0x228   : > { %v2875_v49 = vsel %vm2874_vm3, %v2873_v42, 0.0 }
 0x229   : > { %2876 = vst [vmem:[%s254_s21] sm:$0xff] %v2875_v49 }
 0x22a PF: > { %s16_s18 = sadd.s32 1, %s3992_s18  }
 0x22b   : > { %p13_p6 = scmp.ge.s32.totalorder %s16_s18, 6  }
 0x22d   :  { %15 = sbr.rel (!%p13_p6) target bundleno = 1 (0x1), region = 94 }

// kernel: resnet18_block.4
= control target key start
LH: loop header
LB: loop body
LE: loop exit
PB: predicated region body
PF: predicated region fallthrough
CT: control target
= control target key end

     0   :  { %s3620_s18 = smov 0   ;;  %s4581_s0 = inlined_call_operand.vmem [shape: bf16[40,18,128], index: 0, kind: input, shape index: {}]   ;;  %s4582_s1 = inlined_call_operand.vmem [shape: bf16[9,128,128], index: 1, kind: input, shape index: {}]   ;;  %s4583_s2 = inlined_call_operand.vmem [shape: f32[1,128], index: 2, kind: input, shape index: {}]   ;;  %s4584_s3 = inlined_call_operand.vmem [shape: f32[1,128], index: 3, kind: input, shape index: {}]   ;;  %s4585_s4 = inlined_call_operand.vmem [shape: bf16[512,128], index: 4, kind: output, shape index: {0}]   ;;  %s4586_s5 = inlined_call_operand.vmem [shape: f32[32,128], index: 5, kind: output, shape index: {1}]  }
   0x1 LB: > { %s3626_s19 = sadd.s32 4294967295, %s3587_s18   ;;  %p2508_p0 = scmp.ge.s32.totalorder %s3587_s18, 1  ;;  %s3587_s18 = sphi %s3620_s18, %s16_s18  }
   0x2   : > { %p192_p1 = scmp.lt.s32.totalorder %s3587_s18, 5 }
   0x4   : > { %p193_p2 = pnand %p2508_p0, %p192_p1 }
   0x5   : > { %v3507_v0 = vld [vmem:[%s4582_s1 + $0x40] sm:$0xff] (!%p193_p2)   ;;  %s225_s22 = smul.u32 (!%p193_p2), 10, %s3626_s19  ;;  %v3509_v2 = vld [vmem:[%s4582_s1 + $0x48] sm:$0xff] (!%p193_p2)   ;;  %s244_s29 = ssub.s32 (!%p193_p2), 0, %s3626_s19  ;;  %v3511_v4 = vld [vmem:[%s4582_s1 + $0x50] sm:$0xff] (!%p193_p2)   ;;  %v419_v6 = vlaneseq (!%p193_p2)  ;;  %vm551_vm5 = vcmask (!%p193_p2), 1046528  }
   0x6   : > { %196 = sbr.rel (%p193_p2) target bundleno = 439 (0x1b7), region = 36  ;;  %v3508_v1 = vld [vmem:[%s4582_s1 + $0x100] sm:$0xff] (!%p193_p2)   ;;  %3065 = vmatprep.subr.bf16.mxu1 (!%p193_p2), %v3507_v0  ;;  %v3510_v3 = vld [vmem:[%s4582_s1 + $0x108] sm:$0xff] (!%p193_p2)   ;;  %v3512_v5 = vld [vmem:[%s4582_s1 + $0x110] sm:$0xff] (!%p193_p2)   ;;  %p243_p4 = scmp.lt.s32.totalorder (!%p193_p2), %s3626_s19, 0  ;;  %vm923_vm6 = vcmask (!%p193_p2), 1045504  }
   0x7   : > { %p226_p3 = scmp.lt.s32.totalorder (!%p193_p2), %s225_s22, 39  ;;  %3193 = vmatprep.subr.bf16.mxu0 (!%p193_p2), %v3508_v1  ;;  %3066 = vmatpush3.bf16.msra.mxu1 (!%p193_p2), %v3507_v0  ;;  %s2513_s9 = smin.u32 (!%p193_p2), %s3626_s19, %s244_s29  ;;  %v3513_v7 = vld [vmem:[%s4582_s1 + $0x58] sm:$0xff] (!%p193_p2)   ;;  %v3658_v9 = vshrl.u32 (!%p193_p2), %v419_v6, 7  ;;  %v3515_v10 = vld [vmem:[%s4582_s1 + $0x60] sm:$0xff] (!%p193_p2)   ;;  %v3517_v13 = vld [vmem:[%s4582_s1 + $0x68] sm:$0xff] (!%p193_p2)   ;;  %vm3589_vm11 = vmmov (!%p193_p2), 1  }
   0x8   : > { %3194 = vmatpush3.bf16.msra.mxu0 (!%p193_p2), %v3508_v1  ;;  %3067 = vmatprep.subr.bf16.mxu1 (!%p193_p2), %v3509_v2  ;;  %s246_s12 = sand.u32 (!%p193_p2), 1, %s2513_s9   ;;  %v3514_v8 = vld [vmem:[%s4582_s1 + $0x118] sm:$0xff] (!%p193_p2)   ;;  %v3516_v11 = vld [vmem:[%s4582_s1 + $0x120] sm:$0xff] (!%p193_p2)   ;;  %v3518_v17 = vld [vmem:[%s4582_s1 + $0x128] sm:$0xff] (!%p193_p2)   ;;  %s2510_s28 = sshll.u32 (!%p193_p2), %s3626_s19, 4 }
   0x9   : > { %3195 = vmatprep.subr.bf16.mxu0 (!%p193_p2), %v3510_v3  ;;  %s247_s14 = ssub.s32 (!%p193_p2), 0, %s246_s12  ;;  %v3674_v12 = vadd.s32 (!%p193_p2), 16, %v3658_v9  ;;  %v3685_v16 = vld [vmem:[%s4583_s2] ss:$0 sm:$0xff] (!%p193_p2)  ;;  %vm423_vm0 = vcmp.eq.s32.totalorder (!%p193_p2), %v3658_v9, 0  ;;  %v3519_v31 = vld [vmem:[%s4582_s1 + $0x70] sm:$0xff] (!%p193_p2)  }
   0xa   : > { %v3696_v22 = vld [vmem:[%s4584_s3] ss:$0 sm:$0xff] (!%p193_p2)  ;;  %v3520_v32 = vld [vmem:[%s4582_s1 + $0x130] sm:$0xff] (!%p193_p2)   ;;  %v3521_v51 = vld [vmem:[%s4582_s1 + $0x78] sm:$0xff] (!%p193_p2)   ;;  %p233_p8 = scmp.lt.s32.totalorder (!%p193_p2), %s2510_s28, 63  ;;  %p238_p9 = scmp.lt.s32.totalorder (!%p193_p2), %s3626_s19, 3 }
   0xb   : > { %3068 = vmatpush3.bf16.msra.mxu1 (!%p193_p2), %v3509_v2  ;;  %vm428_vm1 = vcmp.eq.s32.totalorder (!%p193_p2), %v3674_v12, 17  ;;  %v3522_v55 = vld [vmem:[%s4582_s1 + $0x138] sm:$0xff] (!%p193_p2)   ;;  %v3523_v1 = vld [vmem:[%s4582_s1] sm:$0xff] (!%p193_p2)   ;;  %vm4089_vm10 = vmneg (!%p193_p2), %vm423_vm0 }
   0xc   : > { %3196 = vmatpush3.bf16.msra.mxu0 (!%p193_p2), %v3510_v3  ;;  %3069 = vmatprep.subr.bf16.mxu1 (!%p193_p2), %v3511_v4  ;;  %v3539_v40 = vld [vmem:[%s4582_s1 + $0x80] sm:$0xff] (!%p193_p2)   ;;  %vm4118_vm12 = vmpackc.low (!%p193_p2), %vm3589_vm11, %vm4089_vm10 }
   0xd   : > { %s4622_s22 = smov (!%p226_p3, %s225_s22), 39  ;;  %3197 = vmatprep.subr.bf16.mxu0 %v3512_v5  ;;  %s4624_s14 = smov (!%p243_p4, %s247_s14), %s246_s12 }
   0xe   : > { %s3497_s13 = smul.u32 12, %s4622_s22  ;;  %p2515_p5 = scmp.lt.s32.totalorder %s4624_s14, 0 }
   0xf   : > { %3070 = vmatpush3.bf16.msra.mxu1 %v3511_v4  ;;  %s253_s24 = sadd.s32 2, %s4624_s14  ;;  %s4628_s28 = smov (!%p233_p8, %s2510_s28), 63 }
  0x10   : > { %3198 = vmatpush3.bf16.msra.mxu0 %v3512_v5  ;;  %3071 = vmatprep.subr.bf16.mxu1 %v3513_v7  ;;  %s3666_s22 = scalar_lea.vmem %s4581_s0, %s3497_s13  ;;  %s4626_s24 = smov (!%p2515_p5, %s253_s24), %s4624_s14 }
  0x11   : > { %3199 = vmatprep.subr.bf16.mxu0 %v3514_v8  ;;  %p432_p6 = scmp.eq.s32.totalorder %s4626_s24, 0  ;;  %v2851_v14 = vld [vmem:[%s3666_s22] sm:$0xff]   ;;  %v257_v15 = vld [vmem:[%s3666_s22 + $0x8] sm:$0x1]  ;;  %v258_v21 = vld [vmem:[%s3666_s22 + $0xc] sm:$0xff]   ;;  %p442_p7 = scmp.eq.s32.totalorder %s4626_s24, 1 }
  0x12   : > { %v2852_v18 = vunpack.c.l.bf16 %v2851_v14  ;;  %v2853_v19 = vunpack.c.h.bf16 %v2851_v14  ;;  %v287_v20 = vunpack.c.l.bf16 %v257_v15  ;;  %v260_v23 = vld [vmem:[%s3666_s22 + $0x14] sm:$0x1]  ;;  %v288_v24 = vunpack.c.l.bf16 %v258_v21  ;;  %v2910_v30 = vld [vmem:[%s3666_s22 + $0x18] sm:$0xff]   ;;  %v263_v46 = vld [vmem:[%s3666_s22 + $0x20] sm:$0x1]  ;;  %s2511_s29 = sshll.u32 %s4628_s28, 2 }
  0x13   : > { %3072 = vmatpush3.bf16.msra.mxu1 %v3513_v7  ;;  %s433_s8 = scalar_select %p432_p6, 1, 0  ;;  %v289_v25 = vunpack.c.h.bf16 %v258_v21  ;;  %v290_v34 = vunpack.c.l.bf16 %v260_v23  ;;  %v2856_v45 = vunpack.c.l.bf16 %v2910_v30  ;;  %v2857_v50 = vunpack.c.h.bf16 %v2910_v30  ;;  %v266_v14 = vld [vmem:[%s3666_s22 + $0x2c] sm:$0x1]  ;;  %v2911_v15 = vld [vmem:[%s3666_s22 + $0x30] sm:$0xff]  }
  0x14   : > { %3200 = vmatpush3.bf16.msra.mxu0 %v3514_v8  ;;  %3073 = vmatprep.subr.bf16.mxu1 %v3515_v10  ;;  %v322_v26 = vmul.f32 %v2852_v18, %v3685_v16  ;;  %v323_v27 = vmul.f32 %v2853_v19, %v3685_v16  ;;  %v324_v28 = vmul.f32 %v3685_v16, %v287_v20  ;;  %v293_v62 = vunpack.c.l.bf16 %v263_v46  ;;  %v3793_v8 = vld [vmem:[%s4582_s1 + $0x140] sm:$0xff]   ;;  %s443_s15 = scalar_select %p442_p7, 1, 0 }
  0x15   : > { %3201 = vmatprep.subr.bf16.mxu0 %v3516_v11  ;;  %v434_v29 = vstv %s433_s8  ;;  %v325_v35 = vmul.f32 %v3685_v16, %v288_v24  ;;  %v326_v36 = vmul.f32 %v3685_v16, %v289_v25  ;;  %v327_v42 = vmul.f32 %v3685_v16, %v290_v34  ;;  %v3525_v34 = vld [vmem:[%s4582_s1 + $0x8] sm:$0xff]   ;;  %s4529_s7 = scalar_lea.vmem %s4585_s4, %s2511_s29  ;;  %s4630_s19 = smov (!%p238_p9, %s3626_s19), 3 }
  0x16   : > { %vm3709_vm2 = vcmp.eq.s32.totalorder %v434_v29, 1  ;;  %v3716_v37 = vadd.f32 %v3696_v22, %v322_v26  ;;  %v3719_v38 = vadd.f32 %v3696_v22, %v323_v27  ;;  %v361_v39 = vadd.f32 %v3696_v22, %v324_v28  ;;  %v269_v29 = vld [vmem:[%s3666_s22 + $0x38] sm:$0x1]  ;;  %s2512_s8 = sshll.u32 %s4630_s19, 3 }
  0x17   : > { %3074 = vmatpush3.bf16.msra.mxu1 %v3515_v10  ;;  %vm3726_vm3 = vmor %vm423_vm0, %vm3709_vm2  ;;  %v3740_v43 = vadd.f32 %v3696_v22, %v325_v35  ;;  %v363_v44 = vadd.f32 %v3696_v22, %v326_v36  ;;  %v364_v52 = vadd.f32 %v3696_v22, %v327_v42  ;;  %v328_v2 = vmul.f32 %v2856_v45, %v3685_v16  ;;  %v264_v10 = vld [vmem:[%s3666_s22 + $0x24] sm:$0xff]   ;;  %s241_s10 = scalar_lea.vmem %s4586_s5, %s2512_s8 }
  0x18   : > { %3202 = vmatpush3.bf16.msra.mxu0 %v3516_v11  ;;  %3075 = vmatprep.subr.bf16.mxu1 %v3517_v13  ;;  %vm3734_vm4 = vmor %vm428_vm1, %vm3709_vm2  ;;  %v389_v47 = vmax.f32 %v3716_v37, 0.0  ;;  %v390_v48 = vmax.f32 %v3719_v38, 0.0  ;;  %v391_v49 = vmax.f32 %v361_v39, 0.0  ;;  %v329_v3 = vmul.f32 %v2857_v50, %v3685_v16 }
  0x19   : > { %3203 = vmatprep.subr.bf16.mxu0 %v3518_v17  ;;  %v4593_v53 = vmax.f32 %v3740_v43, 0.0  ;;  %v3751_v54 = vmax.f32 %v363_v44, 0.0  ;;  %v394_v63 = vmax.f32 %v364_v52, 0.0  ;;  %v330_v19 = vmul.f32 %v3685_v16, %v293_v62  ;;  %v3527_v62 = vld [vmem:[%s4582_s1 + $0x10] sm:$0xff]   ;;  %vm2550_vm7 = vmneg %vm3709_vm2 }
  0x1a   : > { %v3760_v56 = vsel %vm3726_vm3, 0.0, %v389_v47  ;;  %v3766_v57 = vsel %vm3709_vm2, 0.0, %v390_v48  ;;  %v3770_v58 = vsel %vm3734_vm4, 0.0, %v391_v49  ;;  %v3806_v20 = vadd.f32 %v3696_v22, %v328_v2  ;;  %vm2551_vm8 = vmneg %vm3726_vm3 }
  0x1b   : > { %3076 = vmatpush3.bf16.msra.mxu1 %v3517_v13  ;;  %v552_v59 = vrot.slane %v3760_v56, 1  ;;  %v553_v60 = vrot.slane %v3766_v57, 1  ;;  %v555_v61 = vrot.slane %v3770_v58, 1  ;;  %v3779_v0 = vsel %vm423_vm0, 0.0, %v4593_v53  ;;  %vm4056_vm9 = vmpackc.low %vm2550_vm7, %vm2551_vm8 }
  0x1c   : > { %3204 = vmatpush3.bf16.msra.mxu0 %v3518_v17  ;;  %3077 = vmatprep.subr.bf16.mxu1 %v3519_v31  ;;  %v557_v6 = vrot.slane %v3779_v0, 1  ;;  %v558_v7 = vrot.slane %v3751_v54, 1  ;;  %v3798_v13 = vsel %vm428_vm1, 0.0, %v394_v63  ;;  %v366_v21 = vadd.f32 %v3696_v22, %v329_v3 }
  0x1d   : > { %3205 = vmatprep.subr.bf16.mxu0 %v3520_v32  ;;  %v554_v4 = vsel %vm551_vm5, %v552_v59, %v553_v60  ;;  %v556_v5 = vsel %vm551_vm5, %v553_v60, %v555_v61  ;;  %v560_v18 = vrot.slane %v3798_v13, 1  ;;  %v294_v23 = vunpack.c.l.bf16 %v264_v10 }
  0x1e   : > { %v608_v11 = vpack.c.bf16 %v556_v5, %v554_v4  ;;  %v559_v17 = vsel %vm551_vm5, %v557_v6, %v558_v7  ;;  %v295_v24 = vunpack.c.h.bf16 %v264_v10  ;;  %v367_v26 = vadd.f32 %v3696_v22, %v330_v19  ;;  %v270_v4 = vld [vmem:[%s3666_s22 + $0x3c] sm:$0xff]  }
  0x1f   : > { %3078 = vmatpush3.bf16.msra.mxu1 %v3519_v31  ;;  %v561_v25 = vsel %vm551_vm5, %v558_v7, %v560_v18  ;;  %v296_v27 = vunpack.c.l.bf16 %v266_v14  ;;  %v2860_v28 = vunpack.c.l.bf16 %v2911_v15  ;;  %v4592_v31 = vmax.f32 %v3806_v20, 0.0  ;;  %v3526_v14 = vld [vmem:[%s4582_s1 + $0x148] sm:$0xff]   ;;  %v3529_v19 = vld [vmem:[%s4582_s1 + $0x18] sm:$0xff]  }
  0x20   : > { %3206 = vmatpush3.bf16.msra.mxu0 %v3520_v32  ;;  %3079 = vmatprep.subr.bf16.mxu1 %v3521_v51  ;;  %v609_v30 = vpack.c.bf16 %v561_v25, %v559_v17  ;;  %v3813_v32 = vmax.f32 %v366_v21, 0.0  ;;  %v331_v35 = vmul.f32 %v3685_v16, %v294_v23  ;;  %v397_v36 = vmax.f32 %v367_v26, 0.0  ;;  %v272_v21 = vld [vmem:[%s3666_s22 + $0x44] sm:$0x1] }
  0x21   : > { %3207 = vmatprep.subr.bf16.mxu0 %v3522_v55  ;;  %3081 = vmatprep.mubr.bf16.mxu1 %v608_v11  ;;  %v332_v39 = vmul.f32 %v3685_v16, %v295_v24  ;;  %v333_v41 = vmul.f32 %v3685_v16, %v296_v27  ;;  %v2861_v42 = vunpack.c.h.bf16 %v2911_v15  ;;  %v3826_v44 = vsel %vm423_vm0, 0.0, %v4592_v31  ;;  %v2912_v27 = vld [vmem:[%s3666_s22 + $0x48] sm:$0xff]  }
  0x22   : > { %3209 = vmatprep.mubr.bf16.mxu0 %v609_v30  ;;  %v563_v45 = vrot.slane %v3813_v32, 1  ;;  %v3830_v46 = vadd.f32 %v3696_v22, %v331_v35  ;;  %v299_v49 = vunpack.c.l.bf16 %v269_v29  ;;  %v3834_v50 = vsel %vm428_vm1, 0.0, %v397_v36 }
  0x23   : > { %3080 = vmatpush3.bf16.msra.mxu1 %v3521_v51  ;;  %v562_v51 = vrot.slane %v3826_v44, 1  ;;  %v369_v52 = vadd.f32 %v3696_v22, %v332_v39  ;;  %v565_v59 = vrot.slane %v3834_v50, 1  ;;  %v370_v60 = vadd.f32 %v3696_v22, %v333_v41 }
  0x24   : > { %3208 = vmatpush3.bf16.msra.mxu0 %v3522_v55  ;;  %3097 = vmatprep.subr.bf16.mxu1 %v3523_v1  ;;  %v929_v55 = vrot.slane %v3779_v0, 2  ;;  %v4590_v61 = vmax.f32 %v3830_v46, 0.0  ;;  %v335_v3 = vmul.f32 %v2861_v42, %v3685_v16  ;;  %v336_v10 = vmul.f32 %v3685_v16, %v299_v49  ;;  %v275_v42 = vld [vmem:[%s3666_s22 + $0x50] sm:$0x1] }
  0x25   : > { %3225 = vmatprep.subr.bf16.mxu0 %v3793_v8  ;;  %v564_v63 = vsel %vm551_vm5, %v562_v51, %v563_v45  ;;  %v3846_v2 = vmax.f32 %v369_v52, 0.0  ;;  %v566_v5 = vsel %vm551_vm5, %v563_v45, %v565_v59  ;;  %v400_v6 = vmax.f32 %v370_v60, 0.0 }
  0x26   : > { %3082 = vmatmul.mubr.bf16.vlgmr.msra.gmra.mrb[0].mxu1 %v609_v30  ;;  %v3856_v7 = vsel %vm423_vm0, 0.0, %v4590_v61  ;;  %v3859_v11 = vpack.c.bf16 %v566_v5, %v564_v63  ;;  %v372_v24 = vadd.f32 %v3696_v22, %v335_v3  ;;  %v373_v25 = vadd.f32 %v3696_v22, %v336_v10  ;;  %v3531_v3 = vld [vmem:[%s4582_s1 + $0x20] sm:$0xff]   ;;  %v276_v10 = vld [vmem:[%s3666_s22 + $0x54] sm:$0xff]  }
  0x27   : > { %3098 = vmatpush3.bf16.msra.mxu1 %v3523_v1  ;;  %v334_v1 = vmul.f32 %v2860_v28, %v3685_v16  ;;  %v567_v15 = vrot.slane %v3856_v7, 1  ;;  %v568_v17 = vrot.slane %v3846_v2, 1  ;;  %v3875_v23 = vsel %vm428_vm1, 0.0, %v400_v6 }
  0x28   : > { %3099 = vmatprep.subr.bf16.mxu1 %v3525_v34  ;;  %v300_v26 = vunpack.c.l.bf16 %v270_v4  ;;  %3210 = vmatmul.mubr.bf16.vlgmr.msra.gmra.mrb[0].mxu0 %v3859_v11  ;;  %v570_v29 = vrot.slane %v3875_v23, 1  ;;  %v3886_v35 = vmax.f32 %v372_v24, 0.0  ;;  %v403_v36 = vmax.f32 %v373_v25, 0.0 }
  0x29   : > { %v3867_v18 = vadd.f32 %v3696_v22, %v334_v1  ;;  %3085 = vmatprep.mubr.bf16.mxu1 %v3859_v11  ;;  %v569_v28 = vsel %vm551_vm5, %v567_v15, %v568_v17  ;;  %3226 = vmatpush3.bf16.msra.mxu0 %v3793_v8  ;;  %v302_v39 = vunpack.c.l.bf16 %v272_v21  ;;  %v3528_v8 = vld [vmem:[%s4582_s1 + $0x150] sm:$0xff]   ;;  %v2864_v52 = vunpack.c.l.bf16 %v2912_v27 }
  0x2a   : > { %v337_v41 = vmul.f32 %v3685_v16, %v300_v26  ;;  %3227 = vmatprep.subr.bf16.mxu0 %v3526_v14  ;;  %v571_v45 = vsel %vm551_vm5, %v568_v17, %v570_v29  ;;  %v3905_v60 = vsel %vm428_vm1, 0.0, %v403_v36  ;;  %v573_v1 = vrot.slane %v3886_v35, 1  ;;  %v3530_v17 = vld [vmem:[%s4582_s1 + $0x158] sm:$0xff]  }
  0x2b   : > { %3100 = vmatpush3.bf16.msra.mxu1 %v3525_v34  ;;  %v4589_v30 = vmax.f32 %v3867_v18, 0.0  ;;  %v301_v34 = vunpack.c.h.bf16 %v270_v4  ;;  %v3901_v59 = vpack.c.bf16 %v571_v45, %v569_v28  ;;  %v339_v4 = vmul.f32 %v3685_v16, %v302_v39 }
  0x2c   : > { %3101 = vmatprep.subr.bf16.mxu1 %v3527_v62  ;;  %v3915_v5 = vadd.f32 %v3696_v22, %v337_v41  ;;  %v2865_v21 = vunpack.c.h.bf16 %v2912_v27  ;;  %v305_v24 = vunpack.c.l.bf16 %v275_v42  ;;  %v340_v25 = vmul.f32 %v2864_v52, %v3685_v16 }
  0x2d   : > { %v3895_v49 = vsel %vm423_vm0, 0.0, %v4589_v30  ;;  %v338_v51 = vmul.f32 %v3685_v16, %v301_v34  ;;  %3228 = vmatpush3.bf16.msra.mxu0 %v3526_v14  ;;  %3213 = vmatprep.mubr.bf16.mxu0 %v3901_v59  ;;  %v376_v28 = vadd.f32 %v3696_v22, %v339_v4  ;;  %v278_v34 = vld [vmem:[%s3666_s22 + $0x5c] sm:$0x1]  ;;  %v306_v52 = vunpack.c.l.bf16 %v276_v10 }
  0x2e   : > { %v572_v63 = vrot.slane %v3895_v49, 1  ;;  %3086 = vmatmul.mubr.bf16.gmra.mrb[4].mxu1 %v3901_v59  ;;  %3229 = vmatprep.subr.bf16.mxu0 %v3528_v8  ;;  %v4588_v14 = vmax.f32 %v3915_v5, 0.0  ;;  %v341_v27 = vmul.f32 %v2865_v21, %v3685_v16  ;;  %v342_v39 = vmul.f32 %v3685_v16, %v305_v24 }
  0x2f   : > { %3102 = vmatpush3.bf16.msra.mxu1 %v3527_v62  ;;  %v575_v62 = vrot.slane %v3905_v60, 1  ;;  %v375_v6 = vadd.f32 %v3696_v22, %v338_v51  ;;  %v3937_v41 = vadd.f32 %v3696_v22, %v340_v25  ;;  %v406_v42 = vmax.f32 %v376_v28, 0.0 }
  0x30   : > { %3103 = vmatprep.subr.bf16.mxu1 %v3529_v19  ;;  %v574_v15 = vsel %vm551_vm5, %v572_v63, %v573_v1  ;;  %v3943_v45 = vsel %vm423_vm0, 0.0, %v4588_v14  ;;  %v308_v21 = vunpack.c.l.bf16 %v278_v34  ;;  %v343_v24 = vmul.f32 %v3685_v16, %v306_v52  ;;  %v3534_v14 = vld [vmem:[%s4582_s1 + $0x168] sm:$0xff]  }
  0x31   : > { %v576_v26 = vsel %vm551_vm5, %v573_v1, %v575_v62  ;;  %v3929_v29 = vmax.f32 %v375_v6, 0.0  ;;  %v577_v63 = vrot.slane %v3943_v45, 1  ;;  %v378_v1 = vadd.f32 %v3696_v22, %v341_v27  ;;  %3230 = vmatpush3.bf16.msra.mxu0 %v3528_v8  ;;  %v3532_v8 = vld [vmem:[%s4582_s1 + $0x160] sm:$0xff]  }
  0x32   : > { %v3932_v36 = vpack.c.bf16 %v576_v26, %v574_v15  ;;  %v379_v62 = vadd.f32 %v3696_v22, %v342_v39  ;;  %v4587_v4 = vmax.f32 %v3937_v41, 0.0  ;;  %v3957_v6 = vsel %vm428_vm1, 0.0, %v406_v42  ;;  %3231 = vmatprep.subr.bf16.mxu0 %v3530_v17  ;;  %v281_v39 = vld [vmem:[%s3666_s22 + $0x68] sm:$0x1] }
  0x33   : > { %3104 = vmatpush3.bf16.msra.mxu1 %v3529_v19  ;;  %v578_v51 = vrot.slane %v3929_v29, 1  ;;  %v3533_v19 = vld [vmem:[%s4582_s1 + $0x28] sm:$0xff]   ;;  %v307_v15 = vunpack.c.h.bf16 %v276_v10  ;;  %v580_v26 = vrot.slane %v3957_v6, 1  ;;  %v3962_v28 = vmax.f32 %v378_v1, 0.0 }
  0x34   : > { %3105 = vmatprep.subr.bf16.mxu1 %v3531_v3  ;;  %3214 = vmatmul.mubr.bf16.gmra.mrb[4].mxu0 %v3932_v36  ;;  %v409_v27 = vmax.f32 %v379_v62, 0.0  ;;  %v3972_v10 = vsel %vm423_vm0, 0.0, %v4587_v4  ;;  %v345_v42 = vmul.f32 %v3685_v16, %v308_v21  ;;  %v3977_v52 = vadd.f32 %v3696_v22, %v343_v24 }
  0x35   : > { %3089 = vmatprep.mubr.bf16.mxu1 %v3932_v36  ;;  %v579_v25 = vsel %vm551_vm5, %v577_v63, %v578_v51  ;;  %v344_v34 = vmul.f32 %v3685_v16, %v307_v15  ;;  %v2913_v63 = vld [vmem:[%s3666_s22 + $0x60] sm:$0xff]   ;;  %v581_v1 = vsel %vm551_vm5, %v578_v51, %v580_v26  ;;  %v582_v62 = vrot.slane %v3972_v10, 1  ;;  %v3535_v15 = vld [vmem:[%s4582_s1 + $0x30] sm:$0xff]   ;;  %3232 = vmatpush3.bf16.msra.mxu0 %v3530_v17 }
  0x36   : > { %v583_v4 = vrot.slane %v3962_v28, 1  ;;  %v3990_v21 = vpack.c.bf16 %v581_v1, %v579_v25  ;;  %v382_v26 = vadd.f32 %v3696_v22, %v345_v42  ;;  %3233 = vmatprep.subr.bf16.mxu0 %v3532_v8  ;;  %v4591_v30 = vmax.f32 %v3977_v52, 0.0 }
  0x37   : > { %3106 = vmatpush3.bf16.msra.mxu1 %v3531_v3  ;;  %v3983_v3 = vsel %vm428_vm1, 0.0, %v409_v27  ;;  %v381_v51 = vadd.f32 %v3696_v22, %v344_v34  ;;  %v2868_v61 = vunpack.c.l.bf16 %v2913_v63  ;;  %v2869_v17 = vunpack.c.h.bf16 %v2913_v63 }
  0x38   : > { %3107 = vmatprep.subr.bf16.mxu1 %v3533_v19  ;;  %v585_v24 = vrot.slane %v3983_v3, 1  ;;  %v584_v27 = vsel %vm551_vm5, %v582_v62, %v583_v4  ;;  %3217 = vmatprep.mubr.bf16.mxu0 %v3990_v21  ;;  %v412_v42 = vmax.f32 %v382_v26, 0.0  ;;  %v311_v1 = vunpack.c.l.bf16 %v281_v39  ;;  %v3537_v39 = vld [vmem:[%s4582_s1 + $0x38] sm:$0xff]  }
  0x39   : > { %3090 = vmatmul.mubr.bf16.gmra.mrb[8].mxu1 %v3990_v21  ;;  %v4003_v34 = vmax.f32 %v381_v51, 0.0  ;;  %v346_v63 = vmul.f32 %v2868_v61, %v3685_v16  ;;  %3234 = vmatpush3.bf16.msra.mxu0 %v3532_v8  ;;  %v930_v31 = vrot.slane %v3751_v54, 2  ;;  %v937_v0 = vrot.slane %v3834_v50, 2 }
  0x3a   : > { %v586_v25 = vsel %vm551_vm5, %v583_v4, %v585_v24  ;;  %v347_v4 = vmul.f32 %v2869_v17, %v3685_v16  ;;  %v4022_v24 = vsel %vm428_vm1, 0.0, %v412_v42  ;;  %3235 = vmatprep.subr.bf16.mxu0 %v3534_v14  ;;  %v932_v42 = vrot.slane %v3798_v13, 2  ;;  %v3538_v13 = vld [vmem:[%s4582_s1 + $0x178] sm:$0xff]  }
  0x3b   : > { %3108 = vmatpush3.bf16.msra.mxu1 %v3533_v19  ;;  %v4007_v62 = vpack.c.bf16 %v586_v25, %v584_v27  ;;  %v4013_v19 = vsel %vm423_vm0, 0.0, %v4591_v30  ;;  %v588_v26 = vrot.slane %v4003_v34, 1  ;;  %v348_v27 = vmul.f32 %v3685_v16, %v311_v1  ;;  %v3536_v25 = vld [vmem:[%s4582_s1 + $0x170] sm:$0xff]  }
  0x3c   : > { %3109 = vmatprep.subr.bf16.mxu1 %v3535_v15  ;;  %v587_v51 = vrot.slane %v4013_v19, 1  ;;  %v590_v61 = vrot.slane %v4022_v24, 1  ;;  %v4032_v8 = vadd.f32 %v3696_v22, %v346_v63  ;;  %v384_v17 = vadd.f32 %v3696_v22, %v347_v4 }
  0x3d   : > { %3218 = vmatmul.mubr.bf16.gmra.mrb[8].mxu0 %v4007_v62  ;;  %3093 = vmatprep.mubr.bf16.mxu1 %v4007_v62  ;;  %v385_v30 = vadd.f32 %v3696_v22, %v348_v27  ;;  %v4604_v50 = vmax.f32 %v3740_v43, 0.0  ;;  %vm2414_vm4 = vcmask 1041408  }
  0x3e   : > { %v589_v1 = vsel %vm551_vm5, %v587_v51, %v588_v26  ;;  %v591_v63 = vsel %vm551_vm5, %v588_v26, %v590_v61  ;;  %v413_v53 = vmax.f32 %v4032_v8, 0.0  ;;  %v4045_v4 = vmax.f32 %v384_v17, 0.0  ;;  %3236 = vmatpush3.bf16.msra.mxu0 %v3534_v14 }
  0x3f   : > { %3110 = vmatpush3.bf16.msra.mxu1 %v3535_v15  ;;  %v2553_v51 = vpack.c.bf16 %v390_v48, %v389_v47  ;;  %v4064_v26 = vpack.c.bf16 %v591_v63, %v589_v1  ;;  %v415_v27 = vmax.f32 %v385_v30, 0.0  ;;  %3237 = vmatprep.subr.bf16.mxu0 %v3536_v25  ;;  %v931_v47 = vsel %vm923_vm6, %v929_v55, %v930_v31 }
  0x40   : > { %3111 = vmatprep.subr.bf16.mxu1 %v3537_v39  ;;  %v4073_v33 = vsel %vm423_vm0, 0.0, %v413_v53  ;;  %v1349_v61 = vrot.slane %v4045_v4, 1  ;;  %v933_v48 = vsel %vm923_vm6, %v930_v31, %v932_v42  ;;  %v934_v14 = vrot.slane %v3826_v44, 2  ;;  %v3540_v31 = vld [vmem:[%s4582_s1 + $0x180] sm:$0xff]  }
  0x41   : > { %3221 = vmatprep.mubr.bf16.mxu0 %v4064_v26  ;;  %3094 = vmatmul.mubr.bf16.gmra.mrb[12].mxu1 %v4064_v26  ;;  %v4080_v37 = vsel %vm428_vm1, 0.0, %v415_v27  ;;  %v1348_v38 = vrot.slane %v4073_v33, 1  ;;  %v4103_v44 = vpack.c.bf16 %v933_v48, %v931_v47  ;;  %v939_v1 = vrot.slane %v3856_v7, 2 }
  0x42   : > { %v1351_v17 = vrot.slane %v4080_v37, 1  ;;  %3113 = vmatprep.mubr.msk.bf16.mxu1 %vm4056_vm9, %v2553_v51  ;;  %3238 = vmatpush3.bf16.msra.mxu0 %v3536_v25  ;;  %v4110_v63 = vpack.c.bf16 %v3751_v54, %v4604_v50  ;;  %v940_v15 = vrot.slane %v3846_v2, 2  ;;  %v942_v51 = vrot.slane %v3875_v23, 2  ;;  %v3541_v23 = vld [vmem:[%s4582_s1 + $0x88] sm:$0xff]  }
  0x43   : > { %3112 = vmatpush3.bf16.msra.mxu1 %v3537_v39  ;;  %v1350_v55 = vsel %vm551_vm5, %v1348_v38, %v1349_v61  ;;  %3239 = vmatprep.subr.bf16.mxu0 %v3538_v13  ;;  %v935_v39 = vrot.slane %v3813_v32, 2  ;;  %v4607_v7 = vmax.f32 %v3806_v20, 0.0  ;;  %v924_v54 = vrot.slane %v3760_v56, 2  ;;  %v282_v50 = vld [vmem:[%s3666_s22 + $0x6c] sm:$0xff]  }
  0x44   : > { %3129 = vmatprep.subr.bf16.mxu1 %v3539_v40  ;;  %v1352_v42 = vsel %vm551_vm5, %v1349_v61, %v1351_v17  ;;  %v925_v61 = vrot.slane %v3766_v57, 2  ;;  %v927_v38 = vrot.slane %v3770_v58, 2  ;;  %v941_v56 = vsel %vm923_vm6, %v939_v1, %v940_v15  ;;  %v3542_v58 = vld [vmem:[%s4582_s1 + $0x188] sm:$0xff]  }
  0x45   : > { %v4112_v25 = vpack.c.bf16 %v1352_v42, %v1350_v55  ;;  %v4125_v43 = vpack.c.bf16 %v3813_v32, %v4607_v7  ;;  %v936_v20 = vsel %vm923_vm6, %v934_v14, %v935_v39  ;;  %v938_v32 = vsel %vm923_vm6, %v935_v39, %v937_v0 }
  0x46   : > { %3240 = vmatpush3.bf16.msra.mxu0 %v3538_v13  ;;  %v943_v47 = vsel %vm923_vm6, %v940_v15, %v942_v51  ;;  %v4148_v57 = vpack.c.bf16 %v938_v32, %v936_v20  ;;  %v3543_v13 = vld [vmem:[%s4582_s1 + $0x90] sm:$0xff]   ;;  %v945_v48 = vrot.slane %v3886_v35, 2  ;;  %v947_v30 = vrot.slane %v3905_v60, 2 }
  0x47   : > { %3222 = vmatmul.mubr.bf16.gmra.mrb[12].mxu0 %v4112_v25  ;;  %3257 = vmatprep.subr.bf16.mxu0 %v3540_v31  ;;  %v4159_v14 = vpack.c.bf16 %v943_v47, %v941_v56  ;;  %v4608_v17 = vmax.f32 %v3830_v46, 0.0  ;;  %v4167_v55 = vsel %vm923_vm6, %v924_v54, %v925_v61  ;;  %v4170_v42 = vsel %vm923_vm6, %v925_v61, %v927_v38  ;;  %v3546_v56 = vld [vmem:[%s4582_s1 + $0x198] sm:$0xff]   ;;  %v3547_v47 = vld [vmem:[%s4582_s1 + $0xa0] sm:$0xff]  }
  0x48   : > { %3241 = vmatprep.mubr.bf16.mxu0 %v4103_v44  ;;  %v949_v39 = vrot.slane %v3943_v45, 2  ;;  %v952_v1 = vrot.slane %v3957_v6, 2  ;;  %v980_v60 = vpack.c.bf16 %v4170_v42, %v4167_v55  ;;  %v4609_v46 = vmax.f32 %v3867_v18, 0.0  ;;  %v3545_v6 = vld [vmem:[%s4582_s1 + $0x98] sm:$0xff]  }
  0x49   : > { %3114 = vmatmul.mubr.msk.bf16.vlgmr.msra.gmra.mrb[0].mxu1 %vm4118_vm12, %v4110_v63  ;;  %v4164_v0 = vpack.c.bf16 %v3846_v2, %v4608_v17  ;;  %v312_v15 = vunpack.c.l.bf16 %v282_v50  ;;  %v313_v51 = vunpack.c.h.bf16 %v282_v50  ;;  %v444_v7 = vstv %s443_s15  ;;  %v3554_v55 = vld [vmem:[%s4582_s1 + $0x1b8] sm:$0xff]  }
  0x4a   : > { %3130 = vmatpush3.bf16.msra.mxu1 %v3539_v40  ;;  %3117 = vmatprep.mubr.msk.bf16.mxu1 %vm4118_vm12, %v4125_v43  ;;  %v944_v40 = vrot.slane %v3895_v49, 2  ;;  %v950_v49 = vrot.slane %v3929_v29, 2  ;;  %v4181_v2 = vpack.c.bf16 %v3886_v35, %v4609_v46  ;;  %vm4188_vm13 = vcmp.eq.s32.totalorder %v444_v7, 1  ;;  %v3544_v35 = vld [vmem:[%s4582_s1 + $0x190] sm:$0xff]   ;;  %v3548_v7 = vld [vmem:[%s4582_s1 + $0x1a0] sm:$0xff]  }
  0x4b   : > { %3131 = vmatprep.subr.bf16.mxu1 %v3541_v23  ;;  %v948_v18 = vsel %vm923_vm6, %v945_v48, %v947_v30  ;;  %v350_v61 = vmul.f32 %v3685_v16, %v313_v51  ;;  %vm4203_vm14 = vmor %vm423_vm0, %vm4188_vm13  ;;  %v959_v17 = vrot.slane %v4013_v19, 2  ;;  %v962_v19 = vrot.slane %v4022_v24, 2 }
  0x4c   : > { %v946_v45 = vsel %vm923_vm6, %v944_v40, %v945_v48  ;;  %v953_v20 = vsel %vm923_vm6, %v950_v49, %v952_v1  ;;  %vm2763_vm15 = vmneg %vm4188_vm13  ;;  %v955_v40 = vrot.slane %v3962_v28, 2  ;;  %v4619_v1 = vmax.f32 %v3937_v41, 0.0 }
  0x4d   : > { %vm2764_vm0 = vmneg %vm4203_vm14  ;;  %v4225_v32 = vpack.c.bf16 %v948_v18, %v946_v45  ;;  %v1534_v38 = vrot.slane %v4073_v33, 2  ;;  %v3550_v33 = vld [vmem:[%s4582_s1 + $0x1a8] sm:$0xff]  }
  0x4e   : > { %3132 = vmatpush3.bf16.msra.mxu1 %v3541_v23  ;;  %v349_v23 = vmul.f32 %v3685_v16, %v312_v15  ;;  %v4221_v16 = vadd.f32 %v3696_v22, %v350_v61  ;;  %vm4236_vm2 = vmpackc.low %vm2763_vm15, %vm2764_vm0  ;;  %v4262_v12 = vpack.c.bf16 %v3962_v28, %v4619_v1  ;;  %v284_v15 = vld [vmem:[%s3666_s22 + $0x74] sm:$0x1] }
  0x4f   : > { %3242 = vmatmul.mubr.bf16.vlgmr.msra.gmra.mrb[0].mxu0 %v4148_v57  ;;  %3133 = vmatprep.subr.bf16.mxu1 %v3543_v13  ;;  %vm4248_vm3 = vmor %vm428_vm1, %vm4188_vm13  ;;  %v314_v18 = vunpack.c.l.bf16 %v284_v15  ;;  %v3551_v61 = vld [vmem:[%s4582_s1 + $0xb0] sm:$0xff]   ;;  %vm2412_vm1 = vcmask 1040384  }
  0x50   : > { %3258 = vmatpush3.bf16.msra.mxu0 %v3540_v31  ;;  %3245 = vmatprep.mubr.bf16.mxu0 %v4159_v14  ;;  %v951_v31 = vsel %vm923_vm6, %v949_v39, %v950_v49  ;;  %v4218_v9 = vadd.f32 %v3696_v22, %v349_v23  ;;  %v957_v22 = vrot.slane %v3983_v3, 2  ;;  %v4618_v3 = vmax.f32 %v3915_v5, 0.0 }
  0x51   : > { %3259 = vmatprep.subr.bf16.mxu0 %v3542_v58  ;;  %3118 = vmatmul.mubr.msk.bf16.gmra.mrb[4].mxu1 %vm4118_vm12, %v4164_v0  ;;  %v4240_v30 = vpack.c.bf16 %v953_v20, %v951_v31  ;;  %v417_v50 = vmax.f32 %v4221_v16, 0.0  ;;  %v3579_v31 = vld [vmem:[%s4583_s2] ss:$0 sm:$0xff] }
  0x52   : > { %3134 = vmatpush3.bf16.msra.mxu1 %v3543_v13  ;;  %3121 = vmatprep.mubr.msk.bf16.mxu1 %vm4118_vm12, %v4181_v2  ;;  %v954_v13 = vrot.slane %v3972_v10, 2  ;;  %v416_v39 = vmax.f32 %v4218_v9, 0.0  ;;  %v4255_v49 = vpack.c.bf16 %v3929_v29, %v4618_v3  ;;  %v3549_v29 = vld [vmem:[%s4582_s1 + $0xa8] sm:$0xff]   ;;  %v958_v28 = vsel %vm923_vm6, %v955_v40, %v957_v22  ;;  %v3573_v9 = vld [vmem:[%s4582_s1 + $0x210] sm:$0xff]  }
  0x53   : > { %3135 = vmatprep.subr.bf16.mxu1 %v3545_v6  ;;  %v501_v51 = vsel %vm4188_vm13, 0.0, %v417_v50  ;;  %v351_v20 = vmul.f32 %v3579_v31, %v314_v18  ;;  %v1537_v22 = vrot.slane %v4080_v37, 2  ;;  %v4620_v3 = vmax.f32 %v3977_v52, 0.0  ;;  %v3553_v37 = vld [vmem:[%s4582_s1 + $0xb8] sm:$0xff]   ;;  %v3560_v18 = vld [vmem:[%s4582_s1 + $0x1d0] sm:$0xff]  }
  0x54   : > { %3260 = vmatpush3.bf16.msra.mxu0 %v3542_v58  ;;  %v960_v58 = vrot.slane %v4003_v34, 2  ;;  %v500_v5 = vsel %vm4203_vm14, 0.0, %v416_v39  ;;  %v956_v41 = vsel %vm923_vm6, %v954_v13, %v955_v40  ;;  %v2089_v54 = vrot.slane %v501_v51, 2  ;;  %v3567_v31 = vld [vmem:[%s4582_s1 + $0xf0] sm:$0xff]  }
  0x55   : > { %3261 = vmatprep.subr.bf16.mxu0 %v3544_v35  ;;  %v1902_v24 = vrot.slane %v500_v5, 1  ;;  %v2088_v46 = vrot.slane %v500_v5, 2  ;;  %v4292_v23 = vpack.c.bf16 %v958_v28, %v956_v41  ;;  %v1535_v40 = vrot.slane %v4045_v4, 2  ;;  %v3552_v5 = vld [vmem:[%s4582_s1 + $0x1b0] sm:$0xff]  }
  0x56   : > { %3136 = vmatpush3.bf16.msra.mxu1 %v3545_v6  ;;  %v961_v45 = vsel %vm923_vm6, %v959_v17, %v960_v58  ;;  %v963_v6 = vsel %vm923_vm6, %v960_v58, %v962_v19  ;;  %v4317_v58 = vpack.c.bf16 %v4003_v34, %v4620_v3  ;;  %v2766_v8 = vpack.c.bf16 %v417_v50, %v416_v39 }
  0x57   : > { %3246 = vmatmul.mubr.bf16.gmra.mrb[4].mxu0 %v4225_v32  ;;  %3137 = vmatprep.subr.bf16.mxu1 %v3547_v47  ;;  %v4304_v13 = vpack.c.bf16 %v963_v6, %v961_v45  ;;  %v4309_v17 = vsel %vm923_vm6, %v2088_v46, %v2089_v54  ;;  %v1536_v52 = vsel %vm923_vm6, %v1534_v38, %v1535_v40  ;;  %v3555_v46 = vld [vmem:[%s4582_s1 + $0xc0] sm:$0xff]   ;;  %v3559_v45 = vld [vmem:[%s4582_s1 + $0xd0] sm:$0xff]   ;;  %v3558_v6 = vld [vmem:[%s4582_s1 + $0x1c8] sm:$0xff]  }
  0x58   : > { %3262 = vmatpush3.bf16.msra.mxu0 %v3544_v35  ;;  %3249 = vmatprep.mubr.bf16.mxu0 %v4240_v30  ;;  %v1903_v35 = vrot.slane %v501_v51, 1  ;;  %v1538_v34 = vsel %vm923_vm6, %v1535_v40, %v1537_v22  ;;  %v3557_v51 = vld [vmem:[%s4582_s1 + $0xc8] sm:$0xff]   ;;  %v3564_v38 = vld [vmem:[%s4582_s1 + $0x1e0] sm:$0xff]   ;;  %v3569_v22 = vld [vmem:[%s4582_s1 + $0xf8] sm:$0xff]  }
  0x59   : > { %3263 = vmatprep.subr.bf16.mxu0 %v3546_v56  ;;  %3122 = vmatmul.mubr.msk.bf16.gmra.mrb[8].mxu1 %vm4118_vm12, %v4255_v49  ;;  %v4340_v28 = vpack.c.bf16 %v1538_v34, %v1536_v52  ;;  %v3566_v40 = vld [vmem:[%s4582_s1 + $0x1e8] sm:$0xff]  }
  0x5a   : > { %3138 = vmatpush3.bf16.msra.mxu1 %v3547_v47  ;;  %3125 = vmatprep.mubr.msk.bf16.mxu1 %vm4118_vm12, %v4262_v12  ;;  %v4302_v47 = vsel %vm551_vm5, %v1902_v24, %v1903_v35 }
  0x5b   : > { %3139 = vmatprep.subr.bf16.mxu1 %v3549_v29 }
  0x5c   : > { %3264 = vmatpush3.bf16.msra.mxu0 %v3546_v56  ;;  %v3580_v56 = vld [vmem:[%s4584_s3] ss:$0 sm:$0xff] }
  0x5d   : > { %3265 = vmatprep.subr.bf16.mxu0 %v3548_v7  ;;  %v388_v19 = vadd.f32 %v3580_v56, %v351_v20  ;;  %v4416_v20 = vpack.c.bf16 %v4045_v4, %v413_v53  ;;  %v3568_v53 = vld [vmem:[%s4582_s1 + $0x1f0] sm:$0xff]   ;;  %v3571_v4 = vld [vmem:[%s4582_s1 + $0x200] sm:$0xff]  }
  0x5e   : > { %3140 = vmatpush3.bf16.msra.mxu1 %v3549_v29 }
  0x5f   : > { %3250 = vmatmul.mubr.bf16.gmra.mrb[8].mxu0 %v4292_v23  ;;  %3141 = vmatprep.subr.bf16.mxu1 %v3551_v61  ;;  %v418_v1 = vmax.f32 %v388_v19, 0.0 }
  0x60   : > { %3266 = vmatpush3.bf16.msra.mxu0 %v3548_v7  ;;  %3253 = vmatprep.mubr.bf16.mxu0 %v4304_v13  ;;  %v3556_v7 = vld [vmem:[%s4582_s1 + $0x1c0] sm:$0xff]  }
  0x61   : > { %3267 = vmatprep.subr.bf16.mxu0 %v3550_v33  ;;  %3126 = vmatmul.mubr.msk.bf16.gmra.mrb[12].mxu1 %vm4118_vm12, %v4317_v58  ;;  %v502_v29 = vsel %vm4248_vm3, 0.0, %v418_v1 }
  0x62   : > { %3142 = vmatpush3.bf16.msra.mxu1 %v3551_v61  ;;  %3145 = vmatprep.mubr.bf16.mxu1 %v980_v60  ;;  %v1905_v24 = vrot.slane %v502_v29, 1  ;;  %v2091_v41 = vrot.slane %v502_v29, 2  ;;  %v3565_v61 = vld [vmem:[%s4582_s1 + $0xe8] sm:$0xff]  }
  0x63   : > { %3143 = vmatprep.subr.bf16.mxu1 %v3553_v37 }
  0x64   : > { %3268 = vmatpush3.bf16.msra.mxu0 %v3550_v33  ;;  %v4346_v15 = vsel %vm551_vm5, %v1903_v35, %v1905_v24  ;;  %v4349_v10 = vsel %vm923_vm6, %v2089_v54, %v2091_v41  ;;  %v3563_v35 = vld [vmem:[%s4582_s1 + $0xe0] sm:$0xff]   ;;  %v3562_v54 = vld [vmem:[%s4582_s1 + $0x1d8] sm:$0xff]  }
  0x65   : > { %3269 = vmatprep.subr.bf16.mxu0 %v3552_v5  ;;  %v1909_v42 = vpack.c.bf16 %v4346_v15, %v4302_v47  ;;  %v2095_v60 = vpack.c.bf16 %v4349_v10, %v4309_v17  ;;  %v3570_v33 = vld [vmem:[%s4582_s1 + $0x1f8] sm:$0xff]  }
  0x66   : > { %3144 = vmatpush3.bf16.msra.mxu1 %v3553_v37 }
  0x67   : > { %3254 = vmatmul.mubr.bf16.gmra.mrb[12].mxu0 %v4340_v28  ;;  %3161 = vmatprep.subr.bf16.mxu1 %v3555_v46 }
  0x68   : > { %3270 = vmatpush3.bf16.msra.mxu0 %v3552_v5  ;;  %3273 = vmatprep.mubr.msk.bf16.mxu0 %vm4118_vm12, %v4125_v43 }
  0x69   : > { %3271 = vmatprep.subr.bf16.mxu0 %v3554_v55  ;;  %3146 = vmatmul.mubr.bf16.vlgmr.msra.gmra.mrb[0].mxu1 %v4103_v44  ;;  %v3561_v44 = vld [vmem:[%s4582_s1 + $0xd8] sm:$0xff]  }
  0x6a   : > { %3162 = vmatpush3.bf16.msra.mxu1 %v3555_v46  ;;  %3149 = vmatprep.mubr.bf16.mxu1 %v4148_v57 }
  0x6b   : > { %3163 = vmatprep.subr.bf16.mxu1 %v3557_v51 }
  0x6c   : > { %3272 = vmatpush3.bf16.msra.mxu0 %v3554_v55 }
  0x6d   : > { %3289 = vmatprep.subr.bf16.mxu0 %v3556_v7 }
  0x6e   : > { %3164 = vmatpush3.bf16.msra.mxu1 %v3557_v51 }
  0x6f   : > { %3274 = vmatmul.mubr.msk.bf16.vlgmr.msra.gmra.mrb[0].mxu0 %vm4118_vm12, %v4164_v0  ;;  %3165 = vmatprep.subr.bf16.mxu1 %v3559_v45 }
  0x70   : > { %3290 = vmatpush3.bf16.msra.mxu0 %v3556_v7  ;;  %3277 = vmatprep.mubr.msk.bf16.mxu0 %vm4118_vm12, %v4181_v2 }
  0x71   : > { %3291 = vmatprep.subr.bf16.mxu0 %v3558_v6  ;;  %3150 = vmatmul.mubr.bf16.gmra.mrb[4].mxu1 %v4159_v14 }
  0x72   : > { %3166 = vmatpush3.bf16.msra.mxu1 %v3559_v45  ;;  %3153 = vmatprep.mubr.bf16.mxu1 %v4225_v32 }
  0x73   : > { %3167 = vmatprep.subr.bf16.mxu1 %v3561_v44 }
  0x74   : > { %3292 = vmatpush3.bf16.msra.mxu0 %v3558_v6 }
  0x75   : > { %3293 = vmatprep.subr.bf16.mxu0 %v3560_v18 }
  0x76   : > { %3168 = vmatpush3.bf16.msra.mxu1 %v3561_v44 }
  0x77   : > { %3278 = vmatmul.mubr.msk.bf16.gmra.mrb[4].mxu0 %vm4118_vm12, %v4255_v49  ;;  %3169 = vmatprep.subr.bf16.mxu1 %v3563_v35 }
  0x78   : > { %3294 = vmatpush3.bf16.msra.mxu0 %v3560_v18  ;;  %3281 = vmatprep.mubr.msk.bf16.mxu0 %vm4118_vm12, %v4262_v12 }
  0x79   : > { %3295 = vmatprep.subr.bf16.mxu0 %v3562_v54  ;;  %3154 = vmatmul.mubr.bf16.gmra.mrb[8].mxu1 %v4240_v30 }
  0x7a   : > { %3170 = vmatpush3.bf16.msra.mxu1 %v3563_v35  ;;  %3157 = vmatprep.mubr.bf16.mxu1 %v4292_v23 }
  0x7b   : > { %3171 = vmatprep.subr.bf16.mxu1 %v3565_v61 }
  0x7c   : > { %3296 = vmatpush3.bf16.msra.mxu0 %v3562_v54 }
  0x7d   : > { %3297 = vmatprep.subr.bf16.mxu0 %v3564_v38 }
  0x7e   : > { %3172 = vmatpush3.bf16.msra.mxu1 %v3565_v61 }
  0x7f   : > { %3282 = vmatmul.mubr.msk.bf16.gmra.mrb[8].mxu0 %vm4118_vm12, %v4317_v58  ;;  %3173 = vmatprep.subr.bf16.mxu1 %v3567_v31 }
  0x80   : > { %3298 = vmatpush3.bf16.msra.mxu0 %v3564_v38  ;;  %3285 = vmatprep.mubr.msk.bf16.mxu0 %vm4118_vm12, %v4416_v20 }
  0x81   : > { %3299 = vmatprep.subr.bf16.mxu0 %v3566_v40  ;;  %3158 = vmatmul.mubr.bf16.gmra.mrb[12].mxu1 %v4304_v13 }
  0x82   : > { %3174 = vmatpush3.bf16.msra.mxu1 %v3567_v31  ;;  %3177 = vmatprep.mubr.msk.bf16.mxu1 %vm4118_vm12, %v4110_v63  ;;  %v3572_v63 = vld [vmem:[%s4582_s1 + $0x208] sm:$0xff]  }
  0x83   : > { %3175 = vmatprep.subr.bf16.mxu1 %v3569_v22 }
  0x84   : > { %3300 = vmatpush3.bf16.msra.mxu0 %v3566_v40 }
  0x85   : > { %3301 = vmatprep.subr.bf16.mxu0 %v3568_v53 }
  0x86   : > { %3176 = vmatpush3.bf16.msra.mxu1 %v3569_v22 }
  0x87   : > { %3286 = vmatmul.mubr.msk.bf16.gmra.mrb[12].mxu0 %vm4236_vm2, %v2766_v8  ;;  %3353 = vmatprep.subr.bf16.mxu1 %v3571_v4 }
  0x88   : > { %3302 = vmatpush3.bf16.msra.mxu0 %v3568_v53  ;;  %3305 = vmatprep.mubr.bf16.mxu0 %v3859_v11  ;;  %v3574_v11 = vld [vmem:[%s4582_s1 + $0x218] sm:$0xff]  }
  0x89   : > { %3303 = vmatprep.subr.bf16.mxu0 %v3570_v33  ;;  %3178 = vmatmul.mubr.msk.bf16.vlgmr.msra.gmra.mrb[0].mxu1 %vm4118_vm12, %v4125_v43 }
  0x8a   : > { %3361 = vmatpush3.bf16.msra.mxu1 %v3571_v4  ;;  %3181 = vmatprep.mubr.msk.bf16.mxu1 %vm4118_vm12, %v4164_v0 }
  0x8b   : > { %3354 = vmatprep.subr.bf16.mxu1 %v3572_v63 }
  0x8c   : > { %3304 = vmatpush3.bf16.msra.mxu0 %v3570_v33 }
  0x8d   : > { %3321 = vmatprep.subr.bf16.mxu0 %v3571_v4 }
  0x8e   : > { %3362 = vmatpush3.bf16.msra.mxu1 %v3572_v63 }
  0x8f   : > { %3306 = vmatmul.mubr.bf16.vlgmr.msra.gmra.mrb[0].mxu0 %v3901_v59  ;;  %3355 = vmatprep.subr.bf16.mxu1 %v3573_v9  ;;  %v3575_v59 = vld [vmem:[%s4582_s1 + $0x220] sm:$0xff]  }
  0x90   : > { %3322 = vmatpush3.bf16.msra.mxu0 %v3571_v4  ;;  %3309 = vmatprep.mubr.bf16.mxu0 %v3932_v36  ;;  %v3576_v36 = vld [vmem:[%s4582_s1 + $0x228] sm:$0xff]  }
  0x91   : > { %3323 = vmatprep.subr.bf16.mxu0 %v3572_v63  ;;  %3182 = vmatmul.mubr.msk.bf16.gmra.mrb[4].mxu1 %vm4118_vm12, %v4181_v2 }
  0x92   : > { %3363 = vmatpush3.bf16.msra.mxu1 %v3573_v9  ;;  %3185 = vmatprep.mubr.msk.bf16.mxu1 %vm4118_vm12, %v4255_v49 }
  0x93   : > { %3356 = vmatprep.subr.bf16.mxu1 %v3574_v11 }
  0x94   : > { %3324 = vmatpush3.bf16.msra.mxu0 %v3572_v63 }
  0x95   : > { %3325 = vmatprep.subr.bf16.mxu0 %v3573_v9 }
  0x96   : > { %3364 = vmatpush3.bf16.msra.mxu1 %v3574_v11 }
  0x97   : > { %3310 = vmatmul.mubr.bf16.gmra.mrb[4].mxu0 %v3990_v21  ;;  %3357 = vmatprep.subr.bf16.mxu1 %v3575_v59  ;;  %v3577_v21 = vld [vmem:[%s4582_s1 + $0x230] sm:$0xff]  }
  0x98   : > { %3326 = vmatpush3.bf16.msra.mxu0 %v3573_v9  ;;  %3313 = vmatprep.mubr.bf16.mxu0 %v4007_v62  ;;  %v3578_v62 = vld [vmem:[%s4582_s1 + $0x238] sm:$0xff]  }
  0x99   : > { %3327 = vmatprep.subr.bf16.mxu0 %v3574_v11  ;;  %3186 = vmatmul.mubr.msk.bf16.gmra.mrb[8].mxu1 %vm4118_vm12, %v4262_v12 }
  0x9a   : > { %3365 = vmatpush3.bf16.msra.mxu1 %v3575_v59  ;;  %3189 = vmatprep.mubr.msk.bf16.mxu1 %vm4118_vm12, %v4317_v58 }
  0x9b   : > { %3358 = vmatprep.subr.bf16.mxu1 %v3576_v36 }
  0x9c   : > { %3328 = vmatpush3.bf16.msra.mxu0 %v3574_v11 }
  0x9d   : > { %3329 = vmatprep.subr.bf16.mxu0 %v3575_v59 }
  0x9e   : > { %3366 = vmatpush3.bf16.msra.mxu1 %v3576_v36 }
  0x9f   : > { %3314 = vmatmul.mubr.bf16.gmra.mrb[8].mxu0 %v4064_v26  ;;  %3359 = vmatprep.subr.bf16.mxu1 %v3577_v21 }
  0xa0   : > { %3330 = vmatpush3.bf16.msra.mxu0 %v3575_v59  ;;  %3317 = vmatprep.mubr.bf16.mxu0 %v4112_v25 }
  0xa1   : > { %3331 = vmatprep.subr.bf16.mxu0 %v3576_v36  ;;  %3190 = vmatmul.mubr.msk.bf16.gmra.mrb[12].mxu1 %vm4118_vm12, %v4416_v20 }
  0xa2   : > { %3367 = vmatpush3.bf16.msra.mxu1 %v3577_v21  ;;  %3345 = vmatprep.mubr.bf16.mxu1 %v4292_v23 }
  0xa3   : > { %3360 = vmatprep.subr.bf16.mxu1 %v3578_v62 }
  0xa4   : > { %3332 = vmatpush3.bf16.msra.mxu0 %v3576_v36 }
  0xa5   : > { %3333 = vmatprep.subr.bf16.mxu0 %v3577_v21 }
  0xa6   : > { %3368 = vmatpush3.bf16.msra.mxu1 %v3578_v62 }
  0xa7   : > { %3318 = vmatmul.mubr.bf16.gmra.mrb[12].mxu0 %v1909_v42 }
  0xa8   : > { %3334 = vmatpush3.bf16.msra.mxu0 %v3577_v21  ;;  %3337 = vmatprep.mubr.bf16.mxu0 %v4148_v57 }
  0xa9   : > { %3335 = vmatprep.subr.bf16.mxu0 %v3578_v62  ;;  %3346 = vmatmul.mubr.bf16.vlgmr.msra.gmra.mrb[16].mxu1 %v4304_v13 }
  0xaa   : > { %3349 = vmatprep.mubr.bf16.mxu1 %v4340_v28 }
  0xac   : > { %3336 = vmatpush3.bf16.msra.mxu0 %v3578_v62 }
  0xaf   : > { %3338 = vmatmul.mubr.bf16.vlgmr.msra.gmra.mrb[0].mxu0 %v4159_v14 }
  0xb0   : > { %3341 = vmatprep.mubr.bf16.mxu0 %v4225_v32 }
  0xb1   : > { %3350 = vmatmul.mubr.bf16.gmra.mrb[20].mxu1 %v2095_v60 }
  0xb7   : > { %3342 = vmatmul.mubr.bf16.gmra.mrb[4].mxu0 %v4240_v30 }
 0x15c   : > { %v3179_v26 = vpop.f32.mrb[0].mxu1 }
 0x15d   : > { %v1266_v25 = vpop.f32.mrb[1].mxu1 }
 0x15e   : > { %v3180_v27 = vpop.f32.mrb[2].mxu1 }
 0x15f   : > { %v1269_v43 = vpop.f32.mrb[3].mxu1 }
 0x164   : > { %v4511_v57 = vpop.f32.mrb[4].mxu1 }
 0x165   : > { %v4513_v0 = vpop.f32.mrb[5].mxu1 }
 0x166   : > { %v4515_v2 = vpop.f32.mrb[6].mxu1 }
 0x167   : > { %v4517_v14 = vpop.f32.mrb[7].mxu1 }
 0x16c   : > { %v3187_v16 = vpop.f32.mrb[8].mxu1 }
 0x16d   : > { %v1298_v32 = vpop.f32.mrb[9].mxu1 }
 0x16e   : > { %v3188_v48 = vpop.f32.mrb[10].mxu1 }
 0x16f   : > { %v1301_v39 = vpop.f32.mrb[11].mxu1 }
 0x172   : > { %v3315_v49 = vpop.f32.mrb[8].mxu0 }
 0x173   : > { %v3377_v12 = vadd.f32 %v3315_v49, %v3187_v16  ;;  %v2041_v30 = vpop.f32.mrb[9].mxu0 }
 0x174   : > { %v3379_v50 = vadd.f32 %v2041_v30, %v1298_v32  ;;  %v3316_v23 = vpop.f32.mrb[10].mxu0  ;;  %v3191_v47 = vpop.f32.mrb[12].mxu1 }
 0x175   : > { %v3381_v13 = vadd.f32 %v3316_v23, %v3188_v48  ;;  %v2044_v17 = vpop.f32.mrb[11].mxu0  ;;  %v1314_v3 = vpop.f32.mrb[13].mxu1 }
 0x176   : > { %v3383_v58 = vadd.f32 %v2044_v17, %v1301_v39  ;;  %v3192_v56 = vpop.f32.mrb[14].mxu1 }
 0x177   : > { %v1317_v19 = vpop.f32.mrb[15].mxu1 }
 0x17a   : > { %v3319_v37 = vpop.f32.mrb[12].mxu0 }
 0x17b   : > { %v3385_v1 = vadd.f32 %v3319_v37, %v3191_v47  ;;  %v2057_v52 = vpop.f32.mrb[13].mxu0 }
 0x17c   : > { %v3387_v34 = vadd.f32 %v2057_v52, %v1314_v3  ;;  %v3320_v5 = vpop.f32.mrb[14].mxu0  ;;  %v3347_v29 = vpop.f32.mrb[16].mxu1 }
 0x17d   : > { %v3389_v24 = vadd.f32 %v3320_v5, %v3192_v56  ;;  %v2060_v41 = vpop.f32.mrb[15].mxu0  ;;  %v4520_v28 = vadd.f32 %v3377_v12, %v3347_v29  ;;  %v2227_v46 = vpop.f32.mrb[17].mxu1 }
 0x17e   : > { %v3391_v15 = vadd.f32 %v2060_v41, %v1317_v19  ;;  %v4522_v10 = vadd.f32 %v3379_v50, %v2227_v46  ;;  %v3348_v55 = vpop.f32.mrb[18].mxu1 }
 0x17f   : > { %v4524_v42 = vadd.f32 %v3381_v13, %v3348_v55  ;;  %v2230_v60 = vpop.f32.mrb[19].mxu1 }
 0x180   : > { %v4531_v51 = vadd.f32 %v3383_v58, %v2230_v60  ;;  %v2385_v60 = vmul.f32 %v4520_v28, %v4520_v28 }
 0x181   : > { %v2898_v7 = vpack.c.bf16 %v4524_v42, %v4520_v28 }
 0x182   : > { %v3339_v45 = vpop.f32.mrb[0].mxu0  ;;  %v2893_v6 = vpack.c.bf16 %v4531_v51, %v4522_v10 }
 0x183   : > { %v3369_v44 = vadd.f32 %v3339_v45, %v3179_v26  ;;  %v2195_v18 = vpop.f32.mrb[1].mxu0  ;;  %2918 = vst [vmem:[%s4529_s7 + $0x28] sm:$0xff] %v2898_v7  }
 0x184   : > { %v3370_v35 = vadd.f32 %v2195_v18, %v1266_v25  ;;  %v3340_v54 = vpop.f32.mrb[2].mxu0  ;;  %2917 = vst [vmem:[%s4529_s7 + $0x20] sm:$0xff] %v2893_v6   ;;  %v3351_v61 = vpop.f32.mrb[20].mxu1  ;;  %v2386_v6 = vmul.f32 %v4524_v42, %v4524_v42 }
 0x185   : > { %v3371_v38 = vadd.f32 %v3340_v54, %v3180_v27  ;;  %v2198_v31 = vpop.f32.mrb[3].mxu0  ;;  %v4539_v20 = vadd.f32 %v3385_v1, %v3351_v61  ;;  %v2243_v40 = vpop.f32.mrb[21].mxu1  ;;  %v2377_v26 = vmul.f32 %v3369_v44, %v3369_v44 }
 0x186   : > { %v3372_v22 = vadd.f32 %v2198_v31, %v1269_v43  ;;  %v3388_v53 = vadd.f32 %v3387_v34, %v2243_v40  ;;  %v3352_v8 = vpop.f32.mrb[22].mxu1  ;;  %v2375_v9 = vmul.f32 %v3370_v35, %v3370_v35 }
 0x187   : > { %v2878_v4 = vpack.c.bf16 %v3371_v38, %v3369_v44  ;;  %v4541_v33 = vadd.f32 %v3389_v24, %v3352_v8  ;;  %v2246_v63 = vpop.f32.mrb[23].mxu1  ;;  %v2378_v39 = vmul.f32 %v3371_v38, %v3371_v38  ;;  %v2383_v24 = vmul.f32 %v4522_v10, %v4522_v10 }
 0x188   : > { %v2873_v11 = vpack.c.bf16 %v3372_v22, %v3370_v35  ;;  %v2354_v59 = vadd.f32 %v3372_v22, %v3370_v35  ;;  %v2376_v36 = vmul.f32 %v3372_v22, %v3372_v22  ;;  %v3392_v62 = vadd.f32 %v3391_v15, %v2246_v63 }
 0x189   : > { %2914 = vst [vmem:[%s4529_s7 + $0x8] sm:$0xff] %v2878_v4   ;;  %v2908_v21 = vpack.c.bf16 %v4541_v33, %v4539_v20  ;;  %v2387_v18 = vmul.f32 %v3388_v53, %v3388_v53  ;;  %v2389_v31 = vmul.f32 %v4539_v20, %v4539_v20  ;;  %v2390_v22 = vmul.f32 %v4541_v33, %v4541_v33 }
 0x18a   : > { %2874 = vst [vmem:[%s4529_s7] sm:$0xff] %v2873_v11   ;;  %v2355_v25 = vadd.f32 %v3369_v44, %v2354_v59  ;;  %v2391_v27 = vadd.f32 %v2376_v36, %v2375_v9  ;;  %v3343_v43 = vpop.f32.mrb[4].mxu0  ;;  %v2903_v48 = vpack.c.bf16 %v3392_v62, %v3388_v53 }
 0x18b   : > { %v3373_v16 = vadd.f32 %v3343_v43, %v4511_v57  ;;  %v2211_v32 = vpop.f32.mrb[5].mxu0  ;;  %2920 = vst [vmem:[%s4529_s7 + $0x38] sm:$0xff] %v2908_v21  }
 0x18c   : > { %v2392_v49 = vadd.f32 %v2391_v27, %v2377_v26  ;;  %v3374_v12 = vadd.f32 %v2211_v32, %v4513_v0  ;;  %v2356_v30 = vadd.f32 %v3371_v38, %v2355_v25  ;;  %v3344_v50 = vpop.f32.mrb[6].mxu0  ;;  %2919 = vst [vmem:[%s4529_s7 + $0x30] sm:$0xff] %v2903_v48   ;;  %v2388_v38 = vmul.f32 %v3392_v62, %v3392_v62 }
 0x18d   : > { %v3375_v23 = vadd.f32 %v3344_v50, %v4515_v2  ;;  %v2214_v47 = vpop.f32.mrb[7].mxu0  ;;  %v2381_v52 = vmul.f32 %v3373_v16, %v3373_v16 }
 0x18e   : > { %v2357_v13 = vadd.f32 %v3374_v12, %v2356_v30  ;;  %v2379_v17 = vmul.f32 %v3374_v12, %v3374_v12  ;;  %v2393_v3 = vadd.f32 %v2392_v49, %v2378_v39  ;;  %v3376_v57 = vadd.f32 %v2214_v47, %v4517_v14 }
 0x18f   : > { %v2888_v58 = vpack.c.bf16 %v3375_v23, %v3373_v16  ;;  %v2382_v5 = vmul.f32 %v3375_v23, %v3375_v23  ;;  %v2384_v14 = vmul.f32 %v4531_v51, %v4531_v51 }
 0x190   : > { %v2394_v56 = vadd.f32 %v2393_v3, %v2379_v17  ;;  %v2883_v19 = vpack.c.bf16 %v3376_v57, %v3374_v12  ;;  %v2358_v37 = vadd.f32 %v3376_v57, %v2357_v13  ;;  %v2380_v1 = vmul.f32 %v3376_v57, %v3376_v57 }
 0x191   : > { %2916 = vst [vmem:[%s4529_s7 + $0x18] sm:$0xff] %v2888_v58  }
 0x192   : > { %2915 = vst [vmem:[%s4529_s7 + $0x10] sm:$0xff] %v2883_v19   ;;  %v2359_v0 = vadd.f32 %v3373_v16, %v2358_v37  ;;  %v2395_v34 = vadd.f32 %v2394_v56, %v2380_v1 }
 0x194   : > { %v2360_v29 = vadd.f32 %v3375_v23, %v2359_v0  ;;  %v2396_v2 = vadd.f32 %v2395_v34, %v2381_v52 }
 0x196   : > { %v2361_v41 = vadd.f32 %v4522_v10, %v2360_v29  ;;  %v2397_v46 = vadd.f32 %v2396_v2, %v2382_v5 }
 0x198   : > { %v2398_v15 = vadd.f32 %v2397_v46, %v2383_v24  ;;  %v2362_v55 = vadd.f32 %v4531_v51, %v2361_v41 }
 0x19a   : > { %v2363_v7 = vadd.f32 %v4520_v28, %v2362_v55  ;;  %v2399_v45 = vadd.f32 %v2398_v15, %v2384_v14 }
 0x19c   : > { %v2364_v44 = vadd.f32 %v4524_v42, %v2363_v7  ;;  %v2400_v10 = vadd.f32 %v2399_v45, %v2385_v60 }
 0x19e   : > { %v2365_v35 = vadd.f32 %v3388_v53, %v2364_v44  ;;  %v2401_v54 = vadd.f32 %v2400_v10, %v2386_v6 }
 0x1a0   : > { %v2366_v61 = vadd.f32 %v3392_v62, %v2365_v35  ;;  %v2402_v51 = vadd.f32 %v2401_v54, %v2387_v18 }
 0x1a2   : > { %v2367_v28 = vadd.f32 %v4539_v20, %v2366_v61  ;;  %v2403_v40 = vadd.f32 %v2402_v51, %v2388_v38 }
 0x1a4   : > { %v2368_v42 = vadd.f32 %v4541_v33, %v2367_v28  ;;  %v2404_v8 = vadd.f32 %v2403_v40, %v2389_v31 }
 0x1a6   : > { %v2369_v4 = vrot.slane %v2368_v42, 4  ;;  %v2405_v63 = vadd.f32 %v2404_v8, %v2390_v22 }
 0x1a8   : > { %v2370_v53 = vadd.f32 %v2369_v4, %v2368_v42  ;;  %v2406_v9 = vrot.slane %v2405_v63, 4 }
 0x1aa   : > { %v2371_v11 = vrot.slane %v2370_v53, 2  ;;  %v2407_v59 = vadd.f32 %v2406_v9, %v2405_v63 }
 0x1ac   : > { %v2372_v36 = vadd.f32 %v2371_v11, %v2370_v53  ;;  %v2408_v21 = vrot.slane %v2407_v59, 2 }
 0x1ae   : > { %v2373_v62 = vrot.slane %v2372_v36, 1  ;;  %v2409_v26 = vadd.f32 %v2408_v21, %v2407_v59 }
 0x1b0   : > { %v2410_v20 = vrot.slane %v2409_v26, 1  ;;  %v2374_v25 = vadd.f32 %v2373_v62, %v2372_v36 }
 0x1b2   : > { %v2411_v27 = vadd.f32 %v2410_v20, %v2409_v26 }
 0x1b4   : > { %v2413_v33 = vsel %vm2412_vm1, %v2374_v25, %v2411_v27 }
 0x1b5   : > { %v2415_v43 = vsel %vm2414_vm4, %v2413_v33, 0.0 }
 0x1b6   : > { %2416 = vst [vmem:[%s241_s10] sm:$0xff] %v2415_v43 }
 0x1b7 PF: > { %s16_s18 = sadd.s32 1, %s3587_s18  }
 0x1b8   : > { %p13_p10 = scmp.ge.s32.totalorder %s16_s18, 6  }
 0x1ba   :  { %15 = sbr.rel (!%p13_p10) target bundleno = 1 (0x1), region = 86 }

</bundles_post_ra>
